<compile_context>
chip_gen: v6e
topology: v6e:2x2x1
jax: 0.10.0
libtpu: 0.0.40
codegen_flags: <defaults>
</compile_context>

<pallas_src>
import math

import jax
import jax.numpy as jnp
from jax.experimental import pallas as pl
from jax.experimental.pallas import tpu as pltpu

# ---------------- model config (small, consistent with the module) ----------------
D_MODEL = 32
N_HEADS = 4
HEAD_DIM = D_MODEL // N_HEADS
HIDDEN = 64
N_LAYERS = 2
LN_EPS = 1e-5
VOCAB = 16
FEAT_IN = 12
NEG = -1e9  # large finite negative instead of -inf (NaN-proof for fully-masked rows)
ATTN_SCALE = 1.0 / math.sqrt(HEAD_DIM)


# ----------------------------- in-kernel math helpers ------------------------------
def _layer_norm(x, g, b):
    mean = jnp.mean(x, axis=-1, keepdims=True)
    xc = x - mean
    var = jnp.mean(xc * xc, axis=-1, keepdims=True)
    return xc * jax.lax.rsqrt(var + LN_EPS) * g + b


def _softmax_rows(s):
    s = s - jnp.max(s, axis=-1, keepdims=True)
    p = jnp.exp(s)
    return p * pl.reciprocal(jnp.sum(p, axis=-1, keepdims=True), approx=True)


def _attention_core(q_all, k_all, v_all, wo, mask):
    """q_all: (Nq, D), k_all/v_all: (Nk, D), wo: (D, D), mask: (Nq, Nk) additive.

    All heads in one invocation; output projection accumulated per head so no
    concat is needed.  Everything is a plain 2-D matmul on the MXU.
    """
    nq = q_all.shape[0]
    out = jnp.zeros((nq, D_MODEL), jnp.float32)
    for h in range(N_HEADS):  # unrolled: H=4, all inside one kernel launch
        lo = h * HEAD_DIM
        hi = lo + HEAD_DIM
        q = q_all[:, lo:hi]
        k = k_all[:, lo:hi]
        v = v_all[:, lo:hi]
        s = jax.lax.dot_general(
            q, k, (((1,), (1,)), ((), ())), preferred_element_type=jnp.float32
        ) * ATTN_SCALE + mask
        p = _softmax_rows(s)
        o = jnp.dot(p, v, preferred_element_type=jnp.float32)  # (Nq, HEAD_DIM)
        out = out + jnp.dot(o, wo[lo:hi, :], preferred_element_type=jnp.float32)
    return out


def _self_attention(x, wqkv, bqkv, wo, bo, mask):
    qkv = jnp.dot(x, wqkv, preferred_element_type=jnp.float32) + bqkv  # (N, 3D)
    q_all = qkv[:, :D_MODEL]
    k_all = qkv[:, D_MODEL:2 * D_MODEL]
    v_all = qkv[:, 2 * D_MODEL:]
    return _attention_core(q_all, k_all, v_all, wo, mask) + bo


def _cross_attention(xq, xkv, wq, bq, wkv, bkv, wo, bo, mask):
    q_all = jnp.dot(xq, wq, preferred_element_type=jnp.float32) + bq       # (Nq, D)
    kv = jnp.dot(xkv, wkv, preferred_element_type=jnp.float32) + bkv       # (Nk, 2D)
    k_all = kv[:, :D_MODEL]
    v_all = kv[:, D_MODEL:]
    return _attention_core(q_all, k_all, v_all, wo, mask) + bo


# ------------------------------- fused encoder stack -------------------------------
def _encoder_stack_kernel(
    feat_ref, posb_ref, wp_ref, mask_ref,
    wqkv_ref, bqkv_ref, wo_ref, bo_ref,
    w1_ref, b1_ref, w2_ref, b2_ref,
    g1_ref, be1_ref, g2_ref, be2_ref,
    gf_ref, bf_ref,
    out_ref,
    x_scr,
):
    l = pl.program_id(0)

    @pl.when(l == 0)
    def _():
        # input preprocessor ("features"): linear projection + (pos-emb + bias)
        x_scr[...] = (
            jnp.dot(feat_ref[...], wp_ref[...], preferred_element_type=jnp.float32)
            + posb_ref[...]
        )

    x = x_scr[...]
    # post-norm (norm_first=False): x = LN1(x + SA(x)); x = LN2(x + FFN(x))
    sa = _self_attention(x, wqkv_ref[...], bqkv_ref[...], wo_ref[...], bo_ref[...],
                         mask_ref[...])
    x = _layer_norm(x + sa, g1_ref[...], be1_ref[...])
    h = jnp.maximum(
        jnp.dot(x, w1_ref[...], preferred_element_type=jnp.float32) + b1_ref[...], 0.0)
    h = jnp.dot(h, w2_ref[...], preferred_element_type=jnp.float32) + b2_ref[...]
    x = _layer_norm(x + h, g2_ref[...], be2_ref[...])
    x_scr[...] = x

    @pl.when(l == pl.num_programs(0) - 1)
    def _():
        out_ref[...] = _layer_norm(x, gf_ref[...], bf_ref[...])


# ------------------------------- fused decoder stack -------------------------------
def _decoder_stack_kernel(
    x0_ref, mem_ref, smask_ref, cmask_ref,
    swqkv_ref, sbqkv_ref, swo_ref, sbo_ref,
    cwq_ref, cbq_ref, cwkv_ref, cbkv_ref, cwo_ref, cbo_ref,
    w1_ref, b1_ref, w2_ref, b2_ref,
    g1_ref, be1_ref, g2_ref, be2_ref, g3_ref, be3_ref,
    gf_ref, bf_ref, wlog_ref, blog_ref,
    out_ref, logits_ref, gen_ref,
    x_scr,
):
    l = pl.program_id(0)

    @pl.when(l == 0)
    def _():
        x_scr[...] = x0_ref[...]

    x = x_scr[...]
    mem = mem_ref[...]

    sa = _self_attention(x, swqkv_ref[...], sbqkv_ref[...], swo_ref[...], sbo_ref[...],
                         smask_ref[...])
    x = _layer_norm(x + sa, g1_ref[...], be1_ref[...])

    ca = _cross_attention(x, mem, cwq_ref[...], cbq_ref[...], cwkv_ref[...],
                          cbkv_ref[...], cwo_ref[...], cbo_ref[...], cmask_ref[...])
    x = _layer_norm(x + ca, g2_ref[...], be2_ref[...])

    h = jnp.maximum(
        jnp.dot(x, w1_ref[...], preferred_element_type=jnp.float32) + b1_ref[...], 0.0)
    h = jnp.dot(h, w2_ref[...], preferred_element_type=jnp.float32) + b2_ref[...]
    x = _layer_norm(x + h, g3_ref[...], be3_ref[...])
    x_scr[...] = x

    @pl.when(l == pl.num_programs(0) - 1)
    def _():
        # output preprocessor epilogue: final LN, logits head, argmax
        y = _layer_norm(x, gf_ref[...], bf_ref[...])
        out_ref[...] = y
        logits = jnp.dot(y, wlog_ref[...], preferred_element_type=jnp.float32) + blog_ref[...]
        logits_ref[...] = logits
        row_max = jnp.max(logits, axis=-1, keepdims=True)
        idx = jax.lax.broadcasted_iota(jnp.int32, logits.shape, 1)
        cand = jnp.where(logits == row_max, idx, jnp.int32(logits.shape[-1]))
        gen_ref[...] = jnp.min(cand, axis=-1, keepdims=True)  # first-occurrence argmax


# ------------------------------------ BlockSpecs ------------------------------------
def _full_spec(arr):
    """Whole-array block, constant across the layer grid (fetched once)."""
    nd = arr.ndim
    return pl.BlockSpec(arr.shape, lambda l, _nd=nd: (0,) * _nd)


def _stacked_spec(arr):
    """Per-layer slice of a weight stacked along a leading (N_LAYERS, ...) axis."""
    nd = arr.ndim
    return pl.BlockSpec((None,) + tuple(arr.shape[1:]),
                        lambda l, _nd=nd: (l,) + (0,) * (_nd - 1))


# ------------------------------------- masks ----------------------------------------
def _flat_attn_mask(B, Sq, Sk, key_pad=None, causal=False):
    """Additive (B*Sq, B*Sk) float32 mask for batch-flattened attention:
    block-diagonal across batches, optional key-padding (True == masked), optional
    causal.  Uses -1e9 (not -inf) so fully-masked rows stay finite."""
    qb = jnp.arange(B * Sq, dtype=jnp.int32) // Sq
    kb = jnp.arange(B * Sk, dtype=jnp.int32) // Sk
    mask = jnp.where(qb[:, None] == kb[None, :], 0.0, NEG).astype(jnp.float32)
    if key_pad is not None:
        mask = mask + jnp.where(key_pad.reshape(-1), NEG, 0.0).astype(jnp.float32)[None, :]
    if causal:
        qpos = jnp.arange(B * Sq, dtype=jnp.int32) % Sq
        kpos = jnp.arange(B * Sk, dtype=jnp.int32) % Sk
        mask = mask + jnp.where(kpos[None, :] > qpos[:, None], NEG, 0.0).astype(jnp.float32)
    return mask


# -------------------------------- encode / decode -----------------------------------
def encode(params, src_input, src_att_mask):
    B, S, F = src_input.shape
    N = B * S
    feat2d = src_input.reshape(N, F)
    # positional embedding + projection bias, pre-broadcast to (N, D) (pure glue)
    posb = jnp.tile(params["in_pos"], (B, 1)) + params["in_proj_b"][None, :]
    mask = _flat_attn_mask(B, S, S, key_pad=src_att_mask, causal=False)
    e = params["enc"]

    stacked_keys = ("Wqkv", "bqkv", "Wo", "bo", "W1", "b1", "W2", "b2",
                    "g1", "be1", "g2", "be2")
    inputs = ([feat2d, posb, params["in_proj_W"], mask]
              + [e[k] for k in stacked_keys]
              + [params["enc_norm_g"], params["enc_norm_b"]])
    in_specs = ([_full_spec(feat2d), _full_spec(posb), _full_spec(params["in_proj_W"]),
                 _full_spec(mask)]
                + [_stacked_spec(e[k]) for k in stacked_keys]
                + [_full_spec(params["enc_norm_g"]), _full_spec(params["enc_norm_b"])])

    out = pl.pallas_call(
        _encoder_stack_kernel,
        out_shape=jax.ShapeDtypeStruct((N, D_MODEL), jnp.float32),
        grid=(N_LAYERS,),
        in_specs=in_specs,
        out_specs=pl.BlockSpec((N, D_MODEL), lambda l: (0, 0)),
        scratch_shapes=[pltpu.VMEM((N, D_MODEL), jnp.float32)],
        compiler_params=pltpu.CompilerParams(dimension_semantics=("arbitrary",)),
    )(*inputs)
    return out.reshape(B, S, D_MODEL)


def decode(params, encoder_output, tgt_input, tgt_att_mask):
    B, S_src, _ = encoder_output.shape
    S_tgt = tgt_input.shape[1]
    Nq, Nk = B * S_tgt, B * S_src

    # output preprocessor ("text"): token embedding lookup (glue gather) + pos-emb
    emb = jnp.take(params["tok_emb"], tgt_input, axis=0)          # (B, S_tgt, D)
    x0 = (emb + params["out_pos"][None, :, :]).reshape(Nq, D_MODEL)
    mem = encoder_output.reshape(Nk, D_MODEL)

    smask = _flat_attn_mask(B, S_tgt, S_tgt, key_pad=tgt_att_mask, causal=True)
    # memory_key_padding_mask=None -> only batch block-diagonality needed
    cmask = _flat_attn_mask(B, S_tgt, S_src, key_pad=None, causal=False)
    d = params["dec"]

    stacked_keys = ("sWqkv", "sbqkv", "sWo", "sbo",
                    "cWq", "cbq", "cWkv", "cbkv", "cWo", "cbo",
                    "W1", "b1", "W2", "b2",
                    "g1", "be1", "g2", "be2", "g3", "be3")
    inputs = ([x0, mem, smask, cmask]
              + [d[k] for k in stacked_keys]
              + [params["dec_norm_g"], params["dec_norm_b"],
                 params["logits_W"], params["logits_b"]])
    in_specs = ([_full_spec(x0), _full_spec(mem), _full_spec(smask), _full_spec(cmask)]
                + [_stacked_spec(d[k]) for k in stacked_keys]
                + [_full_spec(params["dec_norm_g"]), _full_spec(params["dec_norm_b"]),
                   _full_spec(params["logits_W"]), _full_spec(params["logits_b"])])

    dec_out, logits, gen = pl.pallas_call(
        _decoder_stack_kernel,
        out_shape=(
            jax.ShapeDtypeStruct((Nq, D_MODEL), jnp.float32),
            jax.ShapeDtypeStruct((Nq, VOCAB), jnp.float32),
            jax.ShapeDtypeStruct((Nq, 1), jnp.int32),
        ),
        grid=(N_LAYERS,),
        in_specs=in_specs,
        out_specs=(
            pl.BlockSpec((Nq, D_MODEL), lambda l: (0, 0)),
            pl.BlockSpec((Nq, VOCAB), lambda l: (0, 0)),
            pl.BlockSpec((Nq, 1), lambda l: (0, 0)),
        ),
        scratch_shapes=[pltpu.VMEM((Nq, D_MODEL), jnp.float32)],
        compiler_params=pltpu.CompilerParams(dimension_semantics=("arbitrary",)),
    )(*inputs)

    return (dec_out.reshape(B, S_tgt, D_MODEL),
            logits.reshape(B, S_tgt, VOCAB),
            gen.reshape(B, S_tgt))


def modality_encoder_decoder_forward(params, src_input, tgt_input, src_att_mask, tgt_att_mask):
    encoder_output = encode(params, src_input, src_att_mask)
    decoder_output, logits, generated_output = decode(params, encoder_output, tgt_input, tgt_att_mask)
    return encoder_output, decoder_output, logits, generated_output


# ------------------------------- parameter construction -----------------------------
def _xavier(key, shape):
    fan_in, fan_out = shape[-2], shape[-1]
    a = math.sqrt(6.0 / (fan_in + fan_out))
    return jax.random.uniform(key, shape, jnp.float32, -a, a)


def make_params(key, s_src, s_tgt):
    ks = iter(jax.random.split(key, 32))
    L, D, H = N_LAYERS, D_MODEL, HIDDEN
    enc = {
        "Wqkv": _xavier(next(ks), (L, D, 3 * D)), "bqkv": jnp.zeros((L, 1, 3 * D), jnp.float32),
        "Wo": _xavier(next(ks), (L, D, D)),       "bo":   jnp.zeros((L, 1, D), jnp.float32),
        "W1": _xavier(next(ks), (L, D, H)),       "b1":   jnp.zeros((L, 1, H), jnp.float32),
        "W2": _xavier(next(ks), (L, H, D)),       "b2":   jnp.zeros((L, 1, D), jnp.float32),
        "g1": jnp.ones((L, 1, D), jnp.float32),   "be1":  jnp.zeros((L, 1, D), jnp.float32),
        "g2": jnp.ones((L, 1, D), jnp.float32),   "be2":  jnp.zeros((L, 1, D), jnp.float32),
    }
    dec = {
        "sWqkv": _xavier(next(ks), (L, D, 3 * D)), "sbqkv": jnp.zeros((L, 1, 3 * D), jnp.float32),
        "sWo": _xavier(next(ks), (L, D, D)),       "sbo":   jnp.zeros((L, 1, D), jnp.float32),
        "cWq": _xavier(next(ks), (L, D, D)),       "cbq":   jnp.zeros((L, 1, D), jnp.float32),
        "cWkv": _xavier(next(ks), (L, D, 2 * D)),  "cbkv":  jnp.zeros((L, 1, 2 * D), jnp.float32),
        "cWo": _xavier(next(ks), (L, D, D)),       "cbo":   jnp.zeros((L, 1, D), jnp.float32),
        "W1": _xavier(next(ks), (L, D, H)),        "b1":    jnp.zeros((L, 1, H), jnp.float32),
        "W2": _xavier(next(ks), (L, H, D)),        "b2":    jnp.zeros((L, 1, D), jnp.float32),
        "g1": jnp.ones((L, 1, D), jnp.float32),    "be1":   jnp.zeros((L, 1, D), jnp.float32),
        "g2": jnp.ones((L, 1, D), jnp.float32),    "be2":   jnp.zeros((L, 1, D), jnp.float32),
        "g3": jnp.ones((L, 1, D), jnp.float32),    "be3":   jnp.zeros((L, 1, D), jnp.float32),
    }
    return {
        # input preprocessor ("features" modality)
        "in_proj_W": _xavier(next(ks), (FEAT_IN, D)),
        "in_proj_b": jnp.zeros((D,), jnp.float32),
        "in_pos": _xavier(next(ks), (s_src, D)),
        # output preprocessor ("text" modality)
        "tok_emb": _xavier(next(ks), (VOCAB, D)),
        "out_pos": _xavier(next(ks), (s_tgt, D)),
        "logits_W": _xavier(next(ks), (D, VOCAB)),
        "logits_b": jnp.zeros((1, VOCAB), jnp.float32),
        "enc": enc,
        "dec": dec,
        "enc_norm_g": jnp.ones((1, D), jnp.float32),
        "enc_norm_b": jnp.zeros((1, D), jnp.float32),
        "dec_norm_g": jnp.ones((1, D), jnp.float32),
        "dec_norm_b": jnp.zeros((1, D), jnp.float32),
    }


# ---------------------------------------- main ---------------------------------------
if __name__ == "__main__":
    B, S_SRC, S_TGT = 2, 8, 8
    key = jax.random.PRNGKey(0)
    k_param, k_src, k_tgt = jax.random.split(key, 3)

    params = make_params(k_param, S_SRC, S_TGT)

    # encoder input: per-step feature vectors (the "features" encoder modality)
    src_input = jax.random.normal(k_src, (B, S_SRC, FEAT_IN), jnp.float32)
    # decoder input: token ids (the "text" decoder modality)
    tgt_input = jax.random.randint(k_tgt, (B, S_TGT), 0, VOCAB, jnp.int32)

    # key padding masks (True == padded / ignored, PyTorch convention)
    src_att_mask = jnp.zeros((B, S_SRC), jnp.bool_).at[1, -2:].set(True)
    tgt_att_mask = jnp.zeros((B, S_TGT), jnp.bool_).at[1, -2:].set(True)

    fwd = jax.jit(modality_encoder_decoder_forward)
    enc_out, dec_out, logits, generated = fwd(
        params, src_input, tgt_input, src_att_mask, tgt_att_mask
    )
    jax.block_until_ready((enc_out, dec_out, logits, generated))

    assert enc_out.shape == (B, S_SRC, D_MODEL)
    assert dec_out.shape == (B, S_TGT, D_MODEL)
    assert logits.shape == (B, S_TGT, VOCAB)
    assert generated.shape == (B, S_TGT)
    assert bool(jnp.all(jnp.isfinite(enc_out))) and bool(jnp.all(jnp.isfinite(logits)))
    # TODO(synk): the real ENCODER/DECODER_MODALITY_PROCESSORS are external to the module
    # source; they are modelled as deterministic linear/embedding preprocessors, and the
    # decoder token-embedding gather (jnp.take) is kept as host-side glue.
    print("KERNEL_OK")
</pallas_src>

<mosaic_0001>
module attributes {stable_mosaic.version = 11 : i64} {
  func.func @_decoder_stack_kernel(%arg0: i32, %arg1: memref<16x32xf32, #tpu.memory_space<vmem>>, %arg2: memref<16x32xf32, #tpu.memory_space<vmem>>, %arg3: memref<16x16xf32, #tpu.memory_space<vmem>>, %arg4: memref<16x16xf32, #tpu.memory_space<vmem>>, %arg5: memref<1x32x96xf32, #tpu.memory_space<vmem>>, %arg6: memref<1x1x96xf32, #tpu.memory_space<vmem>>, %arg7: memref<1x32x32xf32, #tpu.memory_space<vmem>>, %arg8: memref<1x1x32xf32, #tpu.memory_space<vmem>>, %arg9: memref<1x32x32xf32, #tpu.memory_space<vmem>>, %arg10: memref<1x1x32xf32, #tpu.memory_space<vmem>>, %arg11: memref<1x32x64xf32, #tpu.memory_space<vmem>>, %arg12: memref<1x1x64xf32, #tpu.memory_space<vmem>>, %arg13: memref<1x32x32xf32, #tpu.memory_space<vmem>>, %arg14: memref<1x1x32xf32, #tpu.memory_space<vmem>>, %arg15: memref<1x32x64xf32, #tpu.memory_space<vmem>>, %arg16: memref<1x1x64xf32, #tpu.memory_space<vmem>>, %arg17: memref<1x64x32xf32, #tpu.memory_space<vmem>>, %arg18: memref<1x1x32xf32, #tpu.memory_space<vmem>>, %arg19: memref<1x1x32xf32, #tpu.memory_space<vmem>>, %arg20: memref<1x1x32xf32, #tpu.memory_space<vmem>>, %arg21: memref<1x1x32xf32, #tpu.memory_space<vmem>>, %arg22: memref<1x1x32xf32, #tpu.memory_space<vmem>>, %arg23: memref<1x1x32xf32, #tpu.memory_space<vmem>>, %arg24: memref<1x1x32xf32, #tpu.memory_space<vmem>>, %arg25: memref<1x32xf32, #tpu.memory_space<vmem>>, %arg26: memref<1x32xf32, #tpu.memory_space<vmem>>, %arg27: memref<32x16xf32, #tpu.memory_space<vmem>>, %arg28: memref<1x16xf32, #tpu.memory_space<vmem>>, %arg29: memref<16x32xf32, #tpu.memory_space<vmem>>, %arg30: memref<16x16xf32, #tpu.memory_space<vmem>>, %arg31: memref<16x1xi32, #tpu.memory_space<vmem>>, %arg32: memref<16x32xf32, #tpu.memory_space<vmem>>) attributes {dimension_semantics = [#tpu.dimension_semantics<arbitrary>], iteration_bounds = array<i64: 2>, scalar_prefetch = 0 : i64, scratch_operands = 1 : i64, tpu.core_type = #tpu.core_type<tc>, window_params = [{pipeline_mode = #tpu.pipeline_mode<synchronous>, transform_indices = @transform_0, window_bounds = array<i64: 16, 32>}, {pipeline_mode = #tpu.pipeline_mode<synchronous>, transform_indices = @transform_1, window_bounds = array<i64: 16, 32>}, {pipeline_mode = #tpu.pipeline_mode<synchronous>, transform_indices = @transform_2, window_bounds = array<i64: 16, 16>}, {pipeline_mode = #tpu.pipeline_mode<synchronous>, transform_indices = @transform_3, window_bounds = array<i64: 16, 16>}, {transform_indices = @transform_4, window_bounds = array<i64: 1, 32, 96>}, {transform_indices = @transform_5, window_bounds = array<i64: 1, 1, 96>}, {transform_indices = @transform_6, window_bounds = array<i64: 1, 32, 32>}, {transform_indices = @transform_7, window_bounds = array<i64: 1, 1, 32>}, {transform_indices = @transform_8, window_bounds = array<i64: 1, 32, 32>}, {transform_indices = @transform_9, window_bounds = array<i64: 1, 1, 32>}, {transform_indices = @transform_10, window_bounds = array<i64: 1, 32, 64>}, {transform_indices = @transform_11, window_bounds = array<i64: 1, 1, 64>}, {transform_indices = @transform_12, window_bounds = array<i64: 1, 32, 32>}, {transform_indices = @transform_13, window_bounds = array<i64: 1, 1, 32>}, {transform_indices = @transform_14, window_bounds = array<i64: 1, 32, 64>}, {transform_indices = @transform_15, window_bounds = array<i64: 1, 1, 64>}, {transform_indices = @transform_16, window_bounds = array<i64: 1, 64, 32>}, {transform_indices = @transform_17, window_bounds = array<i64: 1, 1, 32>}, {transform_indices = @transform_18, window_bounds = array<i64: 1, 1, 32>}, {transform_indices = @transform_19, window_bounds = array<i64: 1, 1, 32>}, {transform_indices = @transform_20, window_bounds = array<i64: 1, 1, 32>}, {transform_indices = @transform_21, window_bounds = array<i64: 1, 1, 32>}, {transform_indices = @transform_22, window_bounds = array<i64: 1, 1, 32>}, {transform_indices = @transform_23, window_bounds = array<i64: 1, 1, 32>}, {pipeline_mode = #tpu.pipeline_mode<synchronous>, transform_indices = @transform_24, window_bounds = array<i64: 1, 32>}, {pipeline_mode = #tpu.pipeline_mode<synchronous>, transform_indices = @transform_25, window_bounds = array<i64: 1, 32>}, {pipeline_mode = #tpu.pipeline_mode<synchronous>, transform_indices = @transform_26, window_bounds = array<i64: 32, 16>}, {pipeline_mode = #tpu.pipeline_mode<synchronous>, transform_indices = @transform_27, window_bounds = array<i64: 1, 16>}, {pipeline_mode = #tpu.pipeline_mode<synchronous>, transform_indices = @transform_28, window_bounds = array<i64: 16, 32>}, {pipeline_mode = #tpu.pipeline_mode<synchronous>, transform_indices = @transform_29, window_bounds = array<i64: 16, 16>}, {pipeline_mode = #tpu.pipeline_mode<synchronous>, transform_indices = @transform_30, window_bounds = array<i64: 16, 1>}]} {
    %c0_i32 = arith.constant 0 : i32
    %0 = arith.cmpi eq, %arg0, %c0_i32 : i32
    %1 = arith.extui %0 : i1 to i32
    %c0_i32_0 = arith.constant 0 : i32
    %2 = arith.cmpi ne, %1, %c0_i32_0 : i32
    scf.if %2 {
      %c0_141 = arith.constant 0 : index
      %c0_142 = arith.constant 0 : index
      %310 = vector.load %arg1[%c0_141, %c0_142] : memref<16x32xf32, #tpu.memory_space<vmem>>, vector<16x32xf32>
      %c0_143 = arith.constant 0 : index
      %c0_144 = arith.constant 0 : index
      %311 = vector.load %arg32[%c0_143, %c0_144] : memref<16x32xf32, #tpu.memory_space<vmem>>, vector<16x32xf32>
      tpu.vector_store %arg32[%c0_143, %c0_144], %310 {strides = array<i32>} : memref<16x32xf32, #tpu.memory_space<vmem>>, vector<16x32xf32>,
    } else {
    }
    %c0 = arith.constant 0 : index
    %c0_1 = arith.constant 0 : index
    %3 = vector.load %arg32[%c0, %c0_1] : memref<16x32xf32, #tpu.memory_space<vmem>>, vector<16x32xf32>
    %c0_2 = arith.constant 0 : index
    %c0_3 = arith.constant 0 : index
    %4 = vector.load %arg2[%c0_2, %c0_3] : memref<16x32xf32, #tpu.memory_space<vmem>>, vector<16x32xf32>
    %c0_4 = arith.constant 0 : index
    %c0_5 = arith.constant 0 : index
    %c0_6 = arith.constant 0 : index
    %5 = vector.load %arg5[%c0_4, %c0_5, %c0_6] : memref<1x32x96xf32, #tpu.memory_space<vmem>>, vector<1x32x96xf32>
    %6 = vector.shape_cast %5 : vector<1x32x96xf32> to vector<32x96xf32>
    %c0_7 = arith.constant 0 : index
    %c0_8 = arith.constant 0 : index
    %c0_9 = arith.constant 0 : index
    %7 = vector.load %arg6[%c0_7, %c0_8, %c0_9] : memref<1x1x96xf32, #tpu.memory_space<vmem>>, vector<1x1x96xf32>
    %8 = vector.shape_cast %7 : vector<1x1x96xf32> to vector<1x96xf32>
    %c0_10 = arith.constant 0 : index
    %c0_11 = arith.constant 0 : index
    %c0_12 = arith.constant 0 : index
    %9 = vector.load %arg7[%c0_10, %c0_11, %c0_12] : memref<1x32x32xf32, #tpu.memory_space<vmem>>, vector<1x32x32xf32>
    %10 = vector.shape_cast %9 : vector<1x32x32xf32> to vector<32x32xf32>
    %c0_13 = arith.constant 0 : index
    %c0_14 = arith.constant 0 : index
    %c0_15 = arith.constant 0 : index
    %11 = vector.load %arg8[%c0_13, %c0_14, %c0_15] : memref<1x1x32xf32, #tpu.memory_space<vmem>>, vector<1x1x32xf32>
    %12 = vector.shape_cast %11 : vector<1x1x32xf32> to vector<1x32xf32>
    %c0_16 = arith.constant 0 : index
    %c0_17 = arith.constant 0 : index
    %13 = vector.load %arg3[%c0_16, %c0_17] : memref<16x16xf32, #tpu.memory_space<vmem>>, vector<16x16xf32>
    %cst = arith.constant dense<0.000000e+00> : vector<16x96xf32>
    %14 = tpu.matmul %3, %6, %cst {dimension_numbers = #tpu.dot_dimension_numbers<[1], [0], [0], [1], [0, 0, 1, 1], [], []>} : vector<16x32xf32>, vector<32x96xf32>, vector<16x96xf32> -> vector<16x96xf32>
    %15 = vector.broadcast %8 : vector<1x96xf32> to vector<16x96xf32>
    %16 = arith.addf %14, %15 : vector<16x96xf32>
    %17 = vector.extract_strided_slice %16 {offsets = [0, 0], sizes = [16, 32], strides = [1, 1]} : vector<16x96xf32> to vector<16x32xf32>
    %18 = vector.extract_strided_slice %16 {offsets = [0, 32], sizes = [16, 32], strides = [1, 1]} : vector<16x96xf32> to vector<16x32xf32>
    %19 = vector.extract_strided_slice %16 {offsets = [0, 64], sizes = [16, 32], strides = [1, 1]} : vector<16x96xf32> to vector<16x32xf32>
    %cst_18 = arith.constant 0.000000e+00 : f32
    %20 = vector.broadcast %cst_18 : f32 to vector<16x32xf32>
    %21 = vector.extract_strided_slice %17 {offsets = [0, 0], sizes = [16, 8], strides = [1, 1]} : vector<16x32xf32> to vector<16x8xf32>
    %22 = vector.extract_strided_slice %18 {offsets = [0, 0], sizes = [16, 8], strides = [1, 1]} : vector<16x32xf32> to vector<16x8xf32>
    %23 = vector.extract_strided_slice %19 {offsets = [0, 0], sizes = [16, 8], strides = [1, 1]} : vector<16x32xf32> to vector<16x8xf32>
    %cst_19 = arith.constant dense<0.000000e+00> : vector<16x16xf32>
    %24 = tpu.matmul %21, %22, %cst_19 {dimension_numbers = #tpu.dot_dimension_numbers<[1], [1], [0], [0], [0, 0, 1, 0], [], []>} : vector<16x8xf32>, vector<16x8xf32>, vector<16x16xf32> -> vector<16x16xf32>
    %cst_20 = arith.constant 0.353553385 : f32
    %25 = vector.broadcast %cst_20 : f32 to vector<16x16xf32>
    %26 = arith.mulf %24, %25 : vector<16x16xf32>
    %27 = arith.addf %26, %13 : vector<16x16xf32>
    %cst_21 = arith.constant dense<0xFF800000> : vector<16xf32>
    %28 = vector.multi_reduction <maximumf>, %27, %cst_21 [1] : vector<16x16xf32> to vector<16xf32>
    %29 = vector.shape_cast %28 : vector<16xf32> to vector<16x1xf32>
    %30 = vector.broadcast %29 : vector<16x1xf32> to vector<16x16xf32>
    %31 = arith.subf %27, %30 : vector<16x16xf32>
    %32 = math.exp %31 : vector<16x16xf32>
    %cst_22 = arith.constant dense<0.000000e+00> : vector<16xf32>
    %33 = vector.multi_reduction <add>, %32, %cst_22 [1] : vector<16x16xf32> to vector<16xf32>
    %34 = vector.shape_cast %33 : vector<16xf32> to vector<16x1xf32>
    %35 = tpu.reciprocal %34 {approx = true} : vector<16x1xf32> -> vector<16x1xf32>
    %36 = vector.broadcast %35 : vector<16x1xf32> to vector<16x16xf32>
    %37 = arith.mulf %32, %36 : vector<16x16xf32>
    %cst_23 = arith.constant dense<0.000000e+00> : vector<16x8xf32>
    %38 = tpu.matmul %37, %23, %cst_23 {dimension_numbers = #tpu.dot_dimension_numbers<[1], [0], [0], [1], [0, 0, 1, 1], [], []>} : vector<16x16xf32>, vector<16x8xf32>, vector<16x8xf32> -> vector<16x8xf32>
    %39 = vector.extract_strided_slice %10 {offsets = [0, 0], sizes = [8, 32], strides = [1, 1]} : vector<32x32xf32> to vector<8x32xf32>
    %cst_24 = arith.constant dense<0.000000e+00> : vector<16x32xf32>
    %40 = tpu.matmul %38, %39, %cst_24 {dimension_numbers = #tpu.dot_dimension_numbers<[1], [0], [0], [1], [0, 0, 1, 1], [], []>} : vector<16x8xf32>, vector<8x32xf32>, vector<16x32xf32> -> vector<16x32xf32>
    %41 = arith.addf %20, %40 : vector<16x32xf32>
    %42 = vector.extract_strided_slice %17 {offsets = [0, 8], sizes = [16, 8], strides = [1, 1]} : vector<16x32xf32> to vector<16x8xf32>
    %43 = vector.extract_strided_slice %18 {offsets = [0, 8], sizes = [16, 8], strides = [1, 1]} : vector<16x32xf32> to vector<16x8xf32>
    %44 = vector.extract_strided_slice %19 {offsets = [0, 8], sizes = [16, 8], strides = [1, 1]} : vector<16x32xf32> to vector<16x8xf32>
    %cst_25 = arith.constant dense<0.000000e+00> : vector<16x16xf32>
    %45 = tpu.matmul %42, %43, %cst_25 {dimension_numbers = #tpu.dot_dimension_numbers<[1], [1], [0], [0], [0, 0, 1, 0], [], []>} : vector<16x8xf32>, vector<16x8xf32>, vector<16x16xf32> -> vector<16x16xf32>
    %cst_26 = arith.constant 0.353553385 : f32
    %46 = vector.broadcast %cst_26 : f32 to vector<16x16xf32>
    %47 = arith.mulf %45, %46 : vector<16x16xf32>
    %48 = arith.addf %47, %13 : vector<16x16xf32>
    %cst_27 = arith.constant dense<0xFF800000> : vector<16xf32>
    %49 = vector.multi_reduction <maximumf>, %48, %cst_27 [1] : vector<16x16xf32> to vector<16xf32>
    %50 = vector.shape_cast %49 : vector<16xf32> to vector<16x1xf32>
    %51 = vector.broadcast %50 : vector<16x1xf32> to vector<16x16xf32>
    %52 = arith.subf %48, %51 : vector<16x16xf32>
    %53 = math.exp %52 : vector<16x16xf32>
    %cst_28 = arith.constant dense<0.000000e+00> : vector<16xf32>
    %54 = vector.multi_reduction <add>, %53, %cst_28 [1] : vector<16x16xf32> to vector<16xf32>
    %55 = vector.shape_cast %54 : vector<16xf32> to vector<16x1xf32>
    %56 = tpu.reciprocal %55 {approx = true} : vector<16x1xf32> -> vector<16x1xf32>
    %57 = vector.broadcast %56 : vector<16x1xf32> to vector<16x16xf32>
    %58 = arith.mulf %53, %57 : vector<16x16xf32>
    %cst_29 = arith.constant dense<0.000000e+00> : vector<16x8xf32>
    %59 = tpu.matmul %58, %44, %cst_29 {dimension_numbers = #tpu.dot_dimension_numbers<[1], [0], [0], [1], [0, 0, 1, 1], [], []>} : vector<16x16xf32>, vector<16x8xf32>, vector<16x8xf32> -> vector<16x8xf32>
    %60 = vector.extract_strided_slice %10 {offsets = [8, 0], sizes = [8, 32], strides = [1, 1]} : vector<32x32xf32> to vector<8x32xf32>
    %cst_30 = arith.constant dense<0.000000e+00> : vector<16x32xf32>
    %61 = tpu.matmul %59, %60, %cst_30 {dimension_numbers = #tpu.dot_dimension_numbers<[1], [0], [0], [1], [0, 0, 1, 1], [], []>} : vector<16x8xf32>, vector<8x32xf32>, vector<16x32xf32> -> vector<16x32xf32>
    %62 = arith.addf %41, %61 : vector<16x32xf32>
    %63 = vector.extract_strided_slice %17 {offsets = [0, 16], sizes = [16, 8], strides = [1, 1]} : vector<16x32xf32> to vector<16x8xf32>
    %64 = vector.extract_strided_slice %18 {offsets = [0, 16], sizes = [16, 8], strides = [1, 1]} : vector<16x32xf32> to vector<16x8xf32>
    %65 = vector.extract_strided_slice %19 {offsets = [0, 16], sizes = [16, 8], strides = [1, 1]} : vector<16x32xf32> to vector<16x8xf32>
    %cst_31 = arith.constant dense<0.000000e+00> : vector<16x16xf32>
    %66 = tpu.matmul %63, %64, %cst_31 {dimension_numbers = #tpu.dot_dimension_numbers<[1], [1], [0], [0], [0, 0, 1, 0], [], []>} : vector<16x8xf32>, vector<16x8xf32>, vector<16x16xf32> -> vector<16x16xf32>
    %cst_32 = arith.constant 0.353553385 : f32
    %67 = vector.broadcast %cst_32 : f32 to vector<16x16xf32>
    %68 = arith.mulf %66, %67 : vector<16x16xf32>
    %69 = arith.addf %68, %13 : vector<16x16xf32>
    %cst_33 = arith.constant dense<0xFF800000> : vector<16xf32>
    %70 = vector.multi_reduction <maximumf>, %69, %cst_33 [1] : vector<16x16xf32> to vector<16xf32>
    %71 = vector.shape_cast %70 : vector<16xf32> to vector<16x1xf32>
    %72 = vector.broadcast %71 : vector<16x1xf32> to vector<16x16xf32>
    %73 = arith.subf %69, %72 : vector<16x16xf32>
    %74 = math.exp %73 : vector<16x16xf32>
    %cst_34 = arith.constant dense<0.000000e+00> : vector<16xf32>
    %75 = vector.multi_reduction <add>, %74, %cst_34 [1] : vector<16x16xf32> to vector<16xf32>
    %76 = vector.shape_cast %75 : vector<16xf32> to vector<16x1xf32>
    %77 = tpu.reciprocal %76 {approx = true} : vector<16x1xf32> -> vector<16x1xf32>
    %78 = vector.broadcast %77 : vector<16x1xf32> to vector<16x16xf32>
    %79 = arith.mulf %74, %78 : vector<16x16xf32>
    %cst_35 = arith.constant dense<0.000000e+00> : vector<16x8xf32>
    %80 = tpu.matmul %79, %65, %cst_35 {dimension_numbers = #tpu.dot_dimension_numbers<[1], [0], [0], [1], [0, 0, 1, 1], [], []>} : vector<16x16xf32>, vector<16x8xf32>, vector<16x8xf32> -> vector<16x8xf32>
    %81 = vector.extract_strided_slice %10 {offsets = [16, 0], sizes = [8, 32], strides = [1, 1]} : vector<32x32xf32> to vector<8x32xf32>
    %cst_36 = arith.constant dense<0.000000e+00> : vector<16x32xf32>
    %82 = tpu.matmul %80, %81, %cst_36 {dimension_numbers = #tpu.dot_dimension_numbers<[1], [0], [0], [1], [0, 0, 1, 1], [], []>} : vector<16x8xf32>, vector<8x32xf32>, vector<16x32xf32> -> vector<16x32xf32>
    %83 = arith.addf %62, %82 : vector<16x32xf32>
    %84 = vector.extract_strided_slice %17 {offsets = [0, 24], sizes = [16, 8], strides = [1, 1]} : vector<16x32xf32> to vector<16x8xf32>
    %85 = vector.extract_strided_slice %18 {offsets = [0, 24], sizes = [16, 8], strides = [1, 1]} : vector<16x32xf32> to vector<16x8xf32>
    %86 = vector.extract_strided_slice %19 {offsets = [0, 24], sizes = [16, 8], strides = [1, 1]} : vector<16x32xf32> to vector<16x8xf32>
    %cst_37 = arith.constant dense<0.000000e+00> : vector<16x16xf32>
    %87 = tpu.matmul %84, %85, %cst_37 {dimension_numbers = #tpu.dot_dimension_numbers<[1], [1], [0], [0], [0, 0, 1, 0], [], []>} : vector<16x8xf32>, vector<16x8xf32>, vector<16x16xf32> -> vector<16x16xf32>
    %cst_38 = arith.constant 0.353553385 : f32
    %88 = vector.broadcast %cst_38 : f32 to vector<16x16xf32>
    %89 = arith.mulf %87, %88 : vector<16x16xf32>
    %90 = arith.addf %89, %13 : vector<16x16xf32>
    %cst_39 = arith.constant dense<0xFF800000> : vector<16xf32>
    %91 = vector.multi_reduction <maximumf>, %90, %cst_39 [1] : vector<16x16xf32> to vector<16xf32>
    %92 = vector.shape_cast %91 : vector<16xf32> to vector<16x1xf32>
    %93 = vector.broadcast %92 : vector<16x1xf32> to vector<16x16xf32>
    %94 = arith.subf %90, %93 : vector<16x16xf32>
    %95 = math.exp %94 : vector<16x16xf32>
    %cst_40 = arith.constant dense<0.000000e+00> : vector<16xf32>
    %96 = vector.multi_reduction <add>, %95, %cst_40 [1] : vector<16x16xf32> to vector<16xf32>
    %97 = vector.shape_cast %96 : vector<16xf32> to vector<16x1xf32>
    %98 = tpu.reciprocal %97 {approx = true} : vector<16x1xf32> -> vector<16x1xf32>
    %99 = vector.broadcast %98 : vector<16x1xf32> to vector<16x16xf32>
    %100 = arith.mulf %95, %99 : vector<16x16xf32>
    %cst_41 = arith.constant dense<0.000000e+00> : vector<16x8xf32>
    %101 = tpu.matmul %100, %86, %cst_41 {dimension_numbers = #tpu.dot_dimension_numbers<[1], [0], [0], [1], [0, 0, 1, 1], [], []>} : vector<16x16xf32>, vector<16x8xf32>, vector<16x8xf32> -> vector<16x8xf32>
    %102 = vector.extract_strided_slice %10 {offsets = [24, 0], sizes = [8, 32], strides = [1, 1]} : vector<32x32xf32> to vector<8x32xf32>
    %cst_42 = arith.constant dense<0.000000e+00> : vector<16x32xf32>
    %103 = tpu.matmul %101, %102, %cst_42 {dimension_numbers = #tpu.dot_dimension_numbers<[1], [0], [0], [1], [0, 0, 1, 1], [], []>} : vector<16x8xf32>, vector<8x32xf32>, vector<16x32xf32> -> vector<16x32xf32>
    %104 = arith.addf %83, %103 : vector<16x32xf32>
    %105 = vector.broadcast %12 : vector<1x32xf32> to vector<16x32xf32>
    %106 = arith.addf %104, %105 : vector<16x32xf32>
    %107 = arith.addf %3, %106 : vector<16x32xf32>
    %c0_43 = arith.constant 0 : index
    %c0_44 = arith.constant 0 : index
    %c0_45 = arith.constant 0 : index
    %108 = vector.load %arg19[%c0_43, %c0_44, %c0_45] : memref<1x1x32xf32, #tpu.memory_space<vmem>>, vector<1x1x32xf32>
    %109 = vector.shape_cast %108 : vector<1x1x32xf32> to vector<1x32xf32>
    %c0_46 = arith.constant 0 : index
    %c0_47 = arith.constant 0 : index
    %c0_48 = arith.constant 0 : index
    %110 = vector.load %arg20[%c0_46, %c0_47, %c0_48] : memref<1x1x32xf32, #tpu.memory_space<vmem>>, vector<1x1x32xf32>
    %111 = vector.shape_cast %110 : vector<1x1x32xf32> to vector<1x32xf32>
    %cst_49 = arith.constant dense<0.000000e+00> : vector<16xf32>
    %112 = vector.multi_reduction <add>, %107, %cst_49 [1] : vector<16x32xf32> to vector<16xf32>
    %113 = vector.shape_cast %112 : vector<16xf32> to vector<16x1xf32>
    %cst_50 = arith.constant 3.200000e+01 : f32
    %114 = vector.broadcast %cst_50 : f32 to vector<16x1xf32>
    %115 = arith.divf %113, %114 : vector<16x1xf32>
    %116 = vector.broadcast %115 : vector<16x1xf32> to vector<16x32xf32>
    %117 = arith.subf %107, %116 : vector<16x32xf32>
    %118 = arith.mulf %117, %117 : vector<16x32xf32>
    %cst_51 = arith.constant dense<0.000000e+00> : vector<16xf32>
    %119 = vector.multi_reduction <add>, %118, %cst_51 [1] : vector<16x32xf32> to vector<16xf32>
    %120 = vector.shape_cast %119 : vector<16xf32> to vector<16x1xf32>
    %cst_52 = arith.constant 3.200000e+01 : f32
    %121 = vector.broadcast %cst_52 : f32 to vector<16x1xf32>
    %122 = arith.divf %120, %121 : vector<16x1xf32>
    %cst_53 = arith.constant 9.99999974E-6 : f32
    %123 = vector.broadcast %cst_53 : f32 to vector<16x1xf32>
    %124 = arith.addf %122, %123 : vector<16x1xf32>
    %125 = math.rsqrt %124 : vector<16x1xf32>
    %126 = vector.broadcast %125 : vector<16x1xf32> to vector<16x32xf32>
    %127 = arith.mulf %117, %126 : vector<16x32xf32>
    %128 = vector.broadcast %109 : vector<1x32xf32> to vector<16x32xf32>
    %129 = arith.mulf %127, %128 : vector<16x32xf32>
    %130 = vector.broadcast %111 : vector<1x32xf32> to vector<16x32xf32>
    %131 = arith.addf %129, %130 : vector<16x32xf32>
    %c0_54 = arith.constant 0 : index
    %c0_55 = arith.constant 0 : index
    %c0_56 = arith.constant 0 : index
    %132 = vector.load %arg9[%c0_54, %c0_55, %c0_56] : memref<1x32x32xf32, #tpu.memory_space<vmem>>, vector<1x32x32xf32>
    %133 = vector.shape_cast %132 : vector<1x32x32xf32> to vector<32x32xf32>
    %c0_57 = arith.constant 0 : index
    %c0_58 = arith.constant 0 : index
    %c0_59 = arith.constant 0 : index
    %134 = vector.load %arg10[%c0_57, %c0_58, %c0_59] : memref<1x1x32xf32, #tpu.memory_space<vmem>>, vector<1x1x32xf32>
    %135 = vector.shape_cast %134 : vector<1x1x32xf32> to vector<1x32xf32>
    %c0_60 = arith.constant 0 : index
    %c0_61 = arith.constant 0 : index
    %c0_62 = arith.constant 0 : index
    %136 = vector.load %arg11[%c0_60, %c0_61, %c0_62] : memref<1x32x64xf32, #tpu.memory_space<vmem>>, vector<1x32x64xf32>
    %137 = vector.shape_cast %136 : vector<1x32x64xf32> to vector<32x64xf32>
    %c0_63 = arith.constant 0 : index
    %c0_64 = arith.constant 0 : index
    %c0_65 = arith.constant 0 : index
    %138 = vector.load %arg12[%c0_63, %c0_64, %c0_65] : memref<1x1x64xf32, #tpu.memory_space<vmem>>, vector<1x1x64xf32>
    %139 = vector.shape_cast %138 : vector<1x1x64xf32> to vector<1x64xf32>
    %c0_66 = arith.constant 0 : index
    %c0_67 = arith.constant 0 : index
    %c0_68 = arith.constant 0 : index
    %140 = vector.load %arg13[%c0_66, %c0_67, %c0_68] : memref<1x32x32xf32, #tpu.memory_space<vmem>>, vector<1x32x32xf32>
    %141 = vector.shape_cast %140 : vector<1x32x32xf32> to vector<32x32xf32>
    %c0_69 = arith.constant 0 : index
    %c0_70 = arith.constant 0 : index
    %c0_71 = arith.constant 0 : index
    %142 = vector.load %arg14[%c0_69, %c0_70, %c0_71] : memref<1x1x32xf32, #tpu.memory_space<vmem>>, vector<1x1x32xf32>
    %143 = vector.shape_cast %142 : vector<1x1x32xf32> to vector<1x32xf32>
    %c0_72 = arith.constant 0 : index
    %c0_73 = arith.constant 0 : index
    %144 = vector.load %arg4[%c0_72, %c0_73] : memref<16x16xf32, #tpu.memory_space<vmem>>, vector<16x16xf32>
    %cst_74 = arith.constant dense<0.000000e+00> : vector<16x32xf32>
    %145 = tpu.matmul %131, %133, %cst_74 {dimension_numbers = #tpu.dot_dimension_numbers<[1], [0], [0], [1], [0, 0, 1, 1], [], []>} : vector<16x32xf32>, vector<32x32xf32>, vector<16x32xf32> -> vector<16x32xf32>
    %146 = vector.broadcast %135 : vector<1x32xf32> to vector<16x32xf32>
    %147 = arith.addf %145, %146 : vector<16x32xf32>
    %cst_75 = arith.constant dense<0.000000e+00> : vector<16x64xf32>
    %148 = tpu.matmul %4, %137, %cst_75 {dimension_numbers = #tpu.dot_dimension_numbers<[1], [0], [0], [1], [0, 0, 1, 1], [], []>} : vector<16x32xf32>, vector<32x64xf32>, vector<16x64xf32> -> vector<16x64xf32>
    %149 = vector.broadcast %139 : vector<1x64xf32> to vector<16x64xf32>
    %150 = arith.addf %148, %149 : vector<16x64xf32>
    %151 = vector.extract_strided_slice %150 {offsets = [0, 0], sizes = [16, 32], strides = [1, 1]} : vector<16x64xf32> to vector<16x32xf32>
    %152 = vector.extract_strided_slice %150 {offsets = [0, 32], sizes = [16, 32], strides = [1, 1]} : vector<16x64xf32> to vector<16x32xf32>
    %cst_76 = arith.constant 0.000000e+00 : f32
    %153 = vector.broadcast %cst_76 : f32 to vector<16x32xf32>
    %154 = vector.extract_strided_slice %147 {offsets = [0, 0], sizes = [16, 8], strides = [1, 1]} : vector<16x32xf32> to vector<16x8xf32>
    %155 = vector.extract_strided_slice %151 {offsets = [0, 0], sizes = [16, 8], strides = [1, 1]} : vector<16x32xf32> to vector<16x8xf32>
    %156 = vector.extract_strided_slice %152 {offsets = [0, 0], sizes = [16, 8], strides = [1, 1]} : vector<16x32xf32> to vector<16x8xf32>
    %cst_77 = arith.constant dense<0.000000e+00> : vector<16x16xf32>
    %157 = tpu.matmul %154, %155, %cst_77 {dimension_numbers = #tpu.dot_dimension_numbers<[1], [1], [0], [0], [0, 0, 1, 0], [], []>} : vector<16x8xf32>, vector<16x8xf32>, vector<16x16xf32> -> vector<16x16xf32>
    %cst_78 = arith.constant 0.353553385 : f32
    %158 = vector.broadcast %cst_78 : f32 to vector<16x16xf32>
    %159 = arith.mulf %157, %158 : vector<16x16xf32>
    %160 = arith.addf %159, %144 : vector<16x16xf32>
    %cst_79 = arith.constant dense<0xFF800000> : vector<16xf32>
    %161 = vector.multi_reduction <maximumf>, %160, %cst_79 [1] : vector<16x16xf32> to vector<16xf32>
    %162 = vector.shape_cast %161 : vector<16xf32> to vector<16x1xf32>
    %163 = vector.broadcast %162 : vector<16x1xf32> to vector<16x16xf32>
    %164 = arith.subf %160, %163 : vector<16x16xf32>
    %165 = math.exp %164 : vector<16x16xf32>
    %cst_80 = arith.constant dense<0.000000e+00> : vector<16xf32>
    %166 = vector.multi_reduction <add>, %165, %cst_80 [1] : vector<16x16xf32> to vector<16xf32>
    %167 = vector.shape_cast %166 : vector<16xf32> to vector<16x1xf32>
    %168 = tpu.reciprocal %167 {approx = true} : vector<16x1xf32> -> vector<16x1xf32>
    %169 = vector.broadcast %168 : vector<16x1xf32> to vector<16x16xf32>
    %170 = arith.mulf %165, %169 : vector<16x16xf32>
    %cst_81 = arith.constant dense<0.000000e+00> : vector<16x8xf32>
    %171 = tpu.matmul %170, %156, %cst_81 {dimension_numbers = #tpu.dot_dimension_numbers<[1], [0], [0], [1], [0, 0, 1, 1], [], []>} : vector<16x16xf32>, vector<16x8xf32>, vector<16x8xf32> -> vector<16x8xf32>
    %172 = vector.extract_strided_slice %141 {offsets = [0, 0], sizes = [8, 32], strides = [1, 1]} : vector<32x32xf32> to vector<8x32xf32>
    %cst_82 = arith.constant dense<0.000000e+00> : vector<16x32xf32>
    %173 = tpu.matmul %171, %172, %cst_82 {dimension_numbers = #tpu.dot_dimension_numbers<[1], [0], [0], [1], [0, 0, 1, 1], [], []>} : vector<16x8xf32>, vector<8x32xf32>, vector<16x32xf32> -> vector<16x32xf32>
    %174 = arith.addf %153, %173 : vector<16x32xf32>
    %175 = vector.extract_strided_slice %147 {offsets = [0, 8], sizes = [16, 8], strides = [1, 1]} : vector<16x32xf32> to vector<16x8xf32>
    %176 = vector.extract_strided_slice %151 {offsets = [0, 8], sizes = [16, 8], strides = [1, 1]} : vector<16x32xf32> to vector<16x8xf32>
    %177 = vector.extract_strided_slice %152 {offsets = [0, 8], sizes = [16, 8], strides = [1, 1]} : vector<16x32xf32> to vector<16x8xf32>
    %cst_83 = arith.constant dense<0.000000e+00> : vector<16x16xf32>
    %178 = tpu.matmul %175, %176, %cst_83 {dimension_numbers = #tpu.dot_dimension_numbers<[1], [1], [0], [0], [0, 0, 1, 0], [], []>} : vector<16x8xf32>, vector<16x8xf32>, vector<16x16xf32> -> vector<16x16xf32>
    %cst_84 = arith.constant 0.353553385 : f32
    %179 = vector.broadcast %cst_84 : f32 to vector<16x16xf32>
    %180 = arith.mulf %178, %179 : vector<16x16xf32>
    %181 = arith.addf %180, %144 : vector<16x16xf32>
    %cst_85 = arith.constant dense<0xFF800000> : vector<16xf32>
    %182 = vector.multi_reduction <maximumf>, %181, %cst_85 [1] : vector<16x16xf32> to vector<16xf32>
    %183 = vector.shape_cast %182 : vector<16xf32> to vector<16x1xf32>
    %184 = vector.broadcast %183 : vector<16x1xf32> to vector<16x16xf32>
    %185 = arith.subf %181, %184 : vector<16x16xf32>
    %186 = math.exp %185 : vector<16x16xf32>
    %cst_86 = arith.constant dense<0.000000e+00> : vector<16xf32>
    %187 = vector.multi_reduction <add>, %186, %cst_86 [1] : vector<16x16xf32> to vector<16xf32>
    %188 = vector.shape_cast %187 : vector<16xf32> to vector<16x1xf32>
    %189 = tpu.reciprocal %188 {approx = true} : vector<16x1xf32> -> vector<16x1xf32>
    %190 = vector.broadcast %189 : vector<16x1xf32> to vector<16x16xf32>
    %191 = arith.mulf %186, %190 : vector<16x16xf32>
    %cst_87 = arith.constant dense<0.000000e+00> : vector<16x8xf32>
    %192 = tpu.matmul %191, %177, %cst_87 {dimension_numbers = #tpu.dot_dimension_numbers<[1], [0], [0], [1], [0, 0, 1, 1], [], []>} : vector<16x16xf32>, vector<16x8xf32>, vector<16x8xf32> -> vector<16x8xf32>
    %193 = vector.extract_strided_slice %141 {offsets = [8, 0], sizes = [8, 32], strides = [1, 1]} : vector<32x32xf32> to vector<8x32xf32>
    %cst_88 = arith.constant dense<0.000000e+00> : vector<16x32xf32>
    %194 = tpu.matmul %192, %193, %cst_88 {dimension_numbers = #tpu.dot_dimension_numbers<[1], [0], [0], [1], [0, 0, 1, 1], [], []>} : vector<16x8xf32>, vector<8x32xf32>, vector<16x32xf32> -> vector<16x32xf32>
    %195 = arith.addf %174, %194 : vector<16x32xf32>
    %196 = vector.extract_strided_slice %147 {offsets = [0, 16], sizes = [16, 8], strides = [1, 1]} : vector<16x32xf32> to vector<16x8xf32>
    %197 = vector.extract_strided_slice %151 {offsets = [0, 16], sizes = [16, 8], strides = [1, 1]} : vector<16x32xf32> to vector<16x8xf32>
    %198 = vector.extract_strided_slice %152 {offsets = [0, 16], sizes = [16, 8], strides = [1, 1]} : vector<16x32xf32> to vector<16x8xf32>
    %cst_89 = arith.constant dense<0.000000e+00> : vector<16x16xf32>
    %199 = tpu.matmul %196, %197, %cst_89 {dimension_numbers = #tpu.dot_dimension_numbers<[1], [1], [0], [0], [0, 0, 1, 0], [], []>} : vector<16x8xf32>, vector<16x8xf32>, vector<16x16xf32> -> vector<16x16xf32>
    %cst_90 = arith.constant 0.353553385 : f32
    %200 = vector.broadcast %cst_90 : f32 to vector<16x16xf32>
    %201 = arith.mulf %199, %200 : vector<16x16xf32>
    %202 = arith.addf %201, %144 : vector<16x16xf32>
    %cst_91 = arith.constant dense<0xFF800000> : vector<16xf32>
    %203 = vector.multi_reduction <maximumf>, %202, %cst_91 [1] : vector<16x16xf32> to vector<16xf32>
    %204 = vector.shape_cast %203 : vector<16xf32> to vector<16x1xf32>
    %205 = vector.broadcast %204 : vector<16x1xf32> to vector<16x16xf32>
    %206 = arith.subf %202, %205 : vector<16x16xf32>
    %207 = math.exp %206 : vector<16x16xf32>
    %cst_92 = arith.constant dense<0.000000e+00> : vector<16xf32>
    %208 = vector.multi_reduction <add>, %207, %cst_92 [1] : vector<16x16xf32> to vector<16xf32>
    %209 = vector.shape_cast %208 : vector<16xf32> to vector<16x1xf32>
    %210 = tpu.reciprocal %209 {approx = true} : vector<16x1xf32> -> vector<16x1xf32>
    %211 = vector.broadcast %210 : vector<16x1xf32> to vector<16x16xf32>
    %212 = arith.mulf %207, %211 : vector<16x16xf32>
    %cst_93 = arith.constant dense<0.000000e+00> : vector<16x8xf32>
    %213 = tpu.matmul %212, %198, %cst_93 {dimension_numbers = #tpu.dot_dimension_numbers<[1], [0], [0], [1], [0, 0, 1, 1], [], []>} : vector<16x16xf32>, vector<16x8xf32>, vector<16x8xf32> -> vector<16x8xf32>
    %214 = vector.extract_strided_slice %141 {offsets = [16, 0], sizes = [8, 32], strides = [1, 1]} : vector<32x32xf32> to vector<8x32xf32>
    %cst_94 = arith.constant dense<0.000000e+00> : vector<16x32xf32>
    %215 = tpu.matmul %213, %214, %cst_94 {dimension_numbers = #tpu.dot_dimension_numbers<[1], [0], [0], [1], [0, 0, 1, 1], [], []>} : vector<16x8xf32>, vector<8x32xf32>, vector<16x32xf32> -> vector<16x32xf32>
    %216 = arith.addf %195, %215 : vector<16x32xf32>
    %217 = vector.extract_strided_slice %147 {offsets = [0, 24], sizes = [16, 8], strides = [1, 1]} : vector<16x32xf32> to vector<16x8xf32>
    %218 = vector.extract_strided_slice %151 {offsets = [0, 24], sizes = [16, 8], strides = [1, 1]} : vector<16x32xf32> to vector<16x8xf32>
    %219 = vector.extract_strided_slice %152 {offsets = [0, 24], sizes = [16, 8], strides = [1, 1]} : vector<16x32xf32> to vector<16x8xf32>
    %cst_95 = arith.constant dense<0.000000e+00> : vector<16x16xf32>
    %220 = tpu.matmul %217, %218, %cst_95 {dimension_numbers = #tpu.dot_dimension_numbers<[1], [1], [0], [0], [0, 0, 1, 0], [], []>} : vector<16x8xf32>, vector<16x8xf32>, vector<16x16xf32> -> vector<16x16xf32>
    %cst_96 = arith.constant 0.353553385 : f32
    %221 = vector.broadcast %cst_96 : f32 to vector<16x16xf32>
    %222 = arith.mulf %220, %221 : vector<16x16xf32>
    %223 = arith.addf %222, %144 : vector<16x16xf32>
    %cst_97 = arith.constant dense<0xFF800000> : vector<16xf32>
    %224 = vector.multi_reduction <maximumf>, %223, %cst_97 [1] : vector<16x16xf32> to vector<16xf32>
    %225 = vector.shape_cast %224 : vector<16xf32> to vector<16x1xf32>
    %226 = vector.broadcast %225 : vector<16x1xf32> to vector<16x16xf32>
    %227 = arith.subf %223, %226 : vector<16x16xf32>
    %228 = math.exp %227 : vector<16x16xf32>
    %cst_98 = arith.constant dense<0.000000e+00> : vector<16xf32>
    %229 = vector.multi_reduction <add>, %228, %cst_98 [1] : vector<16x16xf32> to vector<16xf32>
    %230 = vector.shape_cast %229 : vector<16xf32> to vector<16x1xf32>
    %231 = tpu.reciprocal %230 {approx = true} : vector<16x1xf32> -> vector<16x1xf32>
    %232 = vector.broadcast %231 : vector<16x1xf32> to vector<16x16xf32>
    %233 = arith.mulf %228, %232 : vector<16x16xf32>
    %cst_99 = arith.constant dense<0.000000e+00> : vector<16x8xf32>
    %234 = tpu.matmul %233, %219, %cst_99 {dimension_numbers = #tpu.dot_dimension_numbers<[1], [0], [0], [1], [0, 0, 1, 1], [], []>} : vector<16x16xf32>, vector<16x8xf32>, vector<16x8xf32> -> vector<16x8xf32>
    %235 = vector.extract_strided_slice %141 {offsets = [24, 0], sizes = [8, 32], strides = [1, 1]} : vector<32x32xf32> to vector<8x32xf32>
    %cst_100 = arith.constant dense<0.000000e+00> : vector<16x32xf32>
    %236 = tpu.matmul %234, %235, %cst_100 {dimension_numbers = #tpu.dot_dimension_numbers<[1], [0], [0], [1], [0, 0, 1, 1], [], []>} : vector<16x8xf32>, vector<8x32xf32>, vector<16x32xf32> -> vector<16x32xf32>
    %237 = arith.addf %216, %236 : vector<16x32xf32>
    %238 = vector.broadcast %143 : vector<1x32xf32> to vector<16x32xf32>
    %239 = arith.addf %237, %238 : vector<16x32xf32>
    %240 = arith.addf %131, %239 : vector<16x32xf32>
    %c0_101 = arith.constant 0 : index
    %c0_102 = arith.constant 0 : index
    %c0_103 = arith.constant 0 : index
    %241 = vector.load %arg21[%c0_101, %c0_102, %c0_103] : memref<1x1x32xf32, #tpu.memory_space<vmem>>, vector<1x1x32xf32>
    %242 = vector.shape_cast %241 : vector<1x1x32xf32> to vector<1x32xf32>
    %c0_104 = arith.constant 0 : index
    %c0_105 = arith.constant 0 : index
    %c0_106 = arith.constant 0 : index
    %243 = vector.load %arg22[%c0_104, %c0_105, %c0_106] : memref<1x1x32xf32, #tpu.memory_space<vmem>>, vector<1x1x32xf32>
    %244 = vector.shape_cast %243 : vector<1x1x32xf32> to vector<1x32xf32>
    %cst_107 = arith.constant dense<0.000000e+00> : vector<16xf32>
    %245 = vector.multi_reduction <add>, %240, %cst_107 [1] : vector<16x32xf32> to vector<16xf32>
    %246 = vector.shape_cast %245 : vector<16xf32> to vector<16x1xf32>
    %cst_108 = arith.constant 3.200000e+01 : f32
    %247 = vector.broadcast %cst_108 : f32 to vector<16x1xf32>
    %248 = arith.divf %246, %247 : vector<16x1xf32>
    %249 = vector.broadcast %248 : vector<16x1xf32> to vector<16x32xf32>
    %250 = arith.subf %240, %249 : vector<16x32xf32>
    %251 = arith.mulf %250, %250 : vector<16x32xf32>
    %cst_109 = arith.constant dense<0.000000e+00> : vector<16xf32>
    %252 = vector.multi_reduction <add>, %251, %cst_109 [1] : vector<16x32xf32> to vector<16xf32>
    %253 = vector.shape_cast %252 : vector<16xf32> to vector<16x1xf32>
    %cst_110 = arith.constant 3.200000e+01 : f32
    %254 = vector.broadcast %cst_110 : f32 to vector<16x1xf32>
    %255 = arith.divf %253, %254 : vector<16x1xf32>
    %cst_111 = arith.constant 9.99999974E-6 : f32
    %256 = vector.broadcast %cst_111 : f32 to vector<16x1xf32>
    %257 = arith.addf %255, %256 : vector<16x1xf32>
    %258 = math.rsqrt %257 : vector<16x1xf32>
    %259 = vector.broadcast %258 : vector<16x1xf32> to vector<16x32xf32>
    %260 = arith.mulf %250, %259 : vector<16x32xf32>
    %261 = vector.broadcast %242 : vector<1x32xf32> to vector<16x32xf32>
    %262 = arith.mulf %260, %261 : vector<16x32xf32>
    %263 = vector.broadcast %244 : vector<1x32xf32> to vector<16x32xf32>
    %264 = arith.addf %262, %263 : vector<16x32xf32>
    %c0_112 = arith.constant 0 : index
    %c0_113 = arith.constant 0 : index
    %c0_114 = arith.constant 0 : index
    %265 = vector.load %arg15[%c0_112, %c0_113, %c0_114] : memref<1x32x64xf32, #tpu.memory_space<vmem>>, vector<1x32x64xf32>
    %266 = vector.shape_cast %265 : vector<1x32x64xf32> to vector<32x64xf32>
    %cst_115 = arith.constant dense<0.000000e+00> : vector<16x64xf32>
    %267 = tpu.matmul %264, %266, %cst_115 {dimension_numbers = #tpu.dot_dimension_numbers<[1], [0], [0], [1], [0, 0, 1, 1], [], []>} : vector<16x32xf32>, vector<32x64xf32>, vector<16x64xf32> -> vector<16x64xf32>
    %c0_116 = arith.constant 0 : index
    %c0_117 = arith.constant 0 : index
    %c0_118 = arith.constant 0 : index
    %268 = vector.load %arg16[%c0_116, %c0_117, %c0_118] : memref<1x1x64xf32, #tpu.memory_space<vmem>>, vector<1x1x64xf32>
    %269 = vector.shape_cast %268 : vector<1x1x64xf32> to vector<1x64xf32>
    %270 = vector.broadcast %269 : vector<1x64xf32> to vector<16x64xf32>
    %271 = arith.addf %267, %270 : vector<16x64xf32>
    %cst_119 = arith.constant 0.000000e+00 : f32
    %272 = vector.broadcast %cst_119 : f32 to vector<16x64xf32>
    %273 = arith.maximumf %271, %272 : vector<16x64xf32>
    %c0_120 = arith.constant 0 : index
    %c0_121 = arith.constant 0 : index
    %c0_122 = arith.constant 0 : index
    %274 = vector.load %arg17[%c0_120, %c0_121, %c0_122] : memref<1x64x32xf32, #tpu.memory_space<vmem>>, vector<1x64x32xf32>
    %275 = vector.shape_cast %274 : vector<1x64x32xf32> to vector<64x32xf32>
    %cst_123 = arith.constant dense<0.000000e+00> : vector<16x32xf32>
    %276 = tpu.matmul %273, %275, %cst_123 {dimension_numbers = #tpu.dot_dimension_numbers<[1], [0], [0], [1], [0, 0, 1, 1], [], []>} : vector<16x64xf32>, vector<64x32xf32>, vector<16x32xf32> -> vector<16x32xf32>
    %c0_124 = arith.constant 0 : index
    %c0_125 = arith.constant 0 : index
    %c0_126 = arith.constant 0 : index
    %277 = vector.load %arg18[%c0_124, %c0_125, %c0_126] : memref<1x1x32xf32, #tpu.memory_space<vmem>>, vector<1x1x32xf32>
    %278 = vector.shape_cast %277 : vector<1x1x32xf32> to vector<1x32xf32>
    %279 = vector.broadcast %278 : vector<1x32xf32> to vector<16x32xf32>
    %280 = arith.addf %276, %279 : vector<16x32xf32>
    %281 = arith.addf %264, %280 : vector<16x32xf32>
    %c0_127 = arith.constant 0 : index
    %c0_128 = arith.constant 0 : index
    %c0_129 = arith.constant 0 : index
    %282 = vector.load %arg23[%c0_127, %c0_128, %c0_129] : memref<1x1x32xf32, #tpu.memory_space<vmem>>, vector<1x1x32xf32>
    %283 = vector.shape_cast %282 : vector<1x1x32xf32> to vector<1x32xf32>
    %c0_130 = arith.constant 0 : index
    %c0_131 = arith.constant 0 : index
    %c0_132 = arith.constant 0 : index
    %284 = vector.load %arg24[%c0_130, %c0_131, %c0_132] : memref<1x1x32xf32, #tpu.memory_space<vmem>>, vector<1x1x32xf32>
    %285 = vector.shape_cast %284 : vector<1x1x32xf32> to vector<1x32xf32>
    %cst_133 = arith.constant dense<0.000000e+00> : vector<16xf32>
    %286 = vector.multi_reduction <add>, %281, %cst_133 [1] : vector<16x32xf32> to vector<16xf32>
    %287 = vector.shape_cast %286 : vector<16xf32> to vector<16x1xf32>
    %cst_134 = arith.constant 3.200000e+01 : f32
    %288 = vector.broadcast %cst_134 : f32 to vector<16x1xf32>
    %289 = arith.divf %287, %288 : vector<16x1xf32>
    %290 = vector.broadcast %289 : vector<16x1xf32> to vector<16x32xf32>
    %291 = arith.subf %281, %290 : vector<16x32xf32>
    %292 = arith.mulf %291, %291 : vector<16x32xf32>
    %cst_135 = arith.constant dense<0.000000e+00> : vector<16xf32>
    %293 = vector.multi_reduction <add>, %292, %cst_135 [1] : vector<16x32xf32> to vector<16xf32>
    %294 = vector.shape_cast %293 : vector<16xf32> to vector<16x1xf32>
    %cst_136 = arith.constant 3.200000e+01 : f32
    %295 = vector.broadcast %cst_136 : f32 to vector<16x1xf32>
    %296 = arith.divf %294, %295 : vector<16x1xf32>
    %cst_137 = arith.constant 9.99999974E-6 : f32
    %297 = vector.broadcast %cst_137 : f32 to vector<16x1xf32>
    %298 = arith.addf %296, %297 : vector<16x1xf32>
    %299 = math.rsqrt %298 : vector<16x1xf32>
    %300 = vector.broadcast %299 : vector<16x1xf32> to vector<16x32xf32>
    %301 = arith.mulf %291, %300 : vector<16x32xf32>
    %302 = vector.broadcast %283 : vector<1x32xf32> to vector<16x32xf32>
    %303 = arith.mulf %301, %302 : vector<16x32xf32>
    %304 = vector.broadcast %285 : vector<1x32xf32> to vector<16x32xf32>
    %305 = arith.addf %303, %304 : vector<16x32xf32>
    %c0_138 = arith.constant 0 : index
    %c0_139 = arith.constant 0 : index
    %306 = vector.load %arg32[%c0_138, %c0_139] : memref<16x32xf32, #tpu.memory_space<vmem>>, vector<16x32xf32>
    tpu.vector_store %arg32[%c0_138, %c0_139], %305 {strides = array<i32>} : memref<16x32xf32, #tpu.memory_space<vmem>>, vector<16x32xf32>,
    %c1_i32 = arith.constant 1 : i32
    %307 = arith.cmpi eq, %arg0, %c1_i32 : i32
    %308 = arith.extui %307 : i1 to i32
    %c0_i32_140 = arith.constant 0 : i32
    %309 = arith.cmpi ne, %308, %c0_i32_140 : i32
    scf.if %309 {
      %c0_141 = arith.constant 0 : index
      %c0_142 = arith.constant 0 : index
      %310 = vector.load %arg25[%c0_141, %c0_142] : memref<1x32xf32, #tpu.memory_space<vmem>>, vector<1x32xf32>
      %c0_143 = arith.constant 0 : index
      %c0_144 = arith.constant 0 : index
      %311 = vector.load %arg26[%c0_143, %c0_144] : memref<1x32xf32, #tpu.memory_space<vmem>>, vector<1x32xf32>
      %cst_145 = arith.constant dense<0.000000e+00> : vector<16xf32>
      %312 = vector.multi_reduction <add>, %305, %cst_145 [1] : vector<16x32xf32> to vector<16xf32>
      %313 = vector.shape_cast %312 : vector<16xf32> to vector<16x1xf32>
      %cst_146 = arith.constant 3.200000e+01 : f32
      %314 = vector.broadcast %cst_146 : f32 to vector<16x1xf32>
      %315 = arith.divf %313, %314 : vector<16x1xf32>
      %316 = vector.broadcast %315 : vector<16x1xf32> to vector<16x32xf32>
      %317 = arith.subf %305, %316 : vector<16x32xf32>
      %318 = arith.mulf %317, %317 : vector<16x32xf32>
      %cst_147 = arith.constant dense<0.000000e+00> : vector<16xf32>
      %319 = vector.multi_reduction <add>, %318, %cst_147 [1] : vector<16x32xf32> to vector<16xf32>
      %320 = vector.shape_cast %319 : vector<16xf32> to vector<16x1xf32>
      %cst_148 = arith.constant 3.200000e+01 : f32
      %321 = vector.broadcast %cst_148 : f32 to vector<16x1xf32>
      %322 = arith.divf %320, %321 : vector<16x1xf32>
      %cst_149 = arith.constant 9.99999974E-6 : f32
      %323 = vector.broadcast %cst_149 : f32 to vector<16x1xf32>
      %324 = arith.addf %322, %323 : vector<16x1xf32>
      %325 = math.rsqrt %324 : vector<16x1xf32>
      %326 = vector.broadcast %325 : vector<16x1xf32> to vector<16x32xf32>
      %327 = arith.mulf %317, %326 : vector<16x32xf32>
      %328 = vector.broadcast %310 : vector<1x32xf32> to vector<16x32xf32>
      %329 = arith.mulf %327, %328 : vector<16x32xf32>
      %330 = vector.broadcast %311 : vector<1x32xf32> to vector<16x32xf32>
      %331 = arith.addf %329, %330 : vector<16x32xf32>
      %c0_150 = arith.constant 0 : index
      %c0_151 = arith.constant 0 : index
      %332 = vector.load %arg29[%c0_150, %c0_151] : memref<16x32xf32, #tpu.memory_space<vmem>>, vector<16x32xf32>
      tpu.vector_store %arg29[%c0_150, %c0_151], %331 {strides = array<i32>} : memref<16x32xf32, #tpu.memory_space<vmem>>, vector<16x32xf32>,
      %c0_152 = arith.constant 0 : index
      %c0_153 = arith.constant 0 : index
      %333 = vector.load %arg27[%c0_152, %c0_153] : memref<32x16xf32, #tpu.memory_space<vmem>>, vector<32x16xf32>
      %cst_154 = arith.constant dense<0.000000e+00> : vector<16x16xf32>
      %334 = tpu.matmul %331, %333, %cst_154 {dimension_numbers = #tpu.dot_dimension_numbers<[1], [0], [0], [1], [0, 0, 1, 1], [], []>} : vector<16x32xf32>, vector<32x16xf32>, vector<16x16xf32> -> vector<16x16xf32>
      %c0_155 = arith.constant 0 : index
      %c0_156 = arith.constant 0 : index
      %335 = vector.load %arg28[%c0_155, %c0_156] : memref<1x16xf32, #tpu.memory_space<vmem>>, vector<1x16xf32>
      %336 = vector.broadcast %335 : vector<1x16xf32> to vector<16x16xf32>
      %337 = arith.addf %334, %336 : vector<16x16xf32>
      %c0_157 = arith.constant 0 : index
      %c0_158 = arith.constant 0 : index
      %338 = vector.load %arg30[%c0_157, %c0_158] : memref<16x16xf32, #tpu.memory_space<vmem>>, vector<16x16xf32>
      tpu.vector_store %arg30[%c0_157, %c0_158], %337 {strides = array<i32>} : memref<16x16xf32, #tpu.memory_space<vmem>>, vector<16x16xf32>,
      %cst_159 = arith.constant dense<0xFF800000> : vector<16xf32>
      %339 = vector.multi_reduction <maximumf>, %337, %cst_159 [1] : vector<16x16xf32> to vector<16xf32>
      %340 = vector.shape_cast %339 : vector<16xf32> to vector<16x1xf32>
      %341 = tpu.iota {dimensions = array<i32: 1>} : vector<16x16xi32>
      %342 = vector.broadcast %340 : vector<16x1xf32> to vector<16x16xf32>
      %343 = arith.cmpf oeq, %337, %342 : vector<16x16xf32>
      %c16_i32 = arith.constant 16 : i32
      %344 = vector.broadcast %c16_i32 : i32 to vector<16x16xi32>
      %345 = arith.select %343, %341, %344 : vector<16x16xi1>, vector<16x16xi32>
      %cst_160 = arith.constant dense<2147483647> : vector<16xi32>
      %346 = vector.multi_reduction <minsi>, %345, %cst_160 [1] : vector<16x16xi32> to vector<16xi32>
      %347 = vector.shape_cast %346 : vector<16xi32> to vector<16x1xi32>
      %c0_161 = arith.constant 0 : index
      %c0_162 = arith.constant 0 : index
      %348 = vector.load %arg31[%c0_161, %c0_162] : memref<16x1xi32, #tpu.memory_space<vmem>>, vector<16x1xi32>
      tpu.vector_store %arg31[%c0_161, %c0_162], %347 {strides = array<i32>} : memref<16x1xi32, #tpu.memory_space<vmem>>, vector<16x1xi32>,
    } else {
    }
    return
  }
  func.func @transform_0(%arg0: i32) -> (i32, i32) {
    %c0_i32 = arith.constant 0 : i32
    %c0_i32_0 = arith.constant 0 : i32
    %c0_i32_1 = arith.constant 0 : i32
    return %c0_i32, %c0_i32_0 : i32, i32
  }
  func.func @transform_1(%arg0: i32) -> (i32, i32) {
    %c0_i32 = arith.constant 0 : i32
    %c0_i32_0 = arith.constant 0 : i32
    %c0_i32_1 = arith.constant 0 : i32
    return %c0_i32, %c0_i32_0 : i32, i32
  }
  func.func @transform_2(%arg0: i32) -> (i32, i32) {
    %c0_i32 = arith.constant 0 : i32
    %c0_i32_0 = arith.constant 0 : i32
    %c0_i32_1 = arith.constant 0 : i32
    return %c0_i32, %c0_i32_0 : i32, i32
  }
  func.func @transform_3(%arg0: i32) -> (i32, i32) {
    %c0_i32 = arith.constant 0 : i32
    %c0_i32_0 = arith.constant 0 : i32
    %c0_i32_1 = arith.constant 0 : i32
    return %c0_i32, %c0_i32_0 : i32, i32
  }
  func.func @transform_4(%arg0: i32) -> (i32, i32, i32) {
    %c0_i32 = arith.constant 0 : i32
    %c0_i32_0 = arith.constant 0 : i32
    %c0_i32_1 = arith.constant 0 : i32
    return %arg0, %c0_i32, %c0_i32_0 : i32, i32, i32
  }
  func.func @transform_5(%arg0: i32) -> (i32, i32, i32) {
    %c0_i32 = arith.constant 0 : i32
    %c0_i32_0 = arith.constant 0 : i32
    %c0_i32_1 = arith.constant 0 : i32
    return %arg0, %c0_i32, %c0_i32_0 : i32, i32, i32
  }
  func.func @transform_6(%arg0: i32) -> (i32, i32, i32) {
    %c0_i32 = arith.constant 0 : i32
    %c0_i32_0 = arith.constant 0 : i32
    %c0_i32_1 = arith.constant 0 : i32
    return %arg0, %c0_i32, %c0_i32_0 : i32, i32, i32
  }
  func.func @transform_7(%arg0: i32) -> (i32, i32, i32) {
    %c0_i32 = arith.constant 0 : i32
    %c0_i32_0 = arith.constant 0 : i32
    %c0_i32_1 = arith.constant 0 : i32
    return %arg0, %c0_i32, %c0_i32_0 : i32, i32, i32
  }
  func.func @transform_8(%arg0: i32) -> (i32, i32, i32) {
    %c0_i32 = arith.constant 0 : i32
    %c0_i32_0 = arith.constant 0 : i32
    %c0_i32_1 = arith.constant 0 : i32
    return %arg0, %c0_i32, %c0_i32_0 : i32, i32, i32
  }
  func.func @transform_9(%arg0: i32) -> (i32, i32, i32) {
    %c0_i32 = arith.constant 0 : i32
    %c0_i32_0 = arith.constant 0 : i32
    %c0_i32_1 = arith.constant 0 : i32
    return %arg0, %c0_i32, %c0_i32_0 : i32, i32, i32
  }
  func.func @transform_10(%arg0: i32) -> (i32, i32, i32) {
    %c0_i32 = arith.constant 0 : i32
    %c0_i32_0 = arith.constant 0 : i32
    %c0_i32_1 = arith.constant 0 : i32
    return %arg0, %c0_i32, %c0_i32_0 : i32, i32, i32
  }
  func.func @transform_11(%arg0: i32) -> (i32, i32, i32) {
    %c0_i32 = arith.constant 0 : i32
    %c0_i32_0 = arith.constant 0 : i32
    %c0_i32_1 = arith.constant 0 : i32
    return %arg0, %c0_i32, %c0_i32_0 : i32, i32, i32
  }
  func.func @transform_12(%arg0: i32) -> (i32, i32, i32) {
    %c0_i32 = arith.constant 0 : i32
    %c0_i32_0 = arith.constant 0 : i32
    %c0_i32_1 = arith.constant 0 : i32
    return %arg0, %c0_i32, %c0_i32_0 : i32, i32, i32
  }
  func.func @transform_13(%arg0: i32) -> (i32, i32, i32) {
    %c0_i32 = arith.constant 0 : i32
    %c0_i32_0 = arith.constant 0 : i32
    %c0_i32_1 = arith.constant 0 : i32
    return %arg0, %c0_i32, %c0_i32_0 : i32, i32, i32
  }
  func.func @transform_14(%arg0: i32) -> (i32, i32, i32) {
    %c0_i32 = arith.constant 0 : i32
    %c0_i32_0 = arith.constant 0 : i32
    %c0_i32_1 = arith.constant 0 : i32
    return %arg0, %c0_i32, %c0_i32_0 : i32, i32, i32
  }
  func.func @transform_15(%arg0: i32) -> (i32, i32, i32) {
    %c0_i32 = arith.constant 0 : i32
    %c0_i32_0 = arith.constant 0 : i32
    %c0_i32_1 = arith.constant 0 : i32
    return %arg0, %c0_i32, %c0_i32_0 : i32, i32, i32
  }
  func.func @transform_16(%arg0: i32) -> (i32, i32, i32) {
    %c0_i32 = arith.constant 0 : i32
    %c0_i32_0 = arith.constant 0 : i32
    %c0_i32_1 = arith.constant 0 : i32
    return %arg0, %c0_i32, %c0_i32_0 : i32, i32, i32
  }
  func.func @transform_17(%arg0: i32) -> (i32, i32, i32) {
    %c0_i32 = arith.constant 0 : i32
    %c0_i32_0 = arith.constant 0 : i32
    %c0_i32_1 = arith.constant 0 : i32
    return %arg0, %c0_i32, %c0_i32_0 : i32, i32, i32
  }
  func.func @transform_18(%arg0: i32) -> (i32, i32, i32) {
    %c0_i32 = arith.constant 0 : i32
    %c0_i32_0 = arith.constant 0 : i32
    %c0_i32_1 = arith.constant 0 : i32
    return %arg0, %c0_i32, %c0_i32_0 : i32, i32, i32
  }
  func.func @transform_19(%arg0: i32) -> (i32, i32, i32) {
    %c0_i32 = arith.constant 0 : i32
    %c0_i32_0 = arith.constant 0 : i32
    %c0_i32_1 = arith.constant 0 : i32
    return %arg0, %c0_i32, %c0_i32_0 : i32, i32, i32
  }
  func.func @transform_20(%arg0: i32) -> (i32, i32, i32) {
    %c0_i32 = arith.constant 0 : i32
    %c0_i32_0 = arith.constant 0 : i32
    %c0_i32_1 = arith.constant 0 : i32
    return %arg0, %c0_i32, %c0_i32_0 : i32, i32, i32
  }
  func.func @transform_21(%arg0: i32) -> (i32, i32, i32) {
    %c0_i32 = arith.constant 0 : i32
    %c0_i32_0 = arith.constant 0 : i32
    %c0_i32_1 = arith.constant 0 : i32
    return %arg0, %c0_i32, %c0_i32_0 : i32, i32, i32
  }
  func.func @transform_22(%arg0: i32) -> (i32, i32, i32) {
    %c0_i32 = arith.constant 0 : i32
    %c0_i32_0 = arith.constant 0 : i32
    %c0_i32_1 = arith.constant 0 : i32
    return %arg0, %c0_i32, %c0_i32_0 : i32, i32, i32
  }
  func.func @transform_23(%arg0: i32) -> (i32, i32, i32) {
    %c0_i32 = arith.constant 0 : i32
    %c0_i32_0 = arith.constant 0 : i32
    %c0_i32_1 = arith.constant 0 : i32
    return %arg0, %c0_i32, %c0_i32_0 : i32, i32, i32
  }
  func.func @transform_24(%arg0: i32) -> (i32, i32) {
    %c0_i32 = arith.constant 0 : i32
    %c0_i32_0 = arith.constant 0 : i32
    %c0_i32_1 = arith.constant 0 : i32
    return %c0_i32, %c0_i32_0 : i32, i32
  }
  func.func @transform_25(%arg0: i32) -> (i32, i32) {
    %c0_i32 = arith.constant 0 : i32
    %c0_i32_0 = arith.constant 0 : i32
    %c0_i32_1 = arith.constant 0 : i32
    return %c0_i32, %c0_i32_0 : i32, i32
  }
  func.func @transform_26(%arg0: i32) -> (i32, i32) {
    %c0_i32 = arith.constant 0 : i32
    %c0_i32_0 = arith.constant 0 : i32
    %c0_i32_1 = arith.constant 0 : i32
    return %c0_i32, %c0_i32_0 : i32, i32
  }
  func.func @transform_27(%arg0: i32) -> (i32, i32) {
    %c0_i32 = arith.constant 0 : i32
    %c0_i32_0 = arith.constant 0 : i32
    %c0_i32_1 = arith.constant 0 : i32
    return %c0_i32, %c0_i32_0 : i32, i32
  }
  func.func @transform_28(%arg0: i32) -> (i32, i32) {
    %c0_i32 = arith.constant 0 : i32
    %c0_i32_0 = arith.constant 0 : i32
    %c0_i32_1 = arith.constant 0 : i32
    return %c0_i32, %c0_i32_0 : i32, i32
  }
  func.func @transform_29(%arg0: i32) -> (i32, i32) {
    %c0_i32 = arith.constant 0 : i32
    %c0_i32_0 = arith.constant 0 : i32
    %c0_i32_1 = arith.constant 0 : i32
    return %c0_i32, %c0_i32_0 : i32, i32
  }
  func.func @transform_30(%arg0: i32) -> (i32, i32) {
    %c0_i32 = arith.constant 0 : i32
    %c0_i32_0 = arith.constant 0 : i32
    %c0_i32_1 = arith.constant 0 : i32
    return %c0_i32, %c0_i32_0 : i32, i32
  }
}

module attributes {stable_mosaic.version = 11 : i64} {
  func.func @_encoder_stack_kernel(%arg0: i32, %arg1: memref<16x12xf32, #tpu.memory_space<vmem>>, %arg2: memref<16x32xf32, #tpu.memory_space<vmem>>, %arg3: memref<12x32xf32, #tpu.memory_space<vmem>>, %arg4: memref<16x16xf32, #tpu.memory_space<vmem>>, %arg5: memref<1x32x96xf32, #tpu.memory_space<vmem>>, %arg6: memref<1x1x96xf32, #tpu.memory_space<vmem>>, %arg7: memref<1x32x32xf32, #tpu.memory_space<vmem>>, %arg8: memref<1x1x32xf32, #tpu.memory_space<vmem>>, %arg9: memref<1x32x64xf32, #tpu.memory_space<vmem>>, %arg10: memref<1x1x64xf32, #tpu.memory_space<vmem>>, %arg11: memref<1x64x32xf32, #tpu.memory_space<vmem>>, %arg12: memref<1x1x32xf32, #tpu.memory_space<vmem>>, %arg13: memref<1x1x32xf32, #tpu.memory_space<vmem>>, %arg14: memref<1x1x32xf32, #tpu.memory_space<vmem>>, %arg15: memref<1x1x32xf32, #tpu.memory_space<vmem>>, %arg16: memref<1x1x32xf32, #tpu.memory_space<vmem>>, %arg17: memref<1x32xf32, #tpu.memory_space<vmem>>, %arg18: memref<1x32xf32, #tpu.memory_space<vmem>>, %arg19: memref<16x32xf32, #tpu.memory_space<vmem>>, %arg20: memref<16x32xf32, #tpu.memory_space<vmem>>) attributes {dimension_semantics = [#tpu.dimension_semantics<arbitrary>], iteration_bounds = array<i64: 2>, scalar_prefetch = 0 : i64, scratch_operands = 1 : i64, tpu.core_type = #tpu.core_type<tc>, window_params = [{pipeline_mode = #tpu.pipeline_mode<synchronous>, transform_indices = @transform_0, window_bounds = array<i64: 16, 12>}, {pipeline_mode = #tpu.pipeline_mode<synchronous>, transform_indices = @transform_1, window_bounds = array<i64: 16, 32>}, {pipeline_mode = #tpu.pipeline_mode<synchronous>, transform_indices = @transform_2, window_bounds = array<i64: 12, 32>}, {pipeline_mode = #tpu.pipeline_mode<synchronous>, transform_indices = @transform_3, window_bounds = array<i64: 16, 16>}, {transform_indices = @transform_4, window_bounds = array<i64: 1, 32, 96>}, {transform_indices = @transform_5, window_bounds = array<i64: 1, 1, 96>}, {transform_indices = @transform_6, window_bounds = array<i64: 1, 32, 32>}, {transform_indices = @transform_7, window_bounds = array<i64: 1, 1, 32>}, {transform_indices = @transform_8, window_bounds = array<i64: 1, 32, 64>}, {transform_indices = @transform_9, window_bounds = array<i64: 1, 1, 64>}, {transform_indices = @transform_10, window_bounds = array<i64: 1, 64, 32>}, {transform_indices = @transform_11, window_bounds = array<i64: 1, 1, 32>}, {transform_indices = @transform_12, window_bounds = array<i64: 1, 1, 32>}, {transform_indices = @transform_13, window_bounds = array<i64: 1, 1, 32>}, {transform_indices = @transform_14, window_bounds = array<i64: 1, 1, 32>}, {transform_indices = @transform_15, window_bounds = array<i64: 1, 1, 32>}, {pipeline_mode = #tpu.pipeline_mode<synchronous>, transform_indices = @transform_16, window_bounds = array<i64: 1, 32>}, {pipeline_mode = #tpu.pipeline_mode<synchronous>, transform_indices = @transform_17, window_bounds = array<i64: 1, 32>}, {pipeline_mode = #tpu.pipeline_mode<synchronous>, transform_indices = @transform_18, window_bounds = array<i64: 16, 32>}]} {
    %c0_i32 = arith.constant 0 : i32
    %0 = arith.cmpi eq, %arg0, %c0_i32 : i32
    %1 = arith.extui %0 : i1 to i32
    %c0_i32_0 = arith.constant 0 : i32
    %2 = arith.cmpi ne, %1, %c0_i32_0 : i32
    scf.if %2 {
      %c0_81 = arith.constant 0 : index
      %c0_82 = arith.constant 0 : index
      %176 = vector.load %arg1[%c0_81, %c0_82] : memref<16x12xf32, #tpu.memory_space<vmem>>, vector<16x12xf32>
      %c0_83 = arith.constant 0 : index
      %c0_84 = arith.constant 0 : index
      %177 = vector.load %arg3[%c0_83, %c0_84] : memref<12x32xf32, #tpu.memory_space<vmem>>, vector<12x32xf32>
      %cst_85 = arith.constant dense<0.000000e+00> : vector<16x32xf32>
      %178 = tpu.matmul %176, %177, %cst_85 {dimension_numbers = #tpu.dot_dimension_numbers<[1], [0], [0], [1], [0, 0, 1, 1], [], []>} : vector<16x12xf32>, vector<12x32xf32>, vector<16x32xf32> -> vector<16x32xf32>
      %c0_86 = arith.constant 0 : index
      %c0_87 = arith.constant 0 : index
      %179 = vector.load %arg2[%c0_86, %c0_87] : memref<16x32xf32, #tpu.memory_space<vmem>>, vector<16x32xf32>
      %180 = arith.addf %178, %179 : vector<16x32xf32>
      %c0_88 = arith.constant 0 : index
      %c0_89 = arith.constant 0 : index
      %181 = vector.load %arg20[%c0_88, %c0_89] : memref<16x32xf32, #tpu.memory_space<vmem>>, vector<16x32xf32>
      tpu.vector_store %arg20[%c0_88, %c0_89], %180 {strides = array<i32>} : memref<16x32xf32, #tpu.memory_space<vmem>>, vector<16x32xf32>,
    } else {
    }
    %c0 = arith.constant 0 : index
    %c0_1 = arith.constant 0 : index
    %3 = vector.load %arg20[%c0, %c0_1] : memref<16x32xf32, #tpu.memory_space<vmem>>, vector<16x32xf32>
    %c0_2 = arith.constant 0 : index
    %c0_3 = arith.constant 0 : index
    %c0_4 = arith.constant 0 : index
    %4 = vector.load %arg5[%c0_2, %c0_3, %c0_4] : memref<1x32x96xf32, #tpu.memory_space<vmem>>, vector<1x32x96xf32>
    %5 = vector.shape_cast %4 : vector<1x32x96xf32> to vector<32x96xf32>
    %c0_5 = arith.constant 0 : index
    %c0_6 = arith.constant 0 : index
    %c0_7 = arith.constant 0 : index
    %6 = vector.load %arg6[%c0_5, %c0_6, %c0_7] : memref<1x1x96xf32, #tpu.memory_space<vmem>>, vector<1x1x96xf32>
    %7 = vector.shape_cast %6 : vector<1x1x96xf32> to vector<1x96xf32>
    %c0_8 = arith.constant 0 : index
    %c0_9 = arith.constant 0 : index
    %c0_10 = arith.constant 0 : index
    %8 = vector.load %arg7[%c0_8, %c0_9, %c0_10] : memref<1x32x32xf32, #tpu.memory_space<vmem>>, vector<1x32x32xf32>
    %9 = vector.shape_cast %8 : vector<1x32x32xf32> to vector<32x32xf32>
    %c0_11 = arith.constant 0 : index
    %c0_12 = arith.constant 0 : index
    %c0_13 = arith.constant 0 : index
    %10 = vector.load %arg8[%c0_11, %c0_12, %c0_13] : memref<1x1x32xf32, #tpu.memory_space<vmem>>, vector<1x1x32xf32>
    %11 = vector.shape_cast %10 : vector<1x1x32xf32> to vector<1x32xf32>
    %c0_14 = arith.constant 0 : index
    %c0_15 = arith.constant 0 : index
    %12 = vector.load %arg4[%c0_14, %c0_15] : memref<16x16xf32, #tpu.memory_space<vmem>>, vector<16x16xf32>
    %cst = arith.constant dense<0.000000e+00> : vector<16x96xf32>
    %13 = tpu.matmul %3, %5, %cst {dimension_numbers = #tpu.dot_dimension_numbers<[1], [0], [0], [1], [0, 0, 1, 1], [], []>} : vector<16x32xf32>, vector<32x96xf32>, vector<16x96xf32> -> vector<16x96xf32>
    %14 = vector.broadcast %7 : vector<1x96xf32> to vector<16x96xf32>
    %15 = arith.addf %13, %14 : vector<16x96xf32>
    %16 = vector.extract_strided_slice %15 {offsets = [0, 0], sizes = [16, 32], strides = [1, 1]} : vector<16x96xf32> to vector<16x32xf32>
    %17 = vector.extract_strided_slice %15 {offsets = [0, 32], sizes = [16, 32], strides = [1, 1]} : vector<16x96xf32> to vector<16x32xf32>
    %18 = vector.extract_strided_slice %15 {offsets = [0, 64], sizes = [16, 32], strides = [1, 1]} : vector<16x96xf32> to vector<16x32xf32>
    %cst_16 = arith.constant 0.000000e+00 : f32
    %19 = vector.broadcast %cst_16 : f32 to vector<16x32xf32>
    %20 = vector.extract_strided_slice %16 {offsets = [0, 0], sizes = [16, 8], strides = [1, 1]} : vector<16x32xf32> to vector<16x8xf32>
    %21 = vector.extract_strided_slice %17 {offsets = [0, 0], sizes = [16, 8], strides = [1, 1]} : vector<16x32xf32> to vector<16x8xf32>
    %22 = vector.extract_strided_slice %18 {offsets = [0, 0], sizes = [16, 8], strides = [1, 1]} : vector<16x32xf32> to vector<16x8xf32>
    %cst_17 = arith.constant dense<0.000000e+00> : vector<16x16xf32>
    %23 = tpu.matmul %20, %21, %cst_17 {dimension_numbers = #tpu.dot_dimension_numbers<[1], [1], [0], [0], [0, 0, 1, 0], [], []>} : vector<16x8xf32>, vector<16x8xf32>, vector<16x16xf32> -> vector<16x16xf32>
    %cst_18 = arith.constant 0.353553385 : f32
    %24 = vector.broadcast %cst_18 : f32 to vector<16x16xf32>
    %25 = arith.mulf %23, %24 : vector<16x16xf32>
    %26 = arith.addf %25, %12 : vector<16x16xf32>
    %cst_19 = arith.constant dense<0xFF800000> : vector<16xf32>
    %27 = vector.multi_reduction <maximumf>, %26, %cst_19 [1] : vector<16x16xf32> to vector<16xf32>
    %28 = vector.shape_cast %27 : vector<16xf32> to vector<16x1xf32>
    %29 = vector.broadcast %28 : vector<16x1xf32> to vector<16x16xf32>
    %30 = arith.subf %26, %29 : vector<16x16xf32>
    %31 = math.exp %30 : vector<16x16xf32>
    %cst_20 = arith.constant dense<0.000000e+00> : vector<16xf32>
    %32 = vector.multi_reduction <add>, %31, %cst_20 [1] : vector<16x16xf32> to vector<16xf32>
    %33 = vector.shape_cast %32 : vector<16xf32> to vector<16x1xf32>
    %34 = tpu.reciprocal %33 {approx = true} : vector<16x1xf32> -> vector<16x1xf32>
    %35 = vector.broadcast %34 : vector<16x1xf32> to vector<16x16xf32>
    %36 = arith.mulf %31, %35 : vector<16x16xf32>
    %cst_21 = arith.constant dense<0.000000e+00> : vector<16x8xf32>
    %37 = tpu.matmul %36, %22, %cst_21 {dimension_numbers = #tpu.dot_dimension_numbers<[1], [0], [0], [1], [0, 0, 1, 1], [], []>} : vector<16x16xf32>, vector<16x8xf32>, vector<16x8xf32> -> vector<16x8xf32>
    %38 = vector.extract_strided_slice %9 {offsets = [0, 0], sizes = [8, 32], strides = [1, 1]} : vector<32x32xf32> to vector<8x32xf32>
    %cst_22 = arith.constant dense<0.000000e+00> : vector<16x32xf32>
    %39 = tpu.matmul %37, %38, %cst_22 {dimension_numbers = #tpu.dot_dimension_numbers<[1], [0], [0], [1], [0, 0, 1, 1], [], []>} : vector<16x8xf32>, vector<8x32xf32>, vector<16x32xf32> -> vector<16x32xf32>
    %40 = arith.addf %19, %39 : vector<16x32xf32>
    %41 = vector.extract_strided_slice %16 {offsets = [0, 8], sizes = [16, 8], strides = [1, 1]} : vector<16x32xf32> to vector<16x8xf32>
    %42 = vector.extract_strided_slice %17 {offsets = [0, 8], sizes = [16, 8], strides = [1, 1]} : vector<16x32xf32> to vector<16x8xf32>
    %43 = vector.extract_strided_slice %18 {offsets = [0, 8], sizes = [16, 8], strides = [1, 1]} : vector<16x32xf32> to vector<16x8xf32>
    %cst_23 = arith.constant dense<0.000000e+00> : vector<16x16xf32>
    %44 = tpu.matmul %41, %42, %cst_23 {dimension_numbers = #tpu.dot_dimension_numbers<[1], [1], [0], [0], [0, 0, 1, 0], [], []>} : vector<16x8xf32>, vector<16x8xf32>, vector<16x16xf32> -> vector<16x16xf32>
    %cst_24 = arith.constant 0.353553385 : f32
    %45 = vector.broadcast %cst_24 : f32 to vector<16x16xf32>
    %46 = arith.mulf %44, %45 : vector<16x16xf32>
    %47 = arith.addf %46, %12 : vector<16x16xf32>
    %cst_25 = arith.constant dense<0xFF800000> : vector<16xf32>
    %48 = vector.multi_reduction <maximumf>, %47, %cst_25 [1] : vector<16x16xf32> to vector<16xf32>
    %49 = vector.shape_cast %48 : vector<16xf32> to vector<16x1xf32>
    %50 = vector.broadcast %49 : vector<16x1xf32> to vector<16x16xf32>
    %51 = arith.subf %47, %50 : vector<16x16xf32>
    %52 = math.exp %51 : vector<16x16xf32>
    %cst_26 = arith.constant dense<0.000000e+00> : vector<16xf32>
    %53 = vector.multi_reduction <add>, %52, %cst_26 [1] : vector<16x16xf32> to vector<16xf32>
    %54 = vector.shape_cast %53 : vector<16xf32> to vector<16x1xf32>
    %55 = tpu.reciprocal %54 {approx = true} : vector<16x1xf32> -> vector<16x1xf32>
    %56 = vector.broadcast %55 : vector<16x1xf32> to vector<16x16xf32>
    %57 = arith.mulf %52, %56 : vector<16x16xf32>
    %cst_27 = arith.constant dense<0.000000e+00> : vector<16x8xf32>
    %58 = tpu.matmul %57, %43, %cst_27 {dimension_numbers = #tpu.dot_dimension_numbers<[1], [0], [0], [1], [0, 0, 1, 1], [], []>} : vector<16x16xf32>, vector<16x8xf32>, vector<16x8xf32> -> vector<16x8xf32>
    %59 = vector.extract_strided_slice %9 {offsets = [8, 0], sizes = [8, 32], strides = [1, 1]} : vector<32x32xf32> to vector<8x32xf32>
    %cst_28 = arith.constant dense<0.000000e+00> : vector<16x32xf32>
    %60 = tpu.matmul %58, %59, %cst_28 {dimension_numbers = #tpu.dot_dimension_numbers<[1], [0], [0], [1], [0, 0, 1, 1], [], []>} : vector<16x8xf32>, vector<8x32xf32>, vector<16x32xf32> -> vector<16x32xf32>
    %61 = arith.addf %40, %60 : vector<16x32xf32>
    %62 = vector.extract_strided_slice %16 {offsets = [0, 16], sizes = [16, 8], strides = [1, 1]} : vector<16x32xf32> to vector<16x8xf32>
    %63 = vector.extract_strided_slice %17 {offsets = [0, 16], sizes = [16, 8], strides = [1, 1]} : vector<16x32xf32> to vector<16x8xf32>
    %64 = vector.extract_strided_slice %18 {offsets = [0, 16], sizes = [16, 8], strides = [1, 1]} : vector<16x32xf32> to vector<16x8xf32>
    %cst_29 = arith.constant dense<0.000000e+00> : vector<16x16xf32>
    %65 = tpu.matmul %62, %63, %cst_29 {dimension_numbers = #tpu.dot_dimension_numbers<[1], [1], [0], [0], [0, 0, 1, 0], [], []>} : vector<16x8xf32>, vector<16x8xf32>, vector<16x16xf32> -> vector<16x16xf32>
    %cst_30 = arith.constant 0.353553385 : f32
    %66 = vector.broadcast %cst_30 : f32 to vector<16x16xf32>
    %67 = arith.mulf %65, %66 : vector<16x16xf32>
    %68 = arith.addf %67, %12 : vector<16x16xf32>
    %cst_31 = arith.constant dense<0xFF800000> : vector<16xf32>
    %69 = vector.multi_reduction <maximumf>, %68, %cst_31 [1] : vector<16x16xf32> to vector<16xf32>
    %70 = vector.shape_cast %69 : vector<16xf32> to vector<16x1xf32>
    %71 = vector.broadcast %70 : vector<16x1xf32> to vector<16x16xf32>
    %72 = arith.subf %68, %71 : vector<16x16xf32>
    %73 = math.exp %72 : vector<16x16xf32>
    %cst_32 = arith.constant dense<0.000000e+00> : vector<16xf32>
    %74 = vector.multi_reduction <add>, %73, %cst_32 [1] : vector<16x16xf32> to vector<16xf32>
    %75 = vector.shape_cast %74 : vector<16xf32> to vector<16x1xf32>
    %76 = tpu.reciprocal %75 {approx = true} : vector<16x1xf32> -> vector<16x1xf32>
    %77 = vector.broadcast %76 : vector<16x1xf32> to vector<16x16xf32>
    %78 = arith.mulf %73, %77 : vector<16x16xf32>
    %cst_33 = arith.constant dense<0.000000e+00> : vector<16x8xf32>
    %79 = tpu.matmul %78, %64, %cst_33 {dimension_numbers = #tpu.dot_dimension_numbers<[1], [0], [0], [1], [0, 0, 1, 1], [], []>} : vector<16x16xf32>, vector<16x8xf32>, vector<16x8xf32> -> vector<16x8xf32>
    %80 = vector.extract_strided_slice %9 {offsets = [16, 0], sizes = [8, 32], strides = [1, 1]} : vector<32x32xf32> to vector<8x32xf32>
    %cst_34 = arith.constant dense<0.000000e+00> : vector<16x32xf32>
    %81 = tpu.matmul %79, %80, %cst_34 {dimension_numbers = #tpu.dot_dimension_numbers<[1], [0], [0], [1], [0, 0, 1, 1], [], []>} : vector<16x8xf32>, vector<8x32xf32>, vector<16x32xf32> -> vector<16x32xf32>
    %82 = arith.addf %61, %81 : vector<16x32xf32>
    %83 = vector.extract_strided_slice %16 {offsets = [0, 24], sizes = [16, 8], strides = [1, 1]} : vector<16x32xf32> to vector<16x8xf32>
    %84 = vector.extract_strided_slice %17 {offsets = [0, 24], sizes = [16, 8], strides = [1, 1]} : vector<16x32xf32> to vector<16x8xf32>
    %85 = vector.extract_strided_slice %18 {offsets = [0, 24], sizes = [16, 8], strides = [1, 1]} : vector<16x32xf32> to vector<16x8xf32>
    %cst_35 = arith.constant dense<0.000000e+00> : vector<16x16xf32>
    %86 = tpu.matmul %83, %84, %cst_35 {dimension_numbers = #tpu.dot_dimension_numbers<[1], [1], [0], [0], [0, 0, 1, 0], [], []>} : vector<16x8xf32>, vector<16x8xf32>, vector<16x16xf32> -> vector<16x16xf32>
    %cst_36 = arith.constant 0.353553385 : f32
    %87 = vector.broadcast %cst_36 : f32 to vector<16x16xf32>
    %88 = arith.mulf %86, %87 : vector<16x16xf32>
    %89 = arith.addf %88, %12 : vector<16x16xf32>
    %cst_37 = arith.constant dense<0xFF800000> : vector<16xf32>
    %90 = vector.multi_reduction <maximumf>, %89, %cst_37 [1] : vector<16x16xf32> to vector<16xf32>
    %91 = vector.shape_cast %90 : vector<16xf32> to vector<16x1xf32>
    %92 = vector.broadcast %91 : vector<16x1xf32> to vector<16x16xf32>
    %93 = arith.subf %89, %92 : vector<16x16xf32>
    %94 = math.exp %93 : vector<16x16xf32>
    %cst_38 = arith.constant dense<0.000000e+00> : vector<16xf32>
    %95 = vector.multi_reduction <add>, %94, %cst_38 [1] : vector<16x16xf32> to vector<16xf32>
    %96 = vector.shape_cast %95 : vector<16xf32> to vector<16x1xf32>
    %97 = tpu.reciprocal %96 {approx = true} : vector<16x1xf32> -> vector<16x1xf32>
    %98 = vector.broadcast %97 : vector<16x1xf32> to vector<16x16xf32>
    %99 = arith.mulf %94, %98 : vector<16x16xf32>
    %cst_39 = arith.constant dense<0.000000e+00> : vector<16x8xf32>
    %100 = tpu.matmul %99, %85, %cst_39 {dimension_numbers = #tpu.dot_dimension_numbers<[1], [0], [0], [1], [0, 0, 1, 1], [], []>} : vector<16x16xf32>, vector<16x8xf32>, vector<16x8xf32> -> vector<16x8xf32>
    %101 = vector.extract_strided_slice %9 {offsets = [24, 0], sizes = [8, 32], strides = [1, 1]} : vector<32x32xf32> to vector<8x32xf32>
    %cst_40 = arith.constant dense<0.000000e+00> : vector<16x32xf32>
    %102 = tpu.matmul %100, %101, %cst_40 {dimension_numbers = #tpu.dot_dimension_numbers<[1], [0], [0], [1], [0, 0, 1, 1], [], []>} : vector<16x8xf32>, vector<8x32xf32>, vector<16x32xf32> -> vector<16x32xf32>
    %103 = arith.addf %82, %102 : vector<16x32xf32>
    %104 = vector.broadcast %11 : vector<1x32xf32> to vector<16x32xf32>
    %105 = arith.addf %103, %104 : vector<16x32xf32>
    %106 = arith.addf %3, %105 : vector<16x32xf32>
    %c0_41 = arith.constant 0 : index
    %c0_42 = arith.constant 0 : index
    %c0_43 = arith.constant 0 : index
    %107 = vector.load %arg13[%c0_41, %c0_42, %c0_43] : memref<1x1x32xf32, #tpu.memory_space<vmem>>, vector<1x1x32xf32>
    %108 = vector.shape_cast %107 : vector<1x1x32xf32> to vector<1x32xf32>
    %c0_44 = arith.constant 0 : index
    %c0_45 = arith.constant 0 : index
    %c0_46 = arith.constant 0 : index
    %109 = vector.load %arg14[%c0_44, %c0_45, %c0_46] : memref<1x1x32xf32, #tpu.memory_space<vmem>>, vector<1x1x32xf32>
    %110 = vector.shape_cast %109 : vector<1x1x32xf32> to vector<1x32xf32>
    %cst_47 = arith.constant dense<0.000000e+00> : vector<16xf32>
    %111 = vector.multi_reduction <add>, %106, %cst_47 [1] : vector<16x32xf32> to vector<16xf32>
    %112 = vector.shape_cast %111 : vector<16xf32> to vector<16x1xf32>
    %cst_48 = arith.constant 3.200000e+01 : f32
    %113 = vector.broadcast %cst_48 : f32 to vector<16x1xf32>
    %114 = arith.divf %112, %113 : vector<16x1xf32>
    %115 = vector.broadcast %114 : vector<16x1xf32> to vector<16x32xf32>
    %116 = arith.subf %106, %115 : vector<16x32xf32>
    %117 = arith.mulf %116, %116 : vector<16x32xf32>
    %cst_49 = arith.constant dense<0.000000e+00> : vector<16xf32>
    %118 = vector.multi_reduction <add>, %117, %cst_49 [1] : vector<16x32xf32> to vector<16xf32>
    %119 = vector.shape_cast %118 : vector<16xf32> to vector<16x1xf32>
    %cst_50 = arith.constant 3.200000e+01 : f32
    %120 = vector.broadcast %cst_50 : f32 to vector<16x1xf32>
    %121 = arith.divf %119, %120 : vector<16x1xf32>
    %cst_51 = arith.constant 9.99999974E-6 : f32
    %122 = vector.broadcast %cst_51 : f32 to vector<16x1xf32>
    %123 = arith.addf %121, %122 : vector<16x1xf32>
    %124 = math.rsqrt %123 : vector<16x1xf32>
    %125 = vector.broadcast %124 : vector<16x1xf32> to vector<16x32xf32>
    %126 = arith.mulf %116, %125 : vector<16x32xf32>
    %127 = vector.broadcast %108 : vector<1x32xf32> to vector<16x32xf32>
    %128 = arith.mulf %126, %127 : vector<16x32xf32>
    %129 = vector.broadcast %110 : vector<1x32xf32> to vector<16x32xf32>
    %130 = arith.addf %128, %129 : vector<16x32xf32>
    %c0_52 = arith.constant 0 : index
    %c0_53 = arith.constant 0 : index
    %c0_54 = arith.constant 0 : index
    %131 = vector.load %arg9[%c0_52, %c0_53, %c0_54] : memref<1x32x64xf32, #tpu.memory_space<vmem>>, vector<1x32x64xf32>
    %132 = vector.shape_cast %131 : vector<1x32x64xf32> to vector<32x64xf32>
    %cst_55 = arith.constant dense<0.000000e+00> : vector<16x64xf32>
    %133 = tpu.matmul %130, %132, %cst_55 {dimension_numbers = #tpu.dot_dimension_numbers<[1], [0], [0], [1], [0, 0, 1, 1], [], []>} : vector<16x32xf32>, vector<32x64xf32>, vector<16x64xf32> -> vector<16x64xf32>
    %c0_56 = arith.constant 0 : index
    %c0_57 = arith.constant 0 : index
    %c0_58 = arith.constant 0 : index
    %134 = vector.load %arg10[%c0_56, %c0_57, %c0_58] : memref<1x1x64xf32, #tpu.memory_space<vmem>>, vector<1x1x64xf32>
    %135 = vector.shape_cast %134 : vector<1x1x64xf32> to vector<1x64xf32>
    %136 = vector.broadcast %135 : vector<1x64xf32> to vector<16x64xf32>
    %137 = arith.addf %133, %136 : vector<16x64xf32>
    %cst_59 = arith.constant 0.000000e+00 : f32
    %138 = vector.broadcast %cst_59 : f32 to vector<16x64xf32>
    %139 = arith.maximumf %137, %138 : vector<16x64xf32>
    %c0_60 = arith.constant 0 : index
    %c0_61 = arith.constant 0 : index
    %c0_62 = arith.constant 0 : index
    %140 = vector.load %arg11[%c0_60, %c0_61, %c0_62] : memref<1x64x32xf32, #tpu.memory_space<vmem>>, vector<1x64x32xf32>
    %141 = vector.shape_cast %140 : vector<1x64x32xf32> to vector<64x32xf32>
    %cst_63 = arith.constant dense<0.000000e+00> : vector<16x32xf32>
    %142 = tpu.matmul %139, %141, %cst_63 {dimension_numbers = #tpu.dot_dimension_numbers<[1], [0], [0], [1], [0, 0, 1, 1], [], []>} : vector<16x64xf32>, vector<64x32xf32>, vector<16x32xf32> -> vector<16x32xf32>
    %c0_64 = arith.constant 0 : index
    %c0_65 = arith.constant 0 : index
    %c0_66 = arith.constant 0 : index
    %143 = vector.load %arg12[%c0_64, %c0_65, %c0_66] : memref<1x1x32xf32, #tpu.memory_space<vmem>>, vector<1x1x32xf32>
    %144 = vector.shape_cast %143 : vector<1x1x32xf32> to vector<1x32xf32>
    %145 = vector.broadcast %144 : vector<1x32xf32> to vector<16x32xf32>
    %146 = arith.addf %142, %145 : vector<16x32xf32>
    %147 = arith.addf %130, %146 : vector<16x32xf32>
    %c0_67 = arith.constant 0 : index
    %c0_68 = arith.constant 0 : index
    %c0_69 = arith.constant 0 : index
    %148 = vector.load %arg15[%c0_67, %c0_68, %c0_69] : memref<1x1x32xf32, #tpu.memory_space<vmem>>, vector<1x1x32xf32>
    %149 = vector.shape_cast %148 : vector<1x1x32xf32> to vector<1x32xf32>
    %c0_70 = arith.constant 0 : index
    %c0_71 = arith.constant 0 : index
    %c0_72 = arith.constant 0 : index
    %150 = vector.load %arg16[%c0_70, %c0_71, %c0_72] : memref<1x1x32xf32, #tpu.memory_space<vmem>>, vector<1x1x32xf32>
    %151 = vector.shape_cast %150 : vector<1x1x32xf32> to vector<1x32xf32>
    %cst_73 = arith.constant dense<0.000000e+00> : vector<16xf32>
    %152 = vector.multi_reduction <add>, %147, %cst_73 [1] : vector<16x32xf32> to vector<16xf32>
    %153 = vector.shape_cast %152 : vector<16xf32> to vector<16x1xf32>
    %cst_74 = arith.constant 3.200000e+01 : f32
    %154 = vector.broadcast %cst_74 : f32 to vector<16x1xf32>
    %155 = arith.divf %153, %154 : vector<16x1xf32>
    %156 = vector.broadcast %155 : vector<16x1xf32> to vector<16x32xf32>
    %157 = arith.subf %147, %156 : vector<16x32xf32>
    %158 = arith.mulf %157, %157 : vector<16x32xf32>
    %cst_75 = arith.constant dense<0.000000e+00> : vector<16xf32>
    %159 = vector.multi_reduction <add>, %158, %cst_75 [1] : vector<16x32xf32> to vector<16xf32>
    %160 = vector.shape_cast %159 : vector<16xf32> to vector<16x1xf32>
    %cst_76 = arith.constant 3.200000e+01 : f32
    %161 = vector.broadcast %cst_76 : f32 to vector<16x1xf32>
    %162 = arith.divf %160, %161 : vector<16x1xf32>
    %cst_77 = arith.constant 9.99999974E-6 : f32
    %163 = vector.broadcast %cst_77 : f32 to vector<16x1xf32>
    %164 = arith.addf %162, %163 : vector<16x1xf32>
    %165 = math.rsqrt %164 : vector<16x1xf32>
    %166 = vector.broadcast %165 : vector<16x1xf32> to vector<16x32xf32>
    %167 = arith.mulf %157, %166 : vector<16x32xf32>
    %168 = vector.broadcast %149 : vector<1x32xf32> to vector<16x32xf32>
    %169 = arith.mulf %167, %168 : vector<16x32xf32>
    %170 = vector.broadcast %151 : vector<1x32xf32> to vector<16x32xf32>
    %171 = arith.addf %169, %170 : vector<16x32xf32>
    %c0_78 = arith.constant 0 : index
    %c0_79 = arith.constant 0 : index
    %172 = vector.load %arg20[%c0_78, %c0_79] : memref<16x32xf32, #tpu.memory_space<vmem>>, vector<16x32xf32>
    tpu.vector_store %arg20[%c0_78, %c0_79], %171 {strides = array<i32>} : memref<16x32xf32, #tpu.memory_space<vmem>>, vector<16x32xf32>,
    %c1_i32 = arith.constant 1 : i32
    %173 = arith.cmpi eq, %arg0, %c1_i32 : i32
    %174 = arith.extui %173 : i1 to i32
    %c0_i32_80 = arith.constant 0 : i32
    %175 = arith.cmpi ne, %174, %c0_i32_80 : i32
    scf.if %175 {
      %c0_81 = arith.constant 0 : index
      %c0_82 = arith.constant 0 : index
      %176 = vector.load %arg17[%c0_81, %c0_82] : memref<1x32xf32, #tpu.memory_space<vmem>>, vector<1x32xf32>
      %c0_83 = arith.constant 0 : index
      %c0_84 = arith.constant 0 : index
      %177 = vector.load %arg18[%c0_83, %c0_84] : memref<1x32xf32, #tpu.memory_space<vmem>>, vector<1x32xf32>
      %cst_85 = arith.constant dense<0.000000e+00> : vector<16xf32>
      %178 = vector.multi_reduction <add>, %171, %cst_85 [1] : vector<16x32xf32> to vector<16xf32>
      %179 = vector.shape_cast %178 : vector<16xf32> to vector<16x1xf32>
      %cst_86 = arith.constant 3.200000e+01 : f32
      %180 = vector.broadcast %cst_86 : f32 to vector<16x1xf32>
      %181 = arith.divf %179, %180 : vector<16x1xf32>
      %182 = vector.broadcast %181 : vector<16x1xf32> to vector<16x32xf32>
      %183 = arith.subf %171, %182 : vector<16x32xf32>
      %184 = arith.mulf %183, %183 : vector<16x32xf32>
      %cst_87 = arith.constant dense<0.000000e+00> : vector<16xf32>
      %185 = vector.multi_reduction <add>, %184, %cst_87 [1] : vector<16x32xf32> to vector<16xf32>
      %186 = vector.shape_cast %185 : vector<16xf32> to vector<16x1xf32>
      %cst_88 = arith.constant 3.200000e+01 : f32
      %187 = vector.broadcast %cst_88 : f32 to vector<16x1xf32>
      %188 = arith.divf %186, %187 : vector<16x1xf32>
      %cst_89 = arith.constant 9.99999974E-6 : f32
      %189 = vector.broadcast %cst_89 : f32 to vector<16x1xf32>
      %190 = arith.addf %188, %189 : vector<16x1xf32>
      %191 = math.rsqrt %190 : vector<16x1xf32>
      %192 = vector.broadcast %191 : vector<16x1xf32> to vector<16x32xf32>
      %193 = arith.mulf %183, %192 : vector<16x32xf32>
      %194 = vector.broadcast %176 : vector<1x32xf32> to vector<16x32xf32>
      %195 = arith.mulf %193, %194 : vector<16x32xf32>
      %196 = vector.broadcast %177 : vector<1x32xf32> to vector<16x32xf32>
      %197 = arith.addf %195, %196 : vector<16x32xf32>
      %c0_90 = arith.constant 0 : index
      %c0_91 = arith.constant 0 : index
      %198 = vector.load %arg19[%c0_90, %c0_91] : memref<16x32xf32, #tpu.memory_space<vmem>>, vector<16x32xf32>
      tpu.vector_store %arg19[%c0_90, %c0_91], %197 {strides = array<i32>} : memref<16x32xf32, #tpu.memory_space<vmem>>, vector<16x32xf32>,
    } else {
    }
    return
  }
  func.func @transform_0(%arg0: i32) -> (i32, i32) {
    %c0_i32 = arith.constant 0 : i32
    %c0_i32_0 = arith.constant 0 : i32
    %c0_i32_1 = arith.constant 0 : i32
    return %c0_i32, %c0_i32_0 : i32, i32
  }
  func.func @transform_1(%arg0: i32) -> (i32, i32) {
    %c0_i32 = arith.constant 0 : i32
    %c0_i32_0 = arith.constant 0 : i32
    %c0_i32_1 = arith.constant 0 : i32
    return %c0_i32, %c0_i32_0 : i32, i32
  }
  func.func @transform_2(%arg0: i32) -> (i32, i32) {
    %c0_i32 = arith.constant 0 : i32
    %c0_i32_0 = arith.constant 0 : i32
    %c0_i32_1 = arith.constant 0 : i32
    return %c0_i32, %c0_i32_0 : i32, i32
  }
  func.func @transform_3(%arg0: i32) -> (i32, i32) {
    %c0_i32 = arith.constant 0 : i32
    %c0_i32_0 = arith.constant 0 : i32
    %c0_i32_1 = arith.constant 0 : i32
    return %c0_i32, %c0_i32_0 : i32, i32
  }
  func.func @transform_4(%arg0: i32) -> (i32, i32, i32) {
    %c0_i32 = arith.constant 0 : i32
    %c0_i32_0 = arith.constant 0 : i32
    %c0_i32_1 = arith.constant 0 : i32
    return %arg0, %c0_i32, %c0_i32_0 : i32, i32, i32
  }
  func.func @transform_5(%arg0: i32) -> (i32, i32, i32) {
    %c0_i32 = arith.constant 0 : i32
    %c0_i32_0 = arith.constant 0 : i32
    %c0_i32_1 = arith.constant 0 : i32
    return %arg0, %c0_i32, %c0_i32_0 : i32, i32, i32
  }
  func.func @transform_6(%arg0: i32) -> (i32, i32, i32) {
    %c0_i32 = arith.constant 0 : i32
    %c0_i32_0 = arith.constant 0 : i32
    %c0_i32_1 = arith.constant 0 : i32
    return %arg0, %c0_i32, %c0_i32_0 : i32, i32, i32
  }
  func.func @transform_7(%arg0: i32) -> (i32, i32, i32) {
    %c0_i32 = arith.constant 0 : i32
    %c0_i32_0 = arith.constant 0 : i32
    %c0_i32_1 = arith.constant 0 : i32
    return %arg0, %c0_i32, %c0_i32_0 : i32, i32, i32
  }
  func.func @transform_8(%arg0: i32) -> (i32, i32, i32) {
    %c0_i32 = arith.constant 0 : i32
    %c0_i32_0 = arith.constant 0 : i32
    %c0_i32_1 = arith.constant 0 : i32
    return %arg0, %c0_i32, %c0_i32_0 : i32, i32, i32
  }
  func.func @transform_9(%arg0: i32) -> (i32, i32, i32) {
    %c0_i32 = arith.constant 0 : i32
    %c0_i32_0 = arith.constant 0 : i32
    %c0_i32_1 = arith.constant 0 : i32
    return %arg0, %c0_i32, %c0_i32_0 : i32, i32, i32
  }
  func.func @transform_10(%arg0: i32) -> (i32, i32, i32) {
    %c0_i32 = arith.constant 0 : i32
    %c0_i32_0 = arith.constant 0 : i32
    %c0_i32_1 = arith.constant 0 : i32
    return %arg0, %c0_i32, %c0_i32_0 : i32, i32, i32
  }
  func.func @transform_11(%arg0: i32) -> (i32, i32, i32) {
    %c0_i32 = arith.constant 0 : i32
    %c0_i32_0 = arith.constant 0 : i32
    %c0_i32_1 = arith.constant 0 : i32
    return %arg0, %c0_i32, %c0_i32_0 : i32, i32, i32
  }
  func.func @transform_12(%arg0: i32) -> (i32, i32, i32) {
    %c0_i32 = arith.constant 0 : i32
    %c0_i32_0 = arith.constant 0 : i32
    %c0_i32_1 = arith.constant 0 : i32
    return %arg0, %c0_i32, %c0_i32_0 : i32, i32, i32
  }
  func.func @transform_13(%arg0: i32) -> (i32, i32, i32) {
    %c0_i32 = arith.constant 0 : i32
    %c0_i32_0 = arith.constant 0 : i32
    %c0_i32_1 = arith.constant 0 : i32
    return %arg0, %c0_i32, %c0_i32_0 : i32, i32, i32
  }
  func.func @transform_14(%arg0: i32) -> (i32, i32, i32) {
    %c0_i32 = arith.constant 0 : i32
    %c0_i32_0 = arith.constant 0 : i32
    %c0_i32_1 = arith.constant 0 : i32
    return %arg0, %c0_i32, %c0_i32_0 : i32, i32, i32
  }
  func.func @transform_15(%arg0: i32) -> (i32, i32, i32) {
    %c0_i32 = arith.constant 0 : i32
    %c0_i32_0 = arith.constant 0 : i32
    %c0_i32_1 = arith.constant 0 : i32
    return %arg0, %c0_i32, %c0_i32_0 : i32, i32, i32
  }
  func.func @transform_16(%arg0: i32) -> (i32, i32) {
    %c0_i32 = arith.constant 0 : i32
    %c0_i32_0 = arith.constant 0 : i32
    %c0_i32_1 = arith.constant 0 : i32
    return %c0_i32, %c0_i32_0 : i32, i32
  }
  func.func @transform_17(%arg0: i32) -> (i32, i32) {
    %c0_i32 = arith.constant 0 : i32
    %c0_i32_0 = arith.constant 0 : i32
    %c0_i32_1 = arith.constant 0 : i32
    return %c0_i32, %c0_i32_0 : i32, i32
  }
  func.func @transform_18(%arg0: i32) -> (i32, i32) {
    %c0_i32 = arith.constant 0 : i32
    %c0_i32_0 = arith.constant 0 : i32
    %c0_i32_1 = arith.constant 0 : i32
    return %c0_i32, %c0_i32_0 : i32, i32
  }
}

</mosaic_0001>

<bundles_post_ra>
// kernel: modality_encoder_decoder_forward.2
= control target key start
LH: loop header
LB: loop body
LE: loop exit
PB: predicated region body
PF: predicated region fallthrough
CT: control target
= control target key end

     0   :  { %s3000_s27 = smov 0   ;;  %s3301_s0 = inlined_call_operand.vmem [shape: f32[16,12], index: 0, kind: input, shape index: {}]   ;;  %s3302_s1 = inlined_call_operand.vmem [shape: f32[16,32], index: 1, kind: input, shape index: {}]   ;;  %s3303_s2 = inlined_call_operand.vmem [shape: f32[12,32], index: 2, kind: input, shape index: {}]   ;;  %s3304_s3 = inlined_call_operand.vmem [shape: f32[16,16], index: 3, kind: input, shape index: {}]   ;;  %s3305_s4 = inlined_call_operand.vmem [shape: f32[2,32,96], index: 4, kind: input, shape index: {}]   ;;  %s3306_s5 = inlined_call_operand.vmem [shape: f32[2,1,96], index: 5, kind: input, shape index: {}]   ;;  %s3307_s6 = inlined_call_operand.vmem [shape: f32[2,32,32], index: 6, kind: input, shape index: {}]   ;;  %s3308_s7 = inlined_call_operand.vmem [shape: f32[2,1,32], index: 7, kind: input, shape index: {}]   ;;  %s3309_s8 = inlined_call_operand.vmem [shape: f32[2,32,64], index: 8, kind: input, shape index: {}]   ;;  %s3310_s9 = inlined_call_operand.vmem [shape: f32[2,1,64], index: 9, kind: input, shape index: {}]   ;;  %s3311_s10 = inlined_call_operand.vmem [shape: f32[2,64,32], index: 10, kind: input, shape index: {}]   ;;  %s3312_s11 = inlined_call_operand.vmem [shape: f32[2,1,32], index: 11, kind: input, shape index: {}]   ;;  %s3313_s12 = inlined_call_operand.vmem [shape: f32[2,1,32], index: 12, kind: input, shape index: {}]   ;;  %s3314_s13 = inlined_call_operand.vmem [shape: f32[2,1,32], index: 13, kind: input, shape index: {}]   ;;  %s3315_s14 = inlined_call_operand.vmem [shape: f32[2,1,32], index: 14, kind: input, shape index: {}]   ;;  %s3316_s15 = inlined_call_operand.vmem [shape: f32[2,1,32], index: 15, kind: input, shape index: {}]   ;;  %s3317_s16 = inlined_call_operand.vmem [shape: f32[1,32], index: 16, kind: input, shape index: {}]   ;;  %s3318_s17 = inlined_call_operand.vmem [shape: f32[1,32], index: 17, kind: input, shape index: {}]   ;;  %s3319_s18 = inlined_call_operand.vmem [shape: f32[16,32], index: 18, kind: output, shape index: {}]  }
   0x1   :  { %3325 = sst [smem:[#allocation4_spill]] %s3301_s0 }
   0x2   :  { %3326 = sst [smem:[#allocation5_spill]] %s3302_s1 }
   0x3   :  { %3327 = sst [smem:[#allocation6_spill]] %s3303_s2 }
   0x4   :  { %3328 = sst [smem:[#allocation7_spill]] %s3305_s4 }
   0x5   :  { %3329 = sst [smem:[#allocation8_spill]] %s3307_s6 }
   0x6   :  { %3330 = sst [smem:[#allocation9_spill]] %s3309_s8 }
   0x7   :  { %3331 = sst [smem:[#allocation10_spill]] %s3310_s9 }
   0x8   :  { %3332 = sst [smem:[#allocation11_spill]] %s3317_s16 }
   0x9   :  { %3333 = sst [smem:[#allocation12_spill]] %s3318_s17 }
   0xa   :  { %3334 = sst [smem:[#allocation13_spill]] %s3319_s18 }
   0xb LB: > { %3335 = sst [smem:[#allocation3_spill]] %s2892_s27  ;;  %s3006_s28 = sadd.s32 4294967295, %s2892_s27   ;;  %s2892_s27 = sphi %s3000_s27, %s28_s27  }
   0xc   : > { %p2561_p0 = scmp.ge.s32.totalorder %s2892_s27, 1  ;;  %p601_p1 = scmp.lt.s32.totalorder %s2892_s27, 3 }
   0xe   : > { %p602_p2 = pnand %p2561_p0, %p601_p1 }
   0xf   : > { %p689_p3 = scmp.lt.s32.totalorder (!%p602_p2), %s3006_s28, 1  ;;  %s3336_s4 = sld [smem:[#allocation7_spill]] (!%p602_p2) }
  0x10   : > { %605 = sbr.rel (%p602_p2) target bundleno = 3786 (0xeca), region = 92  ;;  %s3337_s6 = sld [smem:[#allocation8_spill]] (!%p602_p2) }
  0x11   : > { %s3338_s8 = sld [smem:[#allocation9_spill]] (!%p602_p2)  ;;  %p2570_p4 = scmp.ne.s32.totalorder (!%p602_p2), %s3006_s28, 0 }
  0x15   : > { %s3012_s29 = scalar_select %p689_p3, %s3006_s28, 1 }
  0x16   : > { %s3340_s23 = sld [smem:[#allocation6_spill]] (!%p2570_p4) }
  0x17   : > { %s2625_s30 = sshll.u32 %s3012_s29, 5  ;;  %s2628_s21 = sshll.u32 %s3012_s29, 6 }
  0x18   : > { %s3022_s22 = scalar_lea.vmem %s3336_s4, %s2625_s30  ;;  %s3027_s24 = scalar_lea.vmem %s3337_s6, %s2625_s30 }
  0x19   : > { %s3036_s16 = scalar_lea.vmem %s3338_s8, %s2625_s30  ;;  %s3046_s2 = scalar_lea.vmem %s3311_s10, %s2628_s21 }
  0x1a   : > { %s720_s25 = scalar_lea.vmem %s3312_s11, %s3012_s29  ;;  %s723_s17 = scalar_lea.vmem %s3313_s12, %s3012_s29 }
  0x1b   : > { %s726_s8 = scalar_lea.vmem %s3314_s13, %s3012_s29  ;;  %s729_s20 = scalar_lea.vmem %s3315_s14, %s3012_s29 }
  0x1c   : > { %s732_s1 = scalar_lea.vmem %s3316_s15, %s3012_s29  ;;  %736 = sbr.rel (%p2570_p4) target bundleno = 236 (0xec), region = 96 }
  0x1d   : > { %s3341_s0 = sld [smem:[#allocation4_spill]] (!%p2570_p4) }
  0x1e   : > { %s3342_s21 = sld [smem:[#allocation5_spill]] (!%p2570_p4) }
  0x21   : > { %v740_v0 = vld [vmem:[%s3340_s23 + $0x8] sm:$0xf]  ;;  %vm750_vm0 = vcmask 1043456   ;;  %v739_v1 = vld [vmem:[%s3340_s23] sm:$0xff]  ;;  %vm743_vm1 = vcmask 97280   ;;  %vm829_vm2 = vcmask 261120  }
  0x22   : > { %2699 = vmatprep.subr.msk.mxu0 %vm750_vm0, %v740_v0 }
  0x23   : > { %v737_v2 = vld [vmem:[%s3341_s0] sm:$0xff]  ;;  %2700 = vmatpush3.msk.msra.mxu0 %vm750_vm0, %v740_v0  ;;  %v738_v3 = vld [vmem:[%s3341_s0 + $0x8] sm:$0xff] }
  0x24   : > { %2703 = vmatprep.mubr.msk.f32.mxu0 %vm743_vm1, %v737_v2  ;;  %2701 = vmatprep.subr.mxu0 %v739_v1  ;;  %v742_v4 = vld [vmem:[%s3342_s21 + $0x8] sm:$0xff]  ;;  %v741_v6 = vld [vmem:[%s3342_s21] sm:$0xff] }
  0x25   : > { %2702 = vmatpush3.msra.mxu0 %v739_v1 }
  0x26   : > { %2704 = vmatmul.mubr.msk.f32.vlgmr.msra.gmra.mxu0 %vm743_vm1, %v738_v3 }
  0xe6   : > { %v2705_v5 = vpop.f32.mrf.mxu0 }
  0xe7   : > { %v826_v7 = vadd.f32 %v2705_v5, %v742_v4 }
  0xe8   : > { %v820_v8 = vpop.f32.mrf.mxu0 }
  0xe9   : > { %831 = vst.msk [vmem:[#allocation2 + $0x8] sm:$0xff] %vm829_vm2, %v826_v7  ;;  %v821_v9 = vadd.f32 %v820_v8, %v741_v6 }
  0xeb   : > { %830 = vst.msk [vmem:[#allocation2] sm:$0xff] %vm829_vm2, %v821_v9 }
  0xec PF: > { %v837_v10 = vld [vmem:[%s3022_s22 + $0x18] sm:$0xff]  ;;  %v836_v11 = vld [vmem:[%s3022_s22 + $0x10] sm:$0xff]  ;;  %vm852_vm3 = vcmask 261120   ;;  %v835_v13 = vld [vmem:[%s3022_s22 + $0x8] sm:$0xff]  ;;  %s3343_s9 = scalar_lea.vmem %s3306_s5, %s3012_s29  ;;  %vm940_vm4 = vcmask 64512   ;;  %s2895_s19 = smov 96  }
  0xed   : > { %2706 = vmatprep.subr.mxu0 %v837_v10  ;;  %v834_v14 = vld [vmem:[%s3022_s22] sm:$0xff]  ;;  %s2894_s22 = smov 88   ;;  %s2896_s4 = smov 120   ;;  %v3131_v28 = vld [vmem:[%s3304_s3 + $0x8] sm:$0xff]  ;;  %vm1028_vm5 = vcmask 130048   ;;  %vm2242_vm6 = vcmask 523264  }
  0xee   : > { %2707 = vmatpush3.msra.mxu0 %v837_v10  ;;  %v2574_v16 = vld [vmem:[%s3343_s9] ss:$0 sm:$0xff]  ;;  %s2897_s30 = smov 64   ;;  %s2898_s9 = smov 56  }
  0xef   : > { %2708 = vmatprep.subr.mxu0 %v836_v11  ;;  %v3136_v31 = vld [vmem:[%s3304_s3] sm:$0xff]  ;;  %s2902_s6 = smov 104   ;;  %s2903_s27 = smov 48  }
  0xf0   : > { %2709 = vmatpush3.msra.mxu0 %v836_v11  ;;  %v3095_v15 = vld [vmem:[#allocation2 + $0x8] sm:$0xff]  ;;  %s2904_s26 = smov 40   ;;  %p2620_p5 = scmp.ne.s32.totalorder %s3006_s28, 1 }
  0xf1   : > { %2710 = vmatprep.subr.mxu0 %v835_v13 }
  0xf2   : > { %v3089_v12 = vld [vmem:[#allocation2] sm:$0xff]  ;;  %2711 = vmatpush3.msra.mxu0 %v835_v13 }
  0xf3   : > { %2714 = vmatprep.mubr.msk.f32.mxu0 %vm852_vm3, %v3089_v12  ;;  %2712 = vmatprep.subr.mxu0 %v834_v14 }
  0xf4   : > { %2713 = vmatpush3.msra.mxu0 %v834_v14 }
  0xf5   : > { %2715 = vmatmul.mubr.msk.f32.vlgmr.msra.gmra.mxu0 %vm852_vm3, %v3095_v15 }
 0x1b5   : > { %v2716_v17 = vpop.f32.mrf.mxu0 }
 0x1b6   : > { %v3104_v18 = vadd.f32 %v2716_v17, %v2574_v16 }
 0x1b7   : > { %v925_v19 = vpop.f32.mrf.mxu0 }
 0x1b8   : > { %v3106_v20 = vadd.f32 %v2574_v16, %v925_v19  ;;  %1144 = vrot.lane.b32.xlu1 %v3104_v18, %s2894_s22  ;;  %938 = vrot.lane.b32.xlu0 %v3104_v18, %s2895_s19 }
 0x1ba   : > { %2721 = vmatprep.mubr.msk.f32.mxu1 %vm940_vm4, %v3106_v20 }
 0x1bc   : > { %1142 = vrot.lane.b32.xlu1 %v3106_v20, %s2894_s22  ;;  %936 = vrot.lane.b32.xlu0 %v3106_v20, %s2895_s19  ;;  %s2899_s22 = smov 80   ;;  %s2900_s19 = smov 112  }
 0x1c0   : > { %1140 = vrot.lane.b32.xlu1 %v3104_v18, %s2896_s4  ;;  %1138 = vrot.lane.b32.xlu0 %v3106_v20, %s2896_s4  ;;  %s2901_s4 = smov 72  }
 0x22a   : > { %v939_v21 = vpop.permute.xlu0 %938  ;;  %v1145_v22 = vpop.permute.xlu1 %1144 }
 0x22b   : > { %2717 = vmatprep.subr.msk.mxu1 %vm940_vm4, %v939_v21 }
 0x22c   : > { %2718 = vmatpush3.xpose.msk.msra.mxu1 %vm940_vm4, %v939_v21  ;;  %v840_v21 = vld [vmem:[%s3027_s24 + $0x8] sm:$0xff] }
 0x22e   : > { %v937_v23 = vpop.permute.xlu0 %936  ;;  %v1143_v25 = vpop.permute.xlu1 %1142 }
 0x22f   : > { %2719 = vmatprep.subr.msk.mxu1 %vm940_vm4, %v937_v23 }
 0x230   : > { %2720 = vmatpush3.xpose.msk.msra.mxu1 %vm940_vm4, %v937_v23 }
 0x231   : > { %2731 = vmatprep.subr.msk.mxu1 %vm940_vm4, %v1145_v22 }
 0x232   : > { %v1139_v24 = vpop.permute.xlu0 %1138  ;;  %v1141_v26 = vpop.permute.xlu1 %1140 }
 0x233   : > { %2722 = vmatmul.mubr.msk.f32.vlgmr.msra.gmra.mxu1 %vm940_vm4, %v3104_v18 }
 0x234   : > { %2732 = vmatpush3.xpose.msk.msra.mxu1 %vm940_vm4, %v1145_v22  ;;  %2735 = vmatprep.mubr.msk.f32.mxu1 %vm940_vm4, %v1139_v24  ;;  %v839_v22 = vld [vmem:[%s3027_s24] sm:$0xff] }
 0x235   : > { %2733 = vmatprep.subr.msk.mxu1 %vm940_vm4, %v1143_v25 }
 0x238   : > { %2734 = vmatpush3.xpose.msk.msra.mxu1 %vm940_vm4, %v1143_v25 }
 0x23b   : > { %2736 = vmatmul.mubr.msk.f32.vlgmr.msra.gmra.mxu1 %vm940_vm4, %v1141_v26 }
 0x2f3   : > { %v2723_v27 = vpop.f32.mrf.mxu1 }
 0x2f4   : > { %v1025_v29 = vmul.f32 0.35355338, %v2723_v27 }
 0x2f5   : > { %v1015_v30 = vpop.f32.mrf.mxu1 }
 0x2f6   : > { %v1024_v32 = vmul.f32 0.35355338, %v1015_v30  ;;  %v1027_v33 = vadd.f32 %v1025_v29, %v3131_v28 }
 0x2f8   : > { %v1032_v34 = vsel %vm1028_vm5, %v1027_v33, -inf  ;;  %v1026_v35 = vadd.f32 %v1024_v32, %v3136_v31 }
 0x2f9   : > { %1033 = vmax.xlane.f32.xlu1 %v1032_v34 }
 0x2fa   : > { %v1029_v36 = vsel %vm1028_vm5, %v1026_v35, -inf }
 0x2fb   : > { %v2737_v37 = vpop.f32.mrf.mxu1  ;;  %1030 = vmax.xlane.f32.xlu0 %v1029_v36 }
 0x2fc   : > { %v1230_v39 = vmul.f32 0.35355338, %v2737_v37 }
 0x2fd   : > { %v1220_v38 = vpop.f32.mrf.mxu1 }
 0x2fe   : > { %v1229_v40 = vmul.f32 0.35355338, %v1220_v38  ;;  %v1232_v43 = vadd.f32 %v1230_v39, %v3131_v28 }
 0x300   : > { %v1231_v41 = vadd.f32 %v1229_v40, %v3136_v31  ;;  %v1236_v44 = vsel %vm1028_vm5, %v1232_v43, -inf }
 0x302   : > { %v1233_v42 = vsel %vm1028_vm5, %v1231_v41, -inf }
 0x303   : > { %1234 = vmax.xlane.f32.xlu0 %v1233_v42 }
 0x307   : > { %1237 = vmax.xlane.f32.xlu0 %v1236_v44 }
 0x30a   : > { %1053 = vrot.lane.b32.xlu1 %v3104_v18, %s2897_s30 }
 0x382   : > { %v1034_v45 = vpop.xlane.xlu1 %1033 }
 0x383   : > { %v1036_v46 = vsub.f32 %v1027_v33, %v1034_v45 }
 0x384   : > { %v1031_v47 = vpop.xlane.xlu0 %1030 }
 0x385   : > { %v1039_v48 = vmul.f32 1.442695, %v1036_v46  ;;  %v1035_v49 = vsub.f32 %v1026_v35, %v1031_v47 }
 0x386   : > { %v1054_v50 = vpop.permute.xlu1 %1053 }
 0x387   : > { %2842 = vpow2.f32 %v1039_v48  ;;  %v1037_v51 = vmul.f32 1.442695, %v1035_v49  ;;  %2724 = vmatprep.subr.mxu0 %v1054_v50 }
 0x388   : > { %2725 = vmatpush3.msra.mxu0 %v1054_v50 }
 0x389   : > { %2844 = vpow2.f32 %v1037_v51 }
 0x38c   : > { %v1235_v52 = vpop.xlane.xlu0 %1234 }
 0x38d   : > { %v1239_v62 = vsub.f32 %v1231_v41, %v1235_v52 }
 0x38f   : > { %v1241_v63 = vmul.f32 1.442695, %v1239_v62 }
 0x390   : > { %v1238_v53 = vpop.xlane.xlu0 %1237 }
 0x391   : > { %v1240_v54 = vsub.f32 %v1232_v43, %v1238_v53 }
 0x393   : > { %v1243_v55 = vmul.f32 1.442695, %v1240_v54 }
 0x394   : > { %v2843_v56 = vpop.eup %2842 }
 0x395   : > { %2846 = vpow2.f32 %v1243_v55  ;;  %v1044_v57 = vsel %vm1028_vm5, %v2843_v56, 0.0 }
 0x396   : > { %v2845_v58 = vpop.eup %2844  ;;  %1045 = vadd.xlane.f32.xlu0 %v1044_v57  ;;  %2848 = vpow2.f32 %v1241_v63 }
 0x397   : > { %v1041_v59 = vsel %vm1028_vm5, %v2845_v58, 0.0 }
 0x398   : > { %1042 = vadd.xlane.f32.xlu1 %v1041_v59 }
 0x3a2   : > { %v2847_v60 = vpop.eup %2846 }
 0x3a3   : > { %v1248_v61 = vsel %vm1028_vm5, %v2847_v60, 0.0  ;;  %v2849_v0 = vpop.eup %2848 }
 0x3a4   : > { %1249 = vadd.xlane.f32.xlu0 %v1248_v61  ;;  %v1245_v1 = vsel %vm1028_vm5, %v2849_v0, 0.0 }
 0x3a9   : > { %1257 = vrot.lane.b32.xlu1 %v3104_v18, %s2898_s9 }
 0x3ba   : > { %1051 = vrot.lane.b32.xlu0 %v3106_v20, %s2897_s30 }
 0x3be   : > { %1510 = vrot.lane.b32.xlu0 %v3104_v18, %s2899_s22 }
 0x3c2   : > { %1504 = vrot.lane.b32.xlu0 %v3106_v20, %s2900_s19 }
 0x3c6   : > { %1797 = vrot.lane.b32.xlu0 %v3104_v18, %s2901_s4 }
 0x3ca   : > { %1791 = vrot.lane.b32.xlu0 %v3106_v20, %s2902_s6 }
 0x3cd   : > { %1246 = vadd.xlane.f32.xlu1 %v1245_v1 }
 0x3de   : > { %1255 = vrot.lane.b32.xlu1 %v3106_v20, %s2898_s9  ;;  %s3344_s9 = scalar_lea.vmem %s3308_s7, %s3012_s29 }
 0x3e2   : > { %1508 = vrot.lane.b32.xlu1 %v3106_v20, %s2899_s22 }
 0x3e6   : > { %1506 = vrot.lane.b32.xlu1 %v3104_v18, %s2900_s19  ;;  %s3349_s19 = sld [smem:[#allocation13_spill]] (!%p2620_p5) }
 0x3ea   : > { %1795 = vrot.lane.b32.xlu1 %v3106_v20, %s2901_s4  ;;  %s3345_s4 = sld [smem:[#allocation10_spill]] }
 0x3ee   : > { %1793 = vrot.lane.b32.xlu1 %v3104_v18, %s2902_s6 }
 0x3f0   : > { %s3346_s6 = scalar_lea.vmem %s3345_s4, %s3012_s29 }
 0x41f   : > { %v1046_v2 = vpop.xlane.xlu0 %1045 }
 0x420   : > { %2850 = vrcp.f32 %v1046_v2 }
 0x421   : > { %v1043_v3 = vpop.xlane.xlu1 %1042 }
 0x422   : > { %2852 = vrcp.f32 %v1043_v3 }
 0x425   : > { %v1258_v10 = vpop.permute.xlu1 %1257 }
 0x42d   : > { %v1250_v4 = vpop.xlane.xlu0 %1249  ;;  %v2851_v5 = vpop.eup %2850 }
 0x42e   : > { %v1050_v9 = vmul.f32 %v2851_v5, %v2843_v56  ;;  %2854 = vrcp.f32 %v1250_v4 }
 0x42f   : > { %v2853_v6 = vpop.eup %2852 }
 0x430   : > { %v1049_v7 = vmul.f32 %v2853_v6, %v2845_v58 }
 0x431   : > { %v1052_v8 = vpop.permute.xlu0 %1051 }
 0x432   : > { %2726 = vmatprep.subr.mxu0 %v1052_v8  ;;  %2728 = vmatprep.mubr.msk.f32.mxu0 %vm1028_vm5, %v1049_v7 }
 0x433   : > { %2727 = vmatpush3.msra.mxu0 %v1052_v8 }
 0x434   : > { %2729 = vmatmul.mubr.msk.f32.vlgmr.msra.gmra.mxu0 %vm1028_vm5, %v1050_v9  ;;  %2738 = vmatprep.subr.mxu0 %v1258_v10 }
 0x435   : > { %2739 = vmatpush3.msra.mxu0 %v1258_v10  ;;  %v1511_v24 = vpop.permute.xlu0 %1510 }
 0x439   : > { %v1505_v29 = vpop.permute.xlu0 %1504 }
 0x43b   : > { %v2855_v14 = vpop.eup %2854 }
 0x43c   : > { %v1254_v19 = vmul.f32 %v2855_v14, %v2847_v60  ;;  %v841_v14 = vld [vmem:[%s3027_s24 + $0x10] sm:$0xff] }
 0x43d   : > { %v1798_v32 = vpop.permute.xlu0 %1797 }
 0x441   : > { %v1792_v34 = vpop.permute.xlu0 %1791 }
 0x456   : > { %v1247_v11 = vpop.xlane.xlu1 %1246 }
 0x457   : > { %2856 = vrcp.f32 %v1247_v11 }
 0x45a   : > { %v1256_v13 = vpop.permute.xlu1 %1255 }
 0x45b   : > { %2740 = vmatprep.subr.mxu0 %v1256_v13 }
 0x45c   : > { %2741 = vmatpush3.msra.mxu0 %v1256_v13 }
 0x45d   : > { %2745 = vmatprep.subr.mxu0 %v840_v21 }
 0x45e   : > { %v1509_v30 = vpop.permute.xlu1 %1508 }
 0x462   : > { %v1507_v33 = vpop.permute.xlu1 %1506 }
 0x464   : > { %v2857_v16 = vpop.eup %2856 }
 0x465   : > { %v1253_v17 = vmul.f32 %v2857_v16, %v2849_v0 }
 0x466   : > { %v1796_v35 = vpop.permute.xlu1 %1795 }
 0x467   : > { %2742 = vmatprep.mubr.msk.f32.mxu0 %vm1028_vm5, %v1253_v17 }
 0x468   : > { %2743 = vmatmul.mubr.msk.f32.vlgmr.msra.gmra.mxu0 %vm1028_vm5, %v1254_v19 }
 0x469   : > { %2746 = vmatpush3.msra.mxu0 %v840_v21 }
 0x46a   : > { %2750 = vmatprep.subr.mxu0 %v839_v22  ;;  %v1794_v36 = vpop.permute.xlu1 %1793 }
 0x4f4   : > { %v2730_v23 = vpop.f32.mrf.mxu0 }
 0x4f6   : > { %v1129_v25 = vpop.f32.mrf.mxu0 }
 0x528   : > { %v2744_v26 = vpop.f32.mrf.mxu0 }
 0x52a   : > { %v1333_v27 = vpop.f32.mrf.mxu0 }
 0x52b   : > { %2747 = vmatprep.mubr.msk.f32.mxu0 %vm940_vm4, %v1333_v27 }
 0x52c   : > { %2748 = vmatmul.mubr.msk.f32.vlgmr.msra.gmra.mxu0 %vm940_vm4, %v2744_v26 }
 0x52d   : > { %2751 = vmatpush3.msra.mxu0 %v839_v22  ;;  %2752 = vmatprep.mubr.msk.f32.mxu0 %vm940_vm4, %v1129_v25 }
 0x52e   : > { %2755 = vmatprep.subr.msk.mxu0 %vm940_vm4, %v1511_v24 }
 0x530   : > { %2753 = vmatmul.mubr.msk.f32.vlgmr.msra.gmra.mxu0 %vm940_vm4, %v2730_v23 }
 0x531   : > { %2756 = vmatpush3.xpose.msk.msra.mxu0 %vm940_vm4, %v1511_v24  ;;  %2759 = vmatprep.mubr.msk.f32.mxu0 %vm940_vm4, %v1505_v29 }
 0x532   : > { %2757 = vmatprep.subr.msk.mxu0 %vm940_vm4, %v1509_v30 }
 0x535   : > { %2758 = vmatpush3.xpose.msk.msra.mxu0 %vm940_vm4, %v1509_v30 }
 0x536   : > { %2774 = vmatprep.subr.msk.mxu0 %vm940_vm4, %v1798_v32 }
 0x538   : > { %2760 = vmatmul.mubr.msk.f32.vlgmr.msra.gmra.mxu0 %vm940_vm4, %v1507_v33 }
 0x539   : > { %2775 = vmatpush3.xpose.msk.msra.mxu0 %vm940_vm4, %v1798_v32  ;;  %2778 = vmatprep.mubr.msk.f32.mxu0 %vm940_vm4, %v1792_v34 }
 0x53a   : > { %2776 = vmatprep.subr.msk.mxu0 %vm940_vm4, %v1796_v35 }
 0x53d   : > { %2777 = vmatpush3.xpose.msk.msra.mxu0 %vm940_vm4, %v1796_v35 }
 0x540   : > { %2779 = vmatmul.mubr.msk.f32.vlgmr.msra.gmra.mxu0 %vm940_vm4, %v1794_v36  ;;  %v842_v36 = vld [vmem:[%s3027_s24 + $0x18] sm:$0xff] }
 0x5ec   : > { %v2749_v37 = vpop.f32.mrf.mxu0 }
 0x5ee   : > { %v1414_v38 = vpop.f32.mrf.mxu0 }
 0x5f0   : > { %v2754_v39 = vpop.f32.mrf.mxu0 }
 0x5f1   : > { %v3186_v40 = vadd.f32 %v2754_v39, %v2749_v37 }
 0x5f2   : > { %v1495_v41 = vpop.f32.mrf.mxu0 }
 0x5f3   : > { %v3188_v42 = vadd.f32 %v1495_v41, %v1414_v38 }
 0x5f8   : > { %v2761_v43 = vpop.f32.mrf.mxu0 }
 0x5f9   : > { %v1596_v44 = vmul.f32 0.35355338, %v2761_v43 }
 0x5fa   : > { %v1586_v45 = vpop.f32.mrf.mxu0 }
 0x5fb   : > { %v1595_v46 = vmul.f32 0.35355338, %v1586_v45  ;;  %v1598_v47 = vadd.f32 %v1596_v44, %v3131_v28  ;;  %v2609_v45 = vld [vmem:[%s3344_s9] ss:$0 sm:$0xff] }
 0x5fd   : > { %v1602_v48 = vsel %vm1028_vm5, %v1598_v47, -inf  ;;  %v1597_v49 = vadd.f32 %v1595_v46, %v3136_v31 }
 0x5fe   : > { %1603 = vmax.xlane.f32.xlu1 %v1602_v48 }
 0x5ff   : > { %v1599_v50 = vsel %vm1028_vm5, %v1597_v49, -inf }
 0x600   : > { %1600 = vmax.xlane.f32.xlu0 %v1599_v50  ;;  %v2780_v51 = vpop.f32.mrf.mxu0 }
 0x601   : > { %v1883_v5 = vmul.f32 0.35355338, %v2780_v51 }
 0x602   : > { %v1873_v52 = vpop.f32.mrf.mxu0 }
 0x603   : > { %v1882_v53 = vmul.f32 0.35355338, %v1873_v52  ;;  %v1885_v8 = vadd.f32 %v1883_v5, %v3131_v28 }
 0x605   : > { %v1884_v54 = vadd.f32 %v1882_v53, %v3136_v31  ;;  %v1889_v9 = vsel %vm1028_vm5, %v1885_v8, -inf }
 0x607   : > { %v1886_v55 = vsel %vm1028_vm5, %v1884_v54, -inf }
 0x60f   : > { %1623 = vrot.lane.b32.xlu1 %v3104_v18, %s2903_s27 }
 0x633   : > { %1887 = vmax.xlane.f32.xlu1 %v1886_v55 }
 0x687   : > { %v1604_v56 = vpop.xlane.xlu1 %1603 }
 0x688   : > { %v1606_v57 = vsub.f32 %v1598_v47, %v1604_v56 }
 0x689   : > { %v1601_v58 = vpop.xlane.xlu0 %1600 }
 0x68a   : > { %v1609_v59 = vmul.f32 1.442695, %v1606_v57  ;;  %v1605_v60 = vsub.f32 %v1597_v49, %v1601_v58 }
 0x68b   : > { %v1624_v61 = vpop.permute.xlu1 %1623 }
 0x68c   : > { %2858 = vpow2.f32 %v1609_v59  ;;  %v1607_v62 = vmul.f32 1.442695, %v1605_v60  ;;  %2762 = vmatprep.subr.mxu1 %v1624_v61 }
 0x68d   : > { %2763 = vmatpush3.msra.mxu1 %v1624_v61 }
 0x68e   : > { %2860 = vpow2.f32 %v1607_v62  ;;  %v2136_v62 = vld [vmem:[%s3036_s16 + $0x18] sm:$0xff] }
 0x68f   : > { %2793 = vmatprep.subr.mxu0 %v2136_v62 }
 0x690   : > { %2794 = vmatpush3.msra.mxu0 %v2136_v62  ;;  %v2619_v62 = vld [vmem:[%s732_s1] ss:$0 sm:$0xff] }
 0x699   : > { %v2859_v63 = vpop.eup %2858 }
 0x69a   : > { %v1614_v0 = vsel %vm1028_vm5, %v2859_v63, 0.0 }
 0x69b   : > { %v2861_v1 = vpop.eup %2860  ;;  %1615 = vadd.xlane.f32.xlu0 %v1614_v0  ;;  %v2134_v0 = vld [vmem:[%s3036_s16 + $0x8] sm:$0xff] }
 0x69c   : > { %v1611_v31 = vsel %vm1028_vm5, %v2861_v1, 0.0 }
 0x69f   : > { %1612 = vadd.xlane.f32.xlu0 %v1611_v31  ;;  %v2234_v31 = vld [vmem:[%s3046_s2 + $0x38] sm:$0xff] }
 0x6b5   : > { %1621 = vrot.lane.b32.xlu0 %v3106_v20, %s2903_s27 }
 0x6bc   : > { %v1888_v2 = vpop.xlane.xlu1 %1887 }
 0x6bd   : > { %v1892_v3 = vsub.f32 %v1884_v54, %v1888_v2  ;;  %v2233_v2 = vld [vmem:[%s3046_s2 + $0x30] sm:$0xff] }
 0x6bf   : > { %v1894_v4 = vmul.f32 1.442695, %v1892_v3  ;;  %v2232_v3 = vld [vmem:[%s3046_s2 + $0x28] sm:$0xff] }
 0x6c1   : > { %2862 = vpow2.f32 %v1894_v4  ;;  %v2231_v4 = vld [vmem:[%s3046_s2 + $0x20] sm:$0xff] }
 0x6ce   : > { %v2863_v6 = vpop.eup %2862 }
 0x6cf   : > { %v1898_v7 = vsel %vm1028_vm5, %v2863_v6, 0.0 }
 0x6d0   : > { %1899 = vadd.xlane.f32.xlu1 %v1898_v7 }
 0x6d4   : > { %1890 = vmax.xlane.f32.xlu0 %v1889_v9 }
 0x6e1   : > { %1910 = vrot.lane.b32.xlu1 %v3104_v18, %s2904_s26 }
 0x724   : > { %v1616_v10 = vpop.xlane.xlu0 %1615 }
 0x725   : > { %2864 = vrcp.f32 %v1616_v10 }
 0x728   : > { %v1613_v11 = vpop.xlane.xlu0 %1612 }
 0x729   : > { %2866 = vrcp.f32 %v1613_v11 }
 0x72c   : > { %v1622_v13 = vpop.permute.xlu0 %1621 }
 0x72d   : > { %2764 = vmatprep.subr.mxu1 %v1622_v13 }
 0x72e   : > { %2765 = vmatpush3.msra.mxu1 %v1622_v13  ;;  %v2610_v13 = vld [vmem:[%s723_s17] ss:$0 sm:$0xff] }
 0x72f   : > { %2769 = vmatprep.subr.mxu1 %v841_v14 }
 0x732   : > { %v2865_v16 = vpop.eup %2864 }
 0x733   : > { %v1620_v28 = vmul.f32 %v2865_v16, %v2859_v63  ;;  %v2135_v63 = vld [vmem:[%s3036_s16 + $0x10] sm:$0xff] }
 0x734   : > { %2795 = vmatprep.subr.mxu0 %v2135_v63 }
 0x735   : > { %2796 = vmatpush3.msra.mxu0 %v2135_v63 }
 0x736   : > { %v2867_v17 = vpop.eup %2866  ;;  %2797 = vmatprep.subr.mxu0 %v2134_v0 }
 0x737   : > { %v1619_v19 = vmul.f32 %v2867_v17, %v2861_v1  ;;  %v2133_v1 = vld [vmem:[%s3036_s16] sm:$0xff]  ;;  %2798 = vmatpush3.msra.mxu0 %v2134_v0  ;;  %s3348_s16 = sld [smem:[#allocation12_spill]] (!%p2620_p5) }
 0x738   : > { %2799 = vmatprep.subr.mxu0 %v2133_v1 }
 0x739   : > { %2766 = vmatprep.mubr.msk.f32.mxu1 %vm1028_vm5, %v1619_v19  ;;  %2800 = vmatpush3.msra.mxu0 %v2133_v1 }
 0x73a   : > { %2767 = vmatmul.mubr.msk.f32.vlgmr.msra.gmra.mxu1 %vm1028_vm5, %v1620_v28  ;;  %v2611_v28 = vld [vmem:[%s726_s8] ss:$0 sm:$0xff] }
 0x73b   : > { %2770 = vmatpush3.msra.mxu1 %v841_v14 }
 0x759   : > { %v1900_v21 = vpop.xlane.xlu1 %1899 }
 0x75d   : > { %v1911_v18 = vpop.permute.xlu1 %1910  ;;  %v1891_v22 = vpop.xlane.xlu0 %1890 }
 0x75e   : > { %v1893_v23 = vsub.f32 %v1885_v8, %v1891_v22  ;;  %2781 = vmatprep.subr.mxu1 %v1911_v18 }
 0x760   : > { %v1896_v24 = vmul.f32 1.442695, %v1893_v23  ;;  %v2230_v23 = vld [vmem:[%s3046_s2 + $0x18] sm:$0xff] }
 0x762   : > { %2868 = vpow2.f32 %v1896_v24  ;;  %v2229_v24 = vld [vmem:[%s3046_s2 + $0x10] sm:$0xff] }
 0x763   : > { %2870 = vrcp.f32 %v1900_v21 }
 0x76f   : > { %v2869_v25 = vpop.eup %2868 }
 0x770   : > { %v1901_v26 = vsel %vm1028_vm5, %v2869_v25, 0.0  ;;  %v2871_v27 = vpop.eup %2870 }
 0x771   : > { %1902 = vadd.xlane.f32.xlu0 %v1901_v26  ;;  %v1906_v33 = vmul.f32 %v2871_v27, %v2863_v6  ;;  %v2227_v26 = vld [vmem:[%s3046_s2] sm:$0xff] }
 0x772   : > { %v2612_v27 = vld [vmem:[%s3346_s6] ss:$0 sm:$0xff] }
 0x787   : > { %1908 = vrot.lane.b32.xlu0 %v3106_v20, %s2904_s26 }
 0x7fa   : > { %v2768_v29 = vpop.f32.mrf.mxu1  ;;  %v1903_v30 = vpop.xlane.xlu0 %1902 }
 0x7fb   : > { %2872 = vrcp.f32 %v1903_v30 }
 0x7fc   : > { %v1699_v32 = vpop.f32.mrf.mxu1 }
 0x7fd   : > { %2771 = vmatprep.mubr.msk.f32.mxu1 %vm940_vm4, %v1699_v32 }
 0x7fe   : > { %2772 = vmatmul.mubr.msk.f32.vlgmr.msra.gmra.mxu1 %vm940_vm4, %v2768_v29  ;;  %v1909_v34 = vpop.permute.xlu0 %1908 }
 0x7ff   : > { %2782 = vmatpush3.msra.mxu1 %v1911_v18  ;;  %2785 = vmatprep.mubr.msk.f32.mxu1 %vm1028_vm5, %v1906_v33 }
 0x800   : > { %2783 = vmatprep.subr.mxu1 %v1909_v34 }
 0x801   : > { %2784 = vmatpush3.msra.mxu1 %v1909_v34 }
 0x802   : > { %2788 = vmatprep.subr.mxu1 %v842_v36 }
 0x808   : > { %v2873_v20 = vpop.eup %2872 }
 0x809   : > { %v1907_v35 = vmul.f32 %v2873_v20, %v2869_v25  ;;  %v2228_v25 = vld [vmem:[%s3046_s2 + $0x8] sm:$0xff] }
 0x80b   : > { %2786 = vmatmul.mubr.msk.f32.vlgmr.msra.gmra.mxu1 %vm1028_vm5, %v1907_v35  ;;  %v2615_v35 = vld [vmem:[%s720_s25] ss:$0 sm:$0xff] }
 0x80c   : > { %2789 = vmatpush3.msra.mxu1 %v842_v36 }
 0x80d   : > { %2804 = vmatprep.subr.mxu1 %v2234_v31 }
 0x8be   : > { %v2773_v37 = vpop.f32.mrf.mxu1 }
 0x8bf   : > { %v1790_v38 = vadd.f32 %v2773_v37, %v3186_v40 }
 0x8c0   : > { %v1780_v39 = vpop.f32.mrf.mxu1 }
 0x8c1   : > { %v1789_v41 = vadd.f32 %v1780_v39, %v3188_v42 }
 0x8cb   : > { %v2787_v43 = vpop.f32.mrf.mxu1 }
 0x8cd   : > { %v1986_v44 = vpop.f32.mrf.mxu1 }
 0x8ce   : > { %2790 = vmatprep.mubr.msk.f32.mxu1 %vm940_vm4, %v1986_v44 }
 0x8cf   : > { %2791 = vmatmul.mubr.msk.f32.vlgmr.msra.gmra.mxu1 %vm940_vm4, %v2787_v43 }
 0x8d0   : > { %2805 = vmatpush3.msra.mxu1 %v2234_v31 }
 0x8d1   : > { %2806 = vmatprep.subr.mxu1 %v2233_v2 }
 0x8d2   : > { %2807 = vmatpush3.msra.mxu1 %v2233_v2 }
 0x8d3   : > { %2808 = vmatprep.subr.mxu1 %v2232_v3 }
 0x8d4   : > { %2809 = vmatpush3.msra.mxu1 %v2232_v3 }
 0x8d5   : > { %2810 = vmatprep.subr.mxu1 %v2231_v4 }
 0x8d6   : > { %2811 = vmatpush3.msra.mxu1 %v2231_v4 }
 0x8d7   : > { %2812 = vmatprep.subr.mxu1 %v2230_v23 }
 0x8d8   : > { %2813 = vmatpush3.msra.mxu1 %v2230_v23 }
 0x8d9   : > { %2814 = vmatprep.subr.mxu1 %v2229_v24 }
 0x8da   : > { %2815 = vmatpush3.msra.mxu1 %v2229_v24 }
 0x8db   : > { %2816 = vmatprep.subr.mxu1 %v2228_v25 }
 0x8dc   : > { %2817 = vmatpush3.msra.mxu1 %v2228_v25 }
 0x8dd   : > { %2818 = vmatprep.subr.mxu1 %v2227_v26 }
 0x8de   : > { %2819 = vmatpush3.msra.mxu1 %v2227_v26 }
 0x98f   : > { %v2792_v46 = vpop.f32.mrf.mxu1 }
 0x990   : > { %v2077_v47 = vadd.f32 %v2792_v46, %v1790_v38 }
 0x991   : > { %v2067_v48 = vpop.f32.mrf.mxu1 }
 0x992   : > { %v2085_v49 = vadd.f32 %v2609_v45, %v2077_v47  ;;  %v2076_v50 = vadd.f32 %v2067_v48, %v1789_v41 }
 0x994   : > { %v2084_v40 = vadd.f32 %v2609_v45, %v2076_v50  ;;  %v2087_v51 = vadd.f32 %v2085_v49, %v3095_v15 }
 0x996   : > { %v2093_v42 = vsel %vm852_vm3, %v2087_v51, 0.0  ;;  %v2086_v52 = vadd.f32 %v2084_v40, %v3089_v12 }
 0x997   : > { %2094 = vadd.xlane.f32.xlu0 %v2093_v42 }
 0x998   : > { %v2090_v53 = vsel %vm852_vm3, %v2086_v52, 0.0 }
 0x999   : > { %2091 = vadd.xlane.f32.xlu1 %v2090_v53 }
 0xa20   : > { %v2095_v54 = vpop.xlane.xlu0 %2094 }
 0xa21   : > { %v2098_v55 = vmul.f32 0.03125, %v2095_v54 }
 0xa22   : > { %v2092_v56 = vpop.xlane.xlu1 %2091 }
 0xa23   : > { %v2100_v57 = vsub.f32 %v2087_v51, %v2098_v55  ;;  %v2097_v58 = vmul.f32 0.03125, %v2092_v56 }
 0xa25   : > { %v2099_v59 = vsub.f32 %v2086_v52, %v2097_v58  ;;  %v2102_v60 = vmul.f32 %v2100_v57, %v2100_v57 }
 0xa27   : > { %v2106_v15 = vsel %vm852_vm3, %v2102_v60, 0.0  ;;  %v2101_v61 = vmul.f32 %v2099_v59, %v2099_v59 }
 0xa28   : > { %2107 = vadd.xlane.f32.xlu0 %v2106_v15  ;;  %v2618_v15 = vld [vmem:[%s729_s20] ss:$0 sm:$0xff]  ;;  %s3347_s20 = sld [smem:[#allocation11_spill]] (!%p2620_p5) }
 0xa29   : > { %v2103_v12 = vsel %vm852_vm3, %v2101_v61, 0.0 }
 0xa2a   : > { %2104 = vadd.xlane.f32.xlu1 %v2103_v12 }
 0xab1   : > { %v2108_v5 = vpop.xlane.xlu0 %2107 }
 0xab2   : > { %v2110_v6 = vmul.f32 0.03125, %v2108_v5 }
 0xab3   : > { %v2105_v7 = vpop.xlane.xlu1 %2104 }
 0xab4   : > { %v2112_v8 = vadd.f32 1e-05, %v2110_v6  ;;  %v2109_v9 = vmul.f32 0.03125, %v2105_v7 }
 0xab6   : > { %2874 = vrsqrt.f32 %v2112_v8  ;;  %v2111_v10 = vadd.f32 1e-05, %v2109_v9 }
 0xab8   : > { %2876 = vrsqrt.f32 %v2111_v10 }
 0xac3   : > { %v2875_v11 = vpop.eup %2874 }
 0xac4   : > { %v2116_v14 = vmul.f32 %v2875_v11, %v2100_v57 }
 0xac5   : > { %v2877_v16 = vpop.eup %2876 }
 0xac6   : > { %v2115_v17 = vmul.f32 %v2877_v16, %v2099_v59  ;;  %v2124_v19 = vmul.f32 %v2610_v13, %v2116_v14 }
 0xac8   : > { %v2123_v21 = vmul.f32 %v2610_v13, %v2115_v17  ;;  %v2132_v22 = vadd.f32 %v2611_v28, %v2124_v19 }
 0xaca   : > { %v2131_v18 = vadd.f32 %v2611_v28, %v2123_v21 }
 0xacc   : > { %2801 = vmatprep.mubr.msk.f32.mxu0 %vm852_vm3, %v2131_v18 }
 0xacd   : > { %2802 = vmatmul.mubr.msk.f32.vlgmr.msra.gmra.mxu0 %vm852_vm3, %v2132_v22 }
 0xb8d   : > { %v2803_v29 = vpop.f32.mrf.mxu0 }
 0xb8e   : > { %v2222_v30 = vadd.f32 %v2803_v29, %v2612_v27 }
 0xb8f   : > { %v2216_v32 = vpop.f32.mrf.mxu0 }
 0xb90   : > { %v2217_v33 = vadd.f32 %v2612_v27, %v2216_v32  ;;  %v2226_v20 = vmax.f32 %v2222_v30, 0.0 }
 0xb92   : > { %v2225_v34 = vmax.f32 %v2217_v33, 0.0 }
 0xb94   : > { %2820 = vmatprep.mubr.msk.f32.mxu1 %vm2242_vm6, %v2225_v34 }
 0xb95   : > { %2821 = vmatmul.mubr.msk.f32.vlgmr.msra.gmra.mxu1 %vm2242_vm6, %v2226_v20 }
 0xc55   : > { %v2822_v36 = vpop.f32.mrf.mxu1 }
 0xc56   : > { %v2321_v37 = vadd.f32 %v2822_v36, %v2615_v35 }
 0xc57   : > { %v2315_v38 = vpop.f32.mrf.mxu1 }
 0xc58   : > { %v2316_v39 = vadd.f32 %v2615_v35, %v2315_v38  ;;  %v2325_v41 = vadd.f32 %v2321_v37, %v2132_v22 }
 0xc5a   : > { %v2331_v43 = vsel %vm852_vm3, %v2325_v41, 0.0  ;;  %v2324_v44 = vadd.f32 %v2316_v39, %v2131_v18 }
 0xc5b   : > { %2332 = vadd.xlane.f32.xlu0 %v2331_v43 }
 0xc5c   : > { %v2328_v45 = vsel %vm852_vm3, %v2324_v44, 0.0 }
 0xc5d   : > { %2329 = vadd.xlane.f32.xlu1 %v2328_v45 }
 0xce4   : > { %v2333_v46 = vpop.xlane.xlu0 %2332 }
 0xce5   : > { %v2335_v47 = vmul.f32 0.03125, %v2333_v46 }
 0xce6   : > { %v2330_v48 = vpop.xlane.xlu1 %2329 }
 0xce7   : > { %v2337_v49 = vsub.f32 %v2325_v41, %v2335_v47  ;;  %v2334_v50 = vmul.f32 0.03125, %v2330_v48 }
 0xce9   : > { %v2336_v40 = vsub.f32 %v2324_v44, %v2334_v50  ;;  %v2339_v51 = vmul.f32 %v2337_v49, %v2337_v49 }
 0xceb   : > { %v2343_v42 = vsel %vm852_vm3, %v2339_v51, 0.0  ;;  %v2338_v52 = vmul.f32 %v2336_v40, %v2336_v40 }
 0xcec   : > { %2344 = vadd.xlane.f32.xlu0 %v2343_v42 }
 0xced   : > { %v2340_v53 = vsel %vm852_vm3, %v2338_v52, 0.0 }
 0xcee   : > { %2341 = vadd.xlane.f32.xlu1 %v2340_v53 }
 0xd75   : > { %v2345_v54 = vpop.xlane.xlu0 %2344 }
 0xd76   : > { %v2347_v55 = vmul.f32 0.03125, %v2345_v54 }
 0xd77   : > { %v2342_v56 = vpop.xlane.xlu1 %2341 }
 0xd78   : > { %v2349_v57 = vadd.f32 1e-05, %v2347_v55  ;;  %v2346_v58 = vmul.f32 0.03125, %v2342_v56 }
 0xd7a   : > { %2878 = vrsqrt.f32 %v2349_v57  ;;  %v2348_v59 = vadd.f32 1e-05, %v2346_v58 }
 0xd7c   : > { %2880 = vrsqrt.f32 %v2348_v59 }
 0xd87   : > { %v2879_v60 = vpop.eup %2878 }
 0xd88   : > { %v2353_v61 = vmul.f32 %v2879_v60, %v2337_v49 }
 0xd89   : > { %v2881_v12 = vpop.eup %2880 }
 0xd8a   : > { %v2361_v63 = vmul.f32 %v2618_v15, %v2353_v61  ;;  %v2352_v0 = vmul.f32 %v2881_v12, %v2336_v40 }
 0xd8c   : > { %v2369_v1 = vadd.f32 %v2619_v62, %v2361_v63  ;;  %v2360_v31 = vmul.f32 %v2618_v15, %v2352_v0  ;;  %2375 = sbr.rel (%p2620_p5) target bundleno = 3786 (0xeca), region = 100 }
 0xd8e   : > { %2371 = vst.msk [vmem:[#allocation2 + $0x8] sm:$0xff] %vm852_vm3, %v2369_v1  ;;  %v2368_v2 = vadd.f32 %v2619_v62, %v2360_v31 }
 0xd90   : > { %2370 = vst.msk [vmem:[#allocation2] sm:$0xff] %vm852_vm3, %v2368_v2 }
 0xd91   : > { %v2378_v3 = vsel %vm852_vm3, %v2368_v2, 0.0  ;;  %v2381_v4 = vsel %vm852_vm3, %v2369_v1, 0.0  ;;  %v2621_v24 = vld [vmem:[%s3347_s20] ss:$0 sm:$0xff] }
 0xd92   : > { %2379 = vadd.xlane.f32.xlu0 %v2378_v3  ;;  %v2622_v26 = vld [vmem:[%s3348_s16] ss:$0 sm:$0xff] }
 0xd96   : > { %2382 = vadd.xlane.f32.xlu0 %v2381_v4 }
 0xe1b   : > { %v2380_v5 = vpop.xlane.xlu0 %2379 }
 0xe1c   : > { %v2384_v6 = vmul.f32 0.03125, %v2380_v5 }
 0xe1e   : > { %v2386_v7 = vsub.f32 %v2368_v2, %v2384_v6 }
 0xe1f   : > { %v2383_v8 = vpop.xlane.xlu0 %2382 }
 0xe20   : > { %v2385_v9 = vmul.f32 0.03125, %v2383_v8  ;;  %v2388_v10 = vmul.f32 %v2386_v7, %v2386_v7 }
 0xe22   : > { %v2387_v11 = vsub.f32 %v2369_v1, %v2385_v9  ;;  %v2390_v13 = vsel %vm852_vm3, %v2388_v10, 0.0 }
 0xe23   : > { %2391 = vadd.xlane.f32.xlu1 %v2390_v13 }
 0xe24   : > { %v2389_v14 = vmul.f32 %v2387_v11, %v2387_v11 }
 0xe26   : > { %v2393_v16 = vsel %vm852_vm3, %v2389_v14, 0.0 }
 0xe27   : > { %2394 = vadd.xlane.f32.xlu1 %v2393_v16 }
 0xeac   : > { %v2392_v17 = vpop.xlane.xlu1 %2391 }
 0xead   : > { %v2396_v19 = vmul.f32 0.03125, %v2392_v17 }
 0xeaf   : > { %v2398_v28 = vadd.f32 1e-05, %v2396_v19 }
 0xeb0   : > { %v2395_v21 = vpop.xlane.xlu1 %2394 }
 0xeb1   : > { %2882 = vrsqrt.f32 %v2398_v28  ;;  %v2397_v18 = vmul.f32 0.03125, %v2395_v21 }
 0xeb3   : > { %v2399_v22 = vadd.f32 1e-05, %v2397_v18 }
 0xeb5   : > { %2884 = vrsqrt.f32 %v2399_v22 }
 0xebe   : > { %v2883_v23 = vpop.eup %2882 }
 0xebf   : > { %v2402_v25 = vmul.f32 %v2883_v23, %v2386_v7 }
 0xec1   : > { %v2410_v27 = vmul.f32 %v2621_v24, %v2402_v25 }
 0xec2   : > { %v2885_v29 = vpop.eup %2884 }
 0xec3   : > { %v2418_v30 = vadd.f32 %v2622_v26, %v2410_v27  ;;  %v2403_v32 = vmul.f32 %v2885_v29, %v2387_v11 }
 0xec5   : > { %2420 = vst.msk [vmem:[%s3349_s19] sm:$0xff] %vm852_vm3, %v2418_v30  ;;  %v2411_v33 = vmul.f32 %v2621_v24, %v2403_v32 }
 0xec7   : > { %v2419_v34 = vadd.f32 %v2622_v26, %v2411_v33 }
 0xec9   : > { %2421 = vst.msk [vmem:[%s3349_s19 + $0x8] sm:$0xff] %vm852_vm3, %v2419_v34 }
 0xeca PF: > { %s3350_s4 = sld [smem:[#allocation3_spill]] }
 0xed0   : > { %s28_s27 = sadd.s32 1, %s3350_s4  }
 0xed1   : > { %p25_p6 = scmp.ge.s32.totalorder %s28_s27, 4  }
 0xed3   :  { %27 = sbr.rel (!%p25_p6) target bundleno = 11 (0xb), region = 159 }

// kernel: modality_encoder_decoder_forward.3
= control target key start
LH: loop header
LB: loop body
LE: loop exit
PB: predicated region body
PF: predicated region fallthrough
CT: control target
= control target key end

     0   :  { %s5325_s6 = smov 1   ;;  %s5326_s10 = smov 2   ;;  %s6003_s0 = inlined_call_operand.smem [shape: u32[31], index: -1, kind: input, shape index: {}] }
   0x1   :  { %s5378_s5 = sld [smem:[%s6003_s0]]   ;;  %s5327_s14 = smov 3  }
   0x2   :  { %s5383_s9 = sld [smem:[%s6003_s0 + %s5325_s6]]   ;;  %s5328_s18 = smov 4  }
   0x3   :  { %s5388_s13 = sld [smem:[%s6003_s0 + %s5326_s10]]   ;;  %s5329_s22 = smov 5  }
   0x4   :  { %s5393_s17 = sld [smem:[%s6003_s0 + %s5327_s14]]   ;;  %s5330_s26 = smov 6  }
   0x5   :  { %s5398_s21 = sld [smem:[%s6003_s0 + %s5328_s18]]   ;;  %s5331_s30 = smov 7  }
   0x6   :  { %s5403_s25 = sld [smem:[%s6003_s0 + %s5329_s22]]   ;;  %s5332_s4 = smov 8  }
   0x7   :  { %6016 = sst [smem:[#allocation9_spill]] %s5378_s5  ;;  %s5333_s10 = smov 9  }
   0x8   :  { %6017 = sst [smem:[#allocation10_spill]] %s5383_s9  ;;  %s5334_s15 = smov 10  }
   0x9   :  { %6018 = sst [smem:[#allocation11_spill]] %s5388_s13  ;;  %s5335_s20 = smov 11  }
   0xa   :  { %6019 = sst [smem:[#allocation12_spill]] %s5393_s17  ;;  %s5337_s1 = smov 13  }
   0xb   :  { %6020 = sst [smem:[#allocation13_spill]] %s5398_s21  ;;  %s5338_s7 = smov 14  }
   0xc   :  { %6021 = sst [smem:[#allocation14_spill]] %s5403_s25  ;;  %s5340_s22 = smov 16  }
   0xd   :  { %s5408_s29 = sld [smem:[%s6003_s0 + %s5330_s26]]   ;;  %s5336_s26 = smov 12  }
   0xe   :  { %s5413_s3 = sld [smem:[%s6003_s0 + %s5331_s30]]   ;;  %s5341_s28 = smov 17  }
   0xf   :  { %s5418_s8 = sld [smem:[%s6003_s0 + %s5332_s4]]  }
  0x10   :  { %s5423_s14 = sld [smem:[%s6003_s0 + %s5333_s10]]  }
  0x11   :  { %s5428_s19 = sld [smem:[%s6003_s0 + %s5334_s15]]   ;;  %s5339_s15 = smov 15  }
  0x12   :  { %s5433_s24 = sld [smem:[%s6003_s0 + %s5335_s20]]  }
  0x13   :  { %6022 = sst [smem:[#allocation15_spill]] %s5408_s29 }
  0x14   :  { %6023 = sst [smem:[#allocation16_spill]] %s5413_s3 }
  0x15   :  { %6024 = sst [smem:[#allocation17_spill]] %s5418_s8 }
  0x16   :  { %6025 = sst [smem:[#allocation18_spill]] %s5423_s14 }
  0x17   :  { %6026 = sst [smem:[#allocation19_spill]] %s5428_s19 }
  0x18   :  { %s5438_s30 = sld [smem:[%s6003_s0 + %s5336_s26]]  }
  0x19   :  { %s5443_s6 = sld [smem:[%s6003_s0 + %s5337_s1]]  }
  0x1a   :  { %s5448_s12 = sld [smem:[%s6003_s0 + %s5338_s7]]   ;;  %s5342_s7 = smov 18  }
  0x1b   :  { %s5453_s20 = sld [smem:[%s6003_s0 + %s5339_s15]]   ;;  %s5343_s15 = smov 19  }
  0x1c   :  { %s5458_s27 = sld [smem:[%s6003_s0 + %s5340_s22]]   ;;  %s5344_s22 = smov 20  }
  0x1d   :  { %s5463_s4 = sld [smem:[%s6003_s0 + %s5341_s28]]   ;;  %s5345_s28 = smov 21  }
  0x1e   :  { %s5468_s17 = sld [smem:[%s6003_s0 + %s5342_s7]]   ;;  %s5346_s7 = smov 22  }
  0x1f   :  { %s5473_s9 = sld [smem:[%s6003_s0 + %s5343_s15]]   ;;  %s5347_s15 = smov 23  }
  0x20   :  { %s5478_s13 = sld [smem:[%s6003_s0 + %s5344_s22]]   ;;  %s5348_s22 = smov 24  }
  0x21   :  { %s5483_s5 = sld [smem:[%s6003_s0 + %s5345_s28]]   ;;  %s5349_s28 = smov 25  }
  0x24   :  { %6027 = sst [smem:[#allocation20_spill]] %s5468_s17 }
  0x25   :  { %6028 = sst [smem:[#allocation21_spill]] %s5473_s9 }
  0x26   :  { %6029 = sst [smem:[#allocation22_spill]] %s5478_s13 }
  0x27   :  { %6030 = sst [smem:[#allocation23_spill]] %s5483_s5 }
  0x28   :  { %s5488_s17 = sld [smem:[%s6003_s0 + %s5346_s7]]   ;;  %s5350_s7 = smov 26  }
  0x29   :  { %s5493_s9 = sld [smem:[%s6003_s0 + %s5347_s15]]   ;;  %s5351_s15 = smov 27  }
  0x2a   :  { %s5498_s13 = sld [smem:[%s6003_s0 + %s5348_s22]]   ;;  %s5352_s22 = smov 28  }
  0x2b   :  { %s5503_s5 = sld [smem:[%s6003_s0 + %s5349_s28]]   ;;  %s5353_s28 = smov 29  }
  0x2e   :  { %6031 = sst [smem:[#allocation24_spill]] %s5488_s17 }
  0x2f   :  { %6032 = sst [smem:[#allocation25_spill]] %s5493_s9 }
  0x30   :  { %6033 = sst [smem:[#allocation26_spill]] %s5498_s13 }
  0x31   :  { %6034 = sst [smem:[#allocation27_spill]] %s5503_s5 }
  0x32   :  { %s5508_s17 = sld [smem:[%s6003_s0 + %s5350_s7]]   ;;  %s5354_s7 = smov 30  }
  0x33   :  { %s5513_s9 = sld [smem:[%s6003_s0 + %s5351_s15]]  }
  0x34   :  { %s5518_s13 = sld [smem:[%s6003_s0 + %s5352_s22]]  }
  0x35   :  { %s5523_s5 = sld [smem:[%s6003_s0 + %s5353_s28]]  }
  0x38   :  { %6035 = sst [smem:[#allocation28_spill]] %s5508_s17 }
  0x39   :  { %6036 = sst [smem:[#allocation29_spill]] %s5513_s9 }
  0x3a   :  { %6037 = sst [smem:[#allocation30_spill]] %s5518_s13 }
  0x3b   :  { %6038 = sst [smem:[#allocation31_spill]] %s5523_s5 }
  0x3c   :  { %s5528_s17 = sld [smem:[%s6003_s0 + %s5354_s7]]  }
  0x42   :  { %6039 = sst [smem:[#allocation32_spill]] %s5528_s17 }
  0x43   :  { %67 = vsyncpa [#allocation4], 0 }
  0x44   :  { %68 = vsyncpa [#allocation6], 0  ;;  %s5530_s15 = smov 0  }
  0x45 LB: > { %6040 = sst [smem:[#allocation33_spill]] %s5323_s15  ;;  %s5536_s16 = sadd.s32 4294967295, %s5323_s15   ;;  %s5323_s15 = sphi %s5530_s15, %s74_s15  }
  0x46   : > { %6041 = sst [smem:[#allocation34_spill]] %s5536_s16  ;;  %p4640_p0 = scmp.ge.s32.totalorder %s5323_s15, 1 }
  0x47   : > { %p999_p1 = scmp.lt.s32.totalorder %s5323_s15, 3 }
  0x49   : > { %p1000_p2 = pnand %p4640_p0, %p999_p1 }
  0x4b   : > { %1003 = sbr.rel (%p1000_p2) target bundleno = 7197 (0x1c1d), region = 132 }
  0x50   : > { %s6043_s21 = sld [smem:[#allocation13_spill]]  ;;  %p1141_p3 = scmp.lt.s32.totalorder %s5536_s16, 1 }
  0x51   : > { %s6044_s29 = sld [smem:[#allocation15_spill]] }
  0x52   : > { %s6046_s8 = sld [smem:[#allocation17_spill]] }
  0x53   : > { %s6048_s19 = sld [smem:[#allocation19_spill]] }
  0x54   : > { %s5542_s0 = scalar_select %p1141_p3, %s5536_s16, 1 }
  0x55   : > { %s6049_s22 = sld [smem:[#allocation20_spill]] }
  0x56   : > { %s4755_s18 = sshll.u32 %s5542_s0, 5  ;;  %s6050_s26 = sld [smem:[#allocation21_spill]] }
  0x57   : > { %s5548_s28 = scalar_lea.vmem %s6043_s21, %s4755_s18  ;;  %s6052_s1 = sld [smem:[#allocation22_spill]] }
  0x58   : > { %6051 = sst [smem:[#allocation35_spill]] %s5548_s28  ;;  %s5551_s2 = scalar_lea.vmem %s6044_s29, %s4755_s18 }
  0x59   : > { %6053 = sst [smem:[#allocation36_spill]] %s5551_s2  ;;  %s5556_s15 = scalar_lea.vmem %s6046_s8, %s4755_s18 }
  0x5a   : > { %s6054_s7 = sld [smem:[#allocation23_spill]]  ;;  %s5561_s17 = scalar_lea.vmem %s6048_s19, %s4755_s18 }
  0x5b   : > { %6056 = sst [smem:[#allocation37_spill]] %s5556_s15  ;;  %s5566_s9 = scalar_lea.vmem %s5438_s30, %s4755_s18 }
  0x5c   : > { %s1180_s21 = scalar_lea.vmem %s5443_s6, %s5542_s0  ;;  %s5571_s25 = scalar_lea.vmem %s5448_s12, %s4755_s18 }
  0x5d   : > { %s1188_s29 = scalar_lea.vmem %s5453_s20, %s5542_s0  ;;  %s4761_s2 = sshll.u32 %s5542_s0, 6 }
  0x5e   : > { %s5577_s28 = scalar_lea.vmem %s5458_s27, %s4761_s2  ;;  %s1199_s3 = scalar_lea.vmem %s6049_s22, %s5542_s0 }
  0x5f   : > { %s1202_s16 = scalar_lea.vmem %s6050_s26, %s5542_s0  ;;  %s1205_s8 = scalar_lea.vmem %s6052_s1, %s5542_s0 }
  0x60   : > { %s1208_s15 = scalar_lea.vmem %s6054_s7, %s5542_s0  ;;  %s6058_s19 = sld [smem:[#allocation34_spill]] }
  0x66   : > { %p4655_p4 = scmp.ne.s32.totalorder %s6058_s19, 0 }
  0x67   : > { %s6059_s23 = sld [smem:[#allocation9_spill]] (!%p4655_p4) }
  0x68   : > { %1218 = sbr.rel (%p4655_p4) target bundleno = 111 (0x6f), region = 136 }
  0x6d   : > { %v1219_v0 = vld [vmem:[%s6059_s23] sm:$0xff]  ;;  %vm1221_vm0 = vcmask 261120   ;;  %v1220_v1 = vld [vmem:[%s6059_s23 + $0x8] sm:$0xff] }
  0x6e   : > { %1222 = vst.msk [vmem:[#allocation2] sm:$0xff] %vm1221_vm0, %v1219_v0  ;;  %1223 = vst.msk [vmem:[#allocation2 + $0x8] sm:$0xff] %vm1221_vm0, %v1220_v1 }
  0x6f PF: > { %s6060_s18 = sld [smem:[#allocation35_spill]]  ;;  %vm1246_vm1 = vcmask 261120   ;;  %vm1334_vm2 = vcmask 64512   ;;  %s5355_s19 = smov 88   ;;  %vm1422_vm3 = vcmask 130048   ;;  %vm4021_vm4 = vcmask 523264  }
  0x70   : > { %s6061_s22 = sld [smem:[#allocation14_spill]]  ;;  %s5356_s26 = smov 96  }
  0x71   : > { %s5357_s1 = smov 120   ;;  %s6063_s2 = sld [smem:[#allocation11_spill]] }
  0x72   : > { %s5358_s7 = smov 64   ;;  %s5359_s11 = smov 56  }
  0x73   : > { %s5363_s14 = smov 104   ;;  %s5365_s13 = smov 40  }
  0x75   : > { %v1231_v2 = vld [vmem:[%s6060_s18 + $0x18] sm:$0xff]  ;;  %v1230_v3 = vld [vmem:[%s6060_s18 + $0x10] sm:$0xff]  ;;  %v5598_v4 = vld [vmem:[#allocation2] sm:$0xff] }
  0x76   : > { %4890 = vmatprep.subr.mxu0 %v1231_v2  ;;  %v1229_v5 = vld [vmem:[%s6060_s18 + $0x8] sm:$0xff]  ;;  %4898 = vmatprep.mubr.msk.f32.mxu0 %vm1246_vm1, %v5598_v4  ;;  %v1228_v6 = vld [vmem:[%s6060_s18] sm:$0xff]  ;;  %s6062_s5 = scalar_lea.vmem %s6061_s22, %s5542_s0  ;;  %s5360_s18 = smov 80  }
  0x77   : > { %4891 = vmatpush3.msra.mxu0 %v1231_v2  ;;  %v5604_v7 = vld [vmem:[#allocation2 + $0x8] sm:$0xff]  ;;  %v4656_v8 = vld [vmem:[%s6062_s5] ss:$0 sm:$0xff]  ;;  %s5361_s22 = smov 112   ;;  %s5362_s5 = smov 72  }
  0x78   : > { %4892 = vmatprep.subr.mxu0 %v1230_v3  ;;  %v5642_v20 = vld [vmem:[%s6063_s2 + $0x8] sm:$0xff]  ;;  %v5645_v23 = vld [vmem:[%s6063_s2] sm:$0xff] }
  0x79   : > { %4893 = vmatpush3.msra.mxu0 %v1230_v3 }
  0x7a   : > { %4894 = vmatprep.subr.mxu0 %v1229_v5 }
  0x7b   : > { %4895 = vmatpush3.msra.mxu0 %v1229_v5 }
  0x7c   : > { %4896 = vmatprep.subr.mxu0 %v1228_v6 }
  0x7d   : > { %4897 = vmatpush3.msra.mxu0 %v1228_v6 }
  0x7e   : > { %4899 = vmatmul.mubr.msk.f32.vlgmr.msra.gmra.mxu0 %vm1246_vm1, %v5604_v7 }
 0x13e   : > { %v4900_v9 = vpop.f32.mrf.mxu0 }
 0x13f   : > { %v5611_v10 = vadd.f32 %v4900_v9, %v4656_v8 }
 0x140   : > { %v1319_v11 = vpop.f32.mrf.mxu0 }
 0x141   : > { %v5613_v12 = vadd.f32 %v4656_v8, %v1319_v11  ;;  %1538 = vrot.lane.b32.xlu1 %v5611_v10, %s5355_s19  ;;  %1332 = vrot.lane.b32.xlu0 %v5611_v10, %s5356_s26 }
 0x143   : > { %4905 = vmatprep.mubr.msk.f32.mxu1 %vm1334_vm2, %v5613_v12 }
 0x145   : > { %1536 = vrot.lane.b32.xlu1 %v5613_v12, %s5355_s19  ;;  %1330 = vrot.lane.b32.xlu0 %v5613_v12, %s5356_s26 }
 0x149   : > { %1534 = vrot.lane.b32.xlu1 %v5611_v10, %s5357_s1  ;;  %1532 = vrot.lane.b32.xlu0 %v5613_v12, %s5357_s1 }
 0x1b3   : > { %v1333_v13 = vpop.permute.xlu0 %1332  ;;  %v1539_v14 = vpop.permute.xlu1 %1538 }
 0x1b4   : > { %4901 = vmatprep.subr.msk.mxu1 %vm1334_vm2, %v1333_v13 }
 0x1b5   : > { %4902 = vmatpush3.xpose.msk.msra.mxu1 %vm1334_vm2, %v1333_v13 }
 0x1b7   : > { %v1331_v15 = vpop.permute.xlu0 %1330  ;;  %v1537_v17 = vpop.permute.xlu1 %1536 }
 0x1b8   : > { %4903 = vmatprep.subr.msk.mxu1 %vm1334_vm2, %v1331_v15 }
 0x1b9   : > { %4904 = vmatpush3.xpose.msk.msra.mxu1 %vm1334_vm2, %v1331_v15 }
 0x1ba   : > { %4915 = vmatprep.subr.msk.mxu1 %vm1334_vm2, %v1539_v14 }
 0x1bb   : > { %v1533_v16 = vpop.permute.xlu0 %1532  ;;  %v1535_v18 = vpop.permute.xlu1 %1534 }
 0x1bc   : > { %4906 = vmatmul.mubr.msk.f32.vlgmr.msra.gmra.mxu1 %vm1334_vm2, %v5611_v10 }
 0x1bd   : > { %4916 = vmatpush3.xpose.msk.msra.mxu1 %vm1334_vm2, %v1539_v14  ;;  %4919 = vmatprep.mubr.msk.f32.mxu1 %vm1334_vm2, %v1533_v16 }
 0x1be   : > { %4917 = vmatprep.subr.msk.mxu1 %vm1334_vm2, %v1537_v17 }
 0x1c1   : > { %4918 = vmatpush3.xpose.msk.msra.mxu1 %vm1334_vm2, %v1537_v17 }
 0x1c4   : > { %4920 = vmatmul.mubr.msk.f32.vlgmr.msra.gmra.mxu1 %vm1334_vm2, %v1535_v18 }
 0x27c   : > { %v4907_v19 = vpop.f32.mrf.mxu1 }
 0x27d   : > { %v1419_v21 = vmul.f32 0.35355338, %v4907_v19 }
 0x27e   : > { %v1409_v22 = vpop.f32.mrf.mxu1 }
 0x27f   : > { %v1418_v24 = vmul.f32 0.35355338, %v1409_v22  ;;  %v1421_v25 = vadd.f32 %v1419_v21, %v5642_v20 }
 0x281   : > { %v1426_v26 = vsel %vm1422_vm3, %v1421_v25, -inf  ;;  %v1420_v27 = vadd.f32 %v1418_v24, %v5645_v23 }
 0x282   : > { %1427 = vmax.xlane.f32.xlu1 %v1426_v26 }
 0x283   : > { %v1423_v28 = vsel %vm1422_vm3, %v1420_v27, -inf }
 0x284   : > { %v4921_v29 = vpop.f32.mrf.mxu1  ;;  %1424 = vmax.xlane.f32.xlu0 %v1423_v28 }
 0x285   : > { %v1624_v31 = vmul.f32 0.35355338, %v4921_v29 }
 0x286   : > { %v1614_v30 = vpop.f32.mrf.mxu1 }
 0x287   : > { %v1623_v32 = vmul.f32 0.35355338, %v1614_v30  ;;  %v1626_v35 = vadd.f32 %v1624_v31, %v5642_v20 }
 0x289   : > { %v1625_v33 = vadd.f32 %v1623_v32, %v5645_v23  ;;  %v1630_v36 = vsel %vm1422_vm3, %v1626_v35, -inf }
 0x28b   : > { %v1627_v34 = vsel %vm1422_vm3, %v1625_v33, -inf }
 0x28c   : > { %1628 = vmax.xlane.f32.xlu0 %v1627_v34 }
 0x290   : > { %1631 = vmax.xlane.f32.xlu0 %v1630_v36 }
 0x293   : > { %1447 = vrot.lane.b32.xlu1 %v5611_v10, %s5358_s7 }
 0x30b   : > { %v1428_v37 = vpop.xlane.xlu1 %1427 }
 0x30c   : > { %v1430_v38 = vsub.f32 %v1421_v25, %v1428_v37 }
 0x30d   : > { %v1425_v39 = vpop.xlane.xlu0 %1424 }
 0x30e   : > { %v1433_v40 = vmul.f32 1.442695, %v1430_v38  ;;  %v1429_v41 = vsub.f32 %v1420_v27, %v1425_v39 }
 0x30f   : > { %v1448_v42 = vpop.permute.xlu1 %1447 }
 0x310   : > { %5181 = vpow2.f32 %v1433_v40  ;;  %v1431_v43 = vmul.f32 1.442695, %v1429_v41  ;;  %4908 = vmatprep.subr.mxu0 %v1448_v42 }
 0x311   : > { %4909 = vmatpush3.msra.mxu0 %v1448_v42 }
 0x312   : > { %5183 = vpow2.f32 %v1431_v43 }
 0x315   : > { %v1629_v44 = vpop.xlane.xlu0 %1628 }
 0x316   : > { %v1633_v54 = vsub.f32 %v1625_v33, %v1629_v44 }
 0x318   : > { %v1635_v55 = vmul.f32 1.442695, %v1633_v54 }
 0x319   : > { %v1632_v45 = vpop.xlane.xlu0 %1631 }
 0x31a   : > { %v1634_v46 = vsub.f32 %v1626_v35, %v1632_v45 }
 0x31c   : > { %v1637_v47 = vmul.f32 1.442695, %v1634_v46 }
 0x31d   : > { %v5182_v48 = vpop.eup %5181 }
 0x31e   : > { %5185 = vpow2.f32 %v1637_v47  ;;  %v1438_v49 = vsel %vm1422_vm3, %v5182_v48, 0.0 }
 0x31f   : > { %v5184_v50 = vpop.eup %5183  ;;  %1439 = vadd.xlane.f32.xlu0 %v1438_v49  ;;  %5187 = vpow2.f32 %v1635_v55 }
 0x320   : > { %v1435_v51 = vsel %vm1422_vm3, %v5184_v50, 0.0 }
 0x321   : > { %1436 = vadd.xlane.f32.xlu1 %v1435_v51 }
 0x32b   : > { %v5186_v52 = vpop.eup %5185 }
 0x32c   : > { %v1642_v53 = vsel %vm1422_vm3, %v5186_v52, 0.0  ;;  %v5188_v56 = vpop.eup %5187 }
 0x32d   : > { %1643 = vadd.xlane.f32.xlu0 %v1642_v53  ;;  %v1639_v57 = vsel %vm1422_vm3, %v5188_v56, 0.0 }
 0x332   : > { %1651 = vrot.lane.b32.xlu1 %v5611_v10, %s5359_s11 }
 0x343   : > { %1445 = vrot.lane.b32.xlu0 %v5613_v12, %s5358_s7  ;;  %s6064_s7 = sld [smem:[#allocation36_spill]] }
 0x347   : > { %1904 = vrot.lane.b32.xlu0 %v5611_v10, %s5360_s18 }
 0x349   : > { %v1234_v13 = vld [vmem:[%s6064_s7 + $0x8] sm:$0xff]  ;;  %v1233_v14 = vld [vmem:[%s6064_s7] sm:$0xff] }
 0x34b   : > { %1898 = vrot.lane.b32.xlu0 %v5613_v12, %s5361_s22 }
 0x34f   : > { %2191 = vrot.lane.b32.xlu0 %v5611_v10, %s5362_s5 }
 0x353   : > { %2185 = vrot.lane.b32.xlu0 %v5613_v12, %s5363_s14 }
 0x356   : > { %1640 = vadd.xlane.f32.xlu1 %v1639_v57 }
 0x367   : > { %1649 = vrot.lane.b32.xlu1 %v5613_v12, %s5359_s11  ;;  %s5364_s11 = smov 48  }
 0x36b   : > { %1902 = vrot.lane.b32.xlu1 %v5613_v12, %s5360_s18 }
 0x36f   : > { %1900 = vrot.lane.b32.xlu1 %v5611_v10, %s5361_s22 }
 0x373   : > { %2189 = vrot.lane.b32.xlu1 %v5613_v12, %s5362_s5 }
 0x377   : > { %2187 = vrot.lane.b32.xlu1 %v5611_v10, %s5363_s14 }
 0x3a8   : > { %v1440_v58 = vpop.xlane.xlu0 %1439 }
 0x3a9   : > { %5189 = vrcp.f32 %v1440_v58 }
 0x3aa   : > { %v1437_v59 = vpop.xlane.xlu1 %1436 }
 0x3ab   : > { %5191 = vrcp.f32 %v1437_v59 }
 0x3ae   : > { %v1652_v2 = vpop.permute.xlu1 %1651 }
 0x3b6   : > { %v1644_v60 = vpop.xlane.xlu0 %1643  ;;  %v5190_v61 = vpop.eup %5189 }
 0x3b7   : > { %v1444_v1 = vmul.f32 %v5190_v61, %v5182_v48  ;;  %5193 = vrcp.f32 %v1644_v60 }
 0x3b8   : > { %v5192_v62 = vpop.eup %5191 }
 0x3b9   : > { %v1443_v63 = vmul.f32 %v5192_v62, %v5184_v50 }
 0x3ba   : > { %v1446_v0 = vpop.permute.xlu0 %1445 }
 0x3bb   : > { %4910 = vmatprep.subr.mxu0 %v1446_v0  ;;  %4912 = vmatprep.mubr.msk.f32.mxu0 %vm1422_vm3, %v1443_v63 }
 0x3bc   : > { %4911 = vmatpush3.msra.mxu0 %v1446_v0 }
 0x3bd   : > { %4913 = vmatmul.mubr.msk.f32.vlgmr.msra.gmra.mxu0 %vm1422_vm3, %v1444_v1  ;;  %4922 = vmatprep.subr.mxu0 %v1652_v2 }
 0x3be   : > { %4923 = vmatpush3.msra.mxu0 %v1652_v2  ;;  %v1905_v16 = vpop.permute.xlu0 %1904 }
 0x3c2   : > { %v1899_v21 = vpop.permute.xlu0 %1898 }
 0x3c4   : > { %v5194_v6 = vpop.eup %5193 }
 0x3c5   : > { %v1648_v11 = vmul.f32 %v5194_v6, %v5186_v52  ;;  %v1235_v6 = vld [vmem:[%s6064_s7 + $0x10] sm:$0xff] }
 0x3c6   : > { %v2192_v24 = vpop.permute.xlu0 %2191 }
 0x3ca   : > { %v2186_v26 = vpop.permute.xlu0 %2185 }
 0x3df   : > { %v1641_v3 = vpop.xlane.xlu1 %1640 }
 0x3e0   : > { %5195 = vrcp.f32 %v1641_v3 }
 0x3e3   : > { %v1650_v5 = vpop.permute.xlu1 %1649 }
 0x3e4   : > { %4924 = vmatprep.subr.mxu0 %v1650_v5 }
 0x3e5   : > { %4925 = vmatpush3.msra.mxu0 %v1650_v5 }
 0x3e6   : > { %4929 = vmatprep.subr.mxu0 %v1234_v13 }
 0x3e7   : > { %v1903_v22 = vpop.permute.xlu1 %1902 }
 0x3eb   : > { %v1901_v25 = vpop.permute.xlu1 %1900 }
 0x3ed   : > { %v5196_v8 = vpop.eup %5195 }
 0x3ee   : > { %v1647_v9 = vmul.f32 %v5196_v8, %v5188_v56 }
 0x3ef   : > { %v2190_v27 = vpop.permute.xlu1 %2189 }
 0x3f0   : > { %4926 = vmatprep.mubr.msk.f32.mxu0 %vm1422_vm3, %v1647_v9 }
 0x3f1   : > { %4927 = vmatmul.mubr.msk.f32.vlgmr.msra.gmra.mxu0 %vm1422_vm3, %v1648_v11 }
 0x3f2   : > { %4930 = vmatpush3.msra.mxu0 %v1234_v13 }
 0x3f3   : > { %4934 = vmatprep.subr.mxu0 %v1233_v14  ;;  %v2188_v28 = vpop.permute.xlu1 %2187 }
 0x47d   : > { %v4914_v15 = vpop.f32.mrf.mxu0 }
 0x47f   : > { %v1523_v17 = vpop.f32.mrf.mxu0 }
 0x4b1   : > { %v4928_v18 = vpop.f32.mrf.mxu0 }
 0x4b3   : > { %v1727_v19 = vpop.f32.mrf.mxu0 }
 0x4b4   : > { %4931 = vmatprep.mubr.msk.f32.mxu0 %vm1334_vm2, %v1727_v19 }
 0x4b5   : > { %4932 = vmatmul.mubr.msk.f32.vlgmr.msra.gmra.mxu0 %vm1334_vm2, %v4928_v18 }
 0x4b6   : > { %4935 = vmatpush3.msra.mxu0 %v1233_v14  ;;  %4936 = vmatprep.mubr.msk.f32.mxu0 %vm1334_vm2, %v1523_v17 }
 0x4b7   : > { %4939 = vmatprep.subr.msk.mxu0 %vm1334_vm2, %v1905_v16 }
 0x4b9   : > { %4937 = vmatmul.mubr.msk.f32.vlgmr.msra.gmra.mxu0 %vm1334_vm2, %v4914_v15 }
 0x4ba   : > { %4940 = vmatpush3.xpose.msk.msra.mxu0 %vm1334_vm2, %v1905_v16  ;;  %4943 = vmatprep.mubr.msk.f32.mxu0 %vm1334_vm2, %v1899_v21 }
 0x4bb   : > { %4941 = vmatprep.subr.msk.mxu0 %vm1334_vm2, %v1903_v22 }
 0x4be   : > { %4942 = vmatpush3.xpose.msk.msra.mxu0 %vm1334_vm2, %v1903_v22 }
 0x4bf   : > { %4958 = vmatprep.subr.msk.mxu0 %vm1334_vm2, %v2192_v24 }
 0x4c1   : > { %4944 = vmatmul.mubr.msk.f32.vlgmr.msra.gmra.mxu0 %vm1334_vm2, %v1901_v25 }
 0x4c2   : > { %4959 = vmatpush3.xpose.msk.msra.mxu0 %vm1334_vm2, %v2192_v24  ;;  %4962 = vmatprep.mubr.msk.f32.mxu0 %vm1334_vm2, %v2186_v26 }
 0x4c3   : > { %4960 = vmatprep.subr.msk.mxu0 %vm1334_vm2, %v2190_v27 }
 0x4c6   : > { %4961 = vmatpush3.xpose.msk.msra.mxu0 %vm1334_vm2, %v2190_v27 }
 0x4c9   : > { %4963 = vmatmul.mubr.msk.f32.vlgmr.msra.gmra.mxu0 %vm1334_vm2, %v2188_v28  ;;  %v1236_v28 = vld [vmem:[%s6064_s7 + $0x18] sm:$0xff]  ;;  %s6067_s7 = sld [smem:[#allocation10_spill]] }
 0x575   : > { %v4933_v29 = vpop.f32.mrf.mxu0 }
 0x577   : > { %v1808_v30 = vpop.f32.mrf.mxu0 }
 0x579   : > { %v4938_v31 = vpop.f32.mrf.mxu0 }
 0x57a   : > { %v5703_v32 = vadd.f32 %v4938_v31, %v4933_v29 }
 0x57b   : > { %v1889_v33 = vpop.f32.mrf.mxu0 }
 0x57c   : > { %v5705_v34 = vadd.f32 %v1889_v33, %v1808_v30 }
 0x581   : > { %v4945_v35 = vpop.f32.mrf.mxu0 }
 0x582   : > { %v1990_v36 = vmul.f32 0.35355338, %v4945_v35 }
 0x583   : > { %v1980_v37 = vpop.f32.mrf.mxu0 }
 0x584   : > { %v1989_v38 = vmul.f32 0.35355338, %v1980_v37  ;;  %v1992_v39 = vadd.f32 %v1990_v36, %v5642_v20 }
 0x586   : > { %v1996_v40 = vsel %vm1422_vm3, %v1992_v39, -inf  ;;  %v1991_v41 = vadd.f32 %v1989_v38, %v5645_v23 }
 0x587   : > { %1997 = vmax.xlane.f32.xlu1 %v1996_v40 }
 0x588   : > { %v1993_v42 = vsel %vm1422_vm3, %v1991_v41, -inf }
 0x589   : > { %1994 = vmax.xlane.f32.xlu0 %v1993_v42  ;;  %v4964_v43 = vpop.f32.mrf.mxu0 }
 0x58a   : > { %v2277_v61 = vmul.f32 0.35355338, %v4964_v43 }
 0x58b   : > { %v2267_v44 = vpop.f32.mrf.mxu0 }
 0x58c   : > { %v2276_v45 = vmul.f32 0.35355338, %v2267_v44  ;;  %v2279_v0 = vadd.f32 %v2277_v61, %v5642_v20  ;;  %v1227_v61 = vld [vmem:[%s6067_s7 + $0x8] sm:$0xff] }
 0x58e   : > { %v2278_v46 = vadd.f32 %v2276_v45, %v5645_v23  ;;  %v2283_v1 = vsel %vm1422_vm3, %v2279_v0, -inf }
 0x590   : > { %v2280_v47 = vsel %vm1422_vm3, %v2278_v46, -inf }
 0x598   : > { %2017 = vrot.lane.b32.xlu1 %v5611_v10, %s5364_s11 }
 0x5bc   : > { %2281 = vmax.xlane.f32.xlu1 %v2280_v47 }
 0x610   : > { %v1998_v48 = vpop.xlane.xlu1 %1997 }
 0x611   : > { %v2000_v49 = vsub.f32 %v1992_v39, %v1998_v48 }
 0x612   : > { %v1995_v50 = vpop.xlane.xlu0 %1994 }
 0x613   : > { %v2003_v51 = vmul.f32 1.442695, %v2000_v49  ;;  %v1999_v52 = vsub.f32 %v1991_v41, %v1995_v50 }
 0x614   : > { %v2018_v53 = vpop.permute.xlu1 %2017 }
 0x615   : > { %5197 = vpow2.f32 %v2003_v51  ;;  %v2001_v54 = vmul.f32 1.442695, %v1999_v52  ;;  %4946 = vmatprep.subr.mxu1 %v2018_v53 }
 0x616   : > { %4947 = vmatpush3.msra.mxu1 %v2018_v53 }
 0x617   : > { %5199 = vpow2.f32 %v2001_v54  ;;  %v2535_v54 = vld [vmem:[%s5561_s17 + $0x18] sm:$0xff] }
 0x622   : > { %v5198_v55 = vpop.eup %5197 }
 0x623   : > { %v2008_v56 = vsel %vm1422_vm3, %v5198_v55, 0.0 }
 0x624   : > { %v5200_v57 = vpop.eup %5199  ;;  %2009 = vadd.xlane.f32.xlu0 %v2008_v56  ;;  %v1226_v56 = vld [vmem:[%s6067_s7] sm:$0xff] }
 0x625   : > { %v2005_v23 = vsel %vm1422_vm3, %v5200_v57, 0.0 }
 0x628   : > { %2006 = vadd.xlane.f32.xlu0 %v2005_v23 }
 0x63e   : > { %2015 = vrot.lane.b32.xlu0 %v5613_v12, %s5364_s11  ;;  %s6065_s11 = sld [smem:[#allocation16_spill]] }
 0x645   : > { %v2282_v58 = vpop.xlane.xlu1 %2281 }
 0x646   : > { %v2286_v59 = vsub.f32 %v2278_v46, %v2282_v58 }
 0x648   : > { %v2288_v60 = vmul.f32 1.442695, %v2286_v59  ;;  %v2532_v59 = vld [vmem:[%s5561_s17] sm:$0xff] }
 0x64a   : > { %5201 = vpow2.f32 %v2288_v60 }
 0x657   : > { %v5202_v62 = vpop.eup %5201 }
 0x658   : > { %v2292_v63 = vsel %vm1422_vm3, %v5202_v62, 0.0 }
 0x659   : > { %2293 = vadd.xlane.f32.xlu1 %v2292_v63 }
 0x65d   : > { %2284 = vmax.xlane.f32.xlu0 %v2283_v1 }
 0x66a   : > { %2304 = vrot.lane.b32.xlu1 %v5611_v10, %s5365_s13 }
 0x6ad   : > { %v2010_v2 = vpop.xlane.xlu0 %2009 }
 0x6ae   : > { %5203 = vrcp.f32 %v2010_v2 }
 0x6b1   : > { %v2007_v3 = vpop.xlane.xlu0 %2006 }
 0x6b2   : > { %5205 = vrcp.f32 %v2007_v3 }
 0x6b5   : > { %v2016_v5 = vpop.permute.xlu0 %2015 }
 0x6b6   : > { %4948 = vmatprep.subr.mxu1 %v2016_v5 }
 0x6b7   : > { %4949 = vmatpush3.msra.mxu1 %v2016_v5 }
 0x6b8   : > { %4953 = vmatprep.subr.mxu1 %v1235_v6 }
 0x6bb   : > { %v5204_v8 = vpop.eup %5203 }
 0x6bc   : > { %v2014_v20 = vmul.f32 %v5204_v8, %v5198_v55  ;;  %v2534_v55 = vld [vmem:[%s5561_s17 + $0x10] sm:$0xff]  ;;  %v4692_v8 = vld [vmem:[%s1199_s3] ss:$0 sm:$0xff]  ;;  %s6072_s3 = scalar_lea.vmem %s5433_s24, %s5542_s0 }
 0x6bf   : > { %v5206_v9 = vpop.eup %5205 }
 0x6c0   : > { %v2013_v11 = vmul.f32 %v5206_v9, %v5200_v57  ;;  %v2533_v57 = vld [vmem:[%s5561_s17 + $0x8] sm:$0xff]  ;;  %s6071_s17 = sld [smem:[#allocation18_spill]] }
 0x6c2   : > { %4950 = vmatprep.mubr.msk.f32.mxu1 %vm1422_vm3, %v2013_v11 }
 0x6c3   : > { %4951 = vmatmul.mubr.msk.f32.vlgmr.msra.gmra.mxu1 %vm1422_vm3, %v2014_v20 }
 0x6c4   : > { %4954 = vmatpush3.msra.mxu1 %v1235_v6 }
 0x6e2   : > { %v2294_v13 = vpop.xlane.xlu1 %2293 }
 0x6e6   : > { %v2305_v10 = vpop.permute.xlu1 %2304  ;;  %v2285_v14 = vpop.xlane.xlu0 %2284 }
 0x6e7   : > { %v2287_v15 = vsub.f32 %v2279_v0, %v2285_v14  ;;  %4965 = vmatprep.subr.mxu1 %v2305_v10 }
 0x6e9   : > { %v2290_v16 = vmul.f32 1.442695, %v2287_v15 }
 0x6eb   : > { %5207 = vpow2.f32 %v2290_v16 }
 0x6ec   : > { %5209 = vrcp.f32 %v2294_v13 }
 0x6f8   : > { %v5208_v17 = vpop.eup %5207 }
 0x6f9   : > { %v2295_v18 = vsel %vm1422_vm3, %v5208_v17, 0.0  ;;  %v5210_v19 = vpop.eup %5209 }
 0x6fa   : > { %2296 = vadd.xlane.f32.xlu0 %v2295_v18  ;;  %v2300_v25 = vmul.f32 %v5210_v19, %v5202_v62 }
 0x710   : > { %2302 = vrot.lane.b32.xlu0 %v5613_v12, %s5365_s13  ;;  %s6066_s13 = scalar_lea.vmem %s6065_s11, %s5542_s0  ;;  %s6068_s11 = sld [smem:[#allocation37_spill]] }
 0x711   : > { %v4691_v37 = vld [vmem:[%s6066_s13] ss:$0 sm:$0xff] }
 0x716   : > { %v2530_v23 = vld [vmem:[%s6068_s11 + $0x18] sm:$0xff]  ;;  %v2529_v58 = vld [vmem:[%s6068_s11 + $0x10] sm:$0xff]  ;;  %v2528_v60 = vld [vmem:[%s6068_s11 + $0x8] sm:$0xff] }
 0x717   : > { %4977 = vmatprep.subr.mxu0 %v2530_v23  ;;  %v2527_v62 = vld [vmem:[%s6068_s11] sm:$0xff]  ;;  %s6073_s11 = sld [smem:[#allocation12_spill]] }
 0x718   : > { %4978 = vmatpush3.msra.mxu0 %v2530_v23  ;;  %v2537_v23 = vld [vmem:[%s5566_s9] sm:$0xff] }
 0x719   : > { %4979 = vmatprep.subr.mxu0 %v2529_v58 }
 0x71a   : > { %4980 = vmatpush3.msra.mxu0 %v2529_v58 }
 0x71b   : > { %4981 = vmatprep.subr.mxu0 %v2528_v60 }
 0x71c   : > { %4982 = vmatpush3.msra.mxu0 %v2528_v60 }
 0x71d   : > { %4983 = vmatprep.subr.mxu0 %v2527_v62 }
 0x71e   : > { %4984 = vmatpush3.msra.mxu0 %v2527_v62 }
 0x783   : > { %v4952_v21 = vpop.f32.mrf.mxu1  ;;  %v2297_v22 = vpop.xlane.xlu0 %2296 }
 0x784   : > { %5211 = vrcp.f32 %v2297_v22 }
 0x785   : > { %v2093_v24 = vpop.f32.mrf.mxu1 }
 0x786   : > { %4955 = vmatprep.mubr.msk.f32.mxu1 %vm1334_vm2, %v2093_v24 }
 0x787   : > { %4956 = vmatmul.mubr.msk.f32.vlgmr.msra.gmra.mxu1 %vm1334_vm2, %v4952_v21  ;;  %v2303_v26 = vpop.permute.xlu0 %2302 }
 0x788   : > { %4966 = vmatpush3.msra.mxu1 %v2305_v10  ;;  %4969 = vmatprep.mubr.msk.f32.mxu1 %vm1422_vm3, %v2300_v25  ;;  %v4693_v10 = vld [vmem:[%s1202_s16] ss:$0 sm:$0xff]  ;;  %s6074_s16 = scalar_lea.vmem %s6071_s17, %s5542_s0 }
 0x789   : > { %4967 = vmatprep.subr.mxu1 %v2303_v26  ;;  %v4694_v25 = vld [vmem:[%s6074_s16] ss:$0 sm:$0xff] }
 0x78a   : > { %4968 = vmatpush3.msra.mxu1 %v2303_v26 }
 0x78b   : > { %4972 = vmatprep.subr.mxu1 %v1236_v28 }
 0x791   : > { %v5212_v12 = vpop.eup %5211 }
 0x792   : > { %v2301_v27 = vmul.f32 %v5212_v12, %v5208_v17  ;;  %v4697_v17 = vld [vmem:[%s6072_s3] ss:$0 sm:$0xff] }
 0x794   : > { %4970 = vmatmul.mubr.msk.f32.vlgmr.msra.gmra.mxu1 %vm1422_vm3, %v2301_v27 }
 0x795   : > { %4973 = vmatpush3.msra.mxu1 %v1236_v28 }
 0x796   : > { %4988 = vmatprep.subr.mxu1 %v2535_v54 }
 0x847   : > { %v4957_v29 = vpop.f32.mrf.mxu1 }
 0x848   : > { %v2184_v30 = vadd.f32 %v4957_v29, %v5703_v32  ;;  %v5797_v29 = vld [vmem:[%s6073_s11 + $0x8] sm:$0xff] }
 0x849   : > { %v2174_v31 = vpop.f32.mrf.mxu1 }
 0x84a   : > { %v2183_v33 = vadd.f32 %v2174_v31, %v5705_v34 }
 0x854   : > { %v4971_v35 = vpop.f32.mrf.mxu1 }
 0x856   : > { %v2380_v36 = vpop.f32.mrf.mxu1 }
 0x857   : > { %4974 = vmatprep.mubr.msk.f32.mxu1 %vm1334_vm2, %v2380_v36 }
 0x858   : > { %4975 = vmatmul.mubr.msk.f32.vlgmr.msra.gmra.mxu1 %vm1334_vm2, %v4971_v35 }
 0x859   : > { %4989 = vmatpush3.msra.mxu1 %v2535_v54  ;;  %4996 = vmatprep.mubr.msk.f32.mxu1 %vm1246_vm1, %v1226_v56 }
 0x85a   : > { %4990 = vmatprep.subr.mxu1 %v2534_v55 }
 0x85b   : > { %4991 = vmatpush3.msra.mxu1 %v2534_v55 }
 0x85c   : > { %4992 = vmatprep.subr.mxu1 %v2533_v57 }
 0x85d   : > { %4993 = vmatpush3.msra.mxu1 %v2533_v57 }
 0x85e   : > { %4994 = vmatprep.subr.mxu1 %v2532_v59 }
 0x85f   : > { %4995 = vmatpush3.msra.mxu1 %v2532_v59 }
 0x860   : > { %4997 = vmatmul.mubr.msk.f32.vlgmr.msra.gmra.mxu1 %vm1246_vm1, %v1227_v61 }
 0x918   : > { %v4976_v38 = vpop.f32.mrf.mxu1 }
 0x919   : > { %v2471_v39 = vadd.f32 %v4976_v38, %v2184_v30 }
 0x91a   : > { %v2461_v40 = vpop.f32.mrf.mxu1 }
 0x91b   : > { %v2479_v41 = vadd.f32 %v4691_v37, %v2471_v39  ;;  %v2470_v42 = vadd.f32 %v2461_v40, %v2183_v33  ;;  %v5800_v33 = vld [vmem:[%s6073_s11] sm:$0xff] }
 0x91d   : > { %v2478_v43 = vadd.f32 %v4691_v37, %v2470_v42  ;;  %v2481_v44 = vadd.f32 %v2479_v41, %v5604_v7 }
 0x91f   : > { %v2487_v32 = vsel %vm1246_vm1, %v2481_v44, 0.0  ;;  %v2480_v34 = vadd.f32 %v2478_v43, %v5598_v4 }
 0x920   : > { %2488 = vadd.xlane.f32.xlu0 %v2487_v32  ;;  %v4998_v18 = vpop.f32.mrf.mxu1 }
 0x921   : > { %v2484_v45 = vsel %vm1246_vm1, %v2480_v34, 0.0  ;;  %v5773_v19 = vadd.f32 %v4998_v18, %v4697_v17 }
 0x922   : > { %2485 = vadd.xlane.f32.xlu1 %v2484_v45  ;;  %v2709_v21 = vpop.f32.mrf.mxu1 }
 0x923   : > { %4999 = vmatprep.subr.msk.mxu0 %vm1334_vm2, %v5773_v19  ;;  %v5777_v22 = vadd.f32 %v4697_v17, %v2709_v21 }
 0x9a9   : > { %v2489_v46 = vpop.xlane.xlu0 %2488 }
 0x9aa   : > { %v2492_v47 = vmul.f32 0.03125, %v2489_v46 }
 0x9ab   : > { %v2486_v48 = vpop.xlane.xlu1 %2485 }
 0x9ac   : > { %v2494_v49 = vsub.f32 %v2481_v44, %v2492_v47  ;;  %v2491_v50 = vmul.f32 0.03125, %v2486_v48 }
 0x9ae   : > { %v2493_v7 = vsub.f32 %v2480_v34, %v2491_v50  ;;  %v2496_v51 = vmul.f32 %v2494_v49, %v2494_v49 }
 0x9b0   : > { %v2500_v52 = vsel %vm1246_vm1, %v2496_v51, 0.0  ;;  %v2495_v4 = vmul.f32 %v2493_v7, %v2493_v7 }
 0x9b1   : > { %2501 = vadd.xlane.f32.xlu0 %v2500_v52 }
 0x9b2   : > { %v2497_v53 = vsel %vm1246_vm1, %v2495_v4, 0.0 }
 0x9b3   : > { %2498 = vadd.xlane.f32.xlu1 %v2497_v53 }
 0xa3a   : > { %v2502_v63 = vpop.xlane.xlu0 %2501 }
 0xa3b   : > { %v2504_v0 = vmul.f32 0.03125, %v2502_v63 }
 0xa3c   : > { %v2499_v1 = vpop.xlane.xlu1 %2498 }
 0xa3d   : > { %v2506_v2 = vadd.f32 1e-05, %v2504_v0  ;;  %v2503_v3 = vmul.f32 0.03125, %v2499_v1 }
 0xa3f   : > { %5213 = vrsqrt.f32 %v2506_v2  ;;  %v2505_v5 = vadd.f32 1e-05, %v2503_v3 }
 0xa41   : > { %5215 = vrsqrt.f32 %v2505_v5 }
 0xa4c   : > { %v5214_v6 = vpop.eup %5213 }
 0xa4d   : > { %v2510_v9 = vmul.f32 %v5214_v6, %v2494_v49 }
 0xa4e   : > { %v5216_v11 = vpop.eup %5215 }
 0xa4f   : > { %v2509_v20 = vmul.f32 %v5216_v11, %v2493_v7  ;;  %v2518_v13 = vmul.f32 %v4692_v8, %v2510_v9 }
 0xa51   : > { %v2517_v14 = vmul.f32 %v4692_v8, %v2509_v20  ;;  %v5764_v16 = vadd.f32 %v4693_v10, %v2518_v13 }
 0xa53   : > { %v5762_v15 = vadd.f32 %v4693_v10, %v2517_v14 }
 0xa55   : > { %4985 = vmatprep.mubr.msk.f32.mxu0 %vm1246_vm1, %v5762_v15 }
 0xa56   : > { %4986 = vmatmul.mubr.msk.f32.vlgmr.msra.gmra.mxu0 %vm1246_vm1, %v5764_v16 }
 0xa57   : > { %5000 = vmatpush3.xpose.msk.msra.mxu0 %vm1334_vm2, %v5773_v19 }
 0xa58   : > { %5001 = vmatprep.subr.msk.mxu0 %vm1334_vm2, %v5777_v22 }
 0xa5b   : > { %5002 = vmatpush3.xpose.msk.msra.mxu0 %vm1334_vm2, %v5777_v22 }
 0xb16   : > { %v4987_v24 = vpop.f32.mrf.mxu0 }
 0xb17   : > { %v5790_v27 = vadd.f32 %v4987_v24, %v4694_v25 }
 0xb18   : > { %v2622_v26 = vpop.f32.mrf.mxu0 }
 0xb19   : > { %v5788_v12 = vadd.f32 %v4694_v25, %v2622_v26  ;;  %v2538_v26 = vld [vmem:[%s5566_s9 + $0x8] sm:$0xff] }
 0xb1b   : > { %5003 = vmatprep.mubr.msk.f32.mxu0 %vm1334_vm2, %v5788_v12 }
 0xb1c   : > { %5004 = vmatmul.mubr.msk.f32.vlgmr.msra.gmra.mxu0 %vm1334_vm2, %v5790_v27 }
 0xbdc   : > { %v5005_v28 = vpop.f32.mrf.mxu0 }
 0xbdd   : > { %v2806_v30 = vmul.f32 0.35355338, %v5005_v28 }
 0xbde   : > { %v2796_v31 = vpop.f32.mrf.mxu0 }
 0xbdf   : > { %v2805_v35 = vmul.f32 0.35355338, %v2796_v31  ;;  %v2808_v36 = vadd.f32 %v2806_v30, %v5797_v29 }
 0xbe1   : > { %v2812_v37 = vsel %vm1422_vm3, %v2808_v36, -inf  ;;  %v2807_v38 = vadd.f32 %v2805_v35, %v5800_v33 }
 0xbe2   : > { %2813 = vmax.xlane.f32.xlu0 %v2812_v37 }
 0xbe3   : > { %v2809_v39 = vsel %vm1422_vm3, %v2807_v38, -inf }
 0xbe4   : > { %2810 = vmax.xlane.f32.xlu1 %v2809_v39 }
 0xbf5   : > { %2833 = vrot.lane.b32.xlu1 %v5773_v19, %s5356_s26 }
 0xbf9   : > { %2924 = vrot.lane.b32.xlu1 %v5773_v19, %s5357_s1 }
 0xbfd   : > { %2922 = vrot.lane.b32.xlu1 %v5777_v22, %s5357_s1 }
 0xc6b   : > { %v2814_v40 = vpop.xlane.xlu0 %2813 }
 0xc6c   : > { %v2816_v41 = vsub.f32 %v2808_v36, %v2814_v40 }
 0xc6d   : > { %v2811_v42 = vpop.xlane.xlu1 %2810 }
 0xc6e   : > { %v2819_v43 = vmul.f32 1.442695, %v2816_v41  ;;  %v2815_v44 = vsub.f32 %v2807_v38, %v2811_v42 }
 0xc70   : > { %5217 = vpow2.f32 %v2819_v43  ;;  %v2817_v32 = vmul.f32 1.442695, %v2815_v44 }
 0xc71   : > { %v2834_v34 = vpop.permute.xlu1 %2833 }
 0xc72   : > { %5219 = vpow2.f32 %v2817_v32  ;;  %5006 = vmatprep.subr.mxu1 %v2834_v34 }
 0xc73   : > { %5007 = vmatpush3.msra.mxu1 %v2834_v34 }
 0xc75   : > { %v2925_v49 = vpop.permute.xlu1 %2924 }
 0xc79   : > { %v2923_v50 = vpop.permute.xlu1 %2922 }
 0xc7d   : > { %v5218_v45 = vpop.eup %5217 }
 0xc7e   : > { %v2824_v46 = vsel %vm1422_vm3, %v5218_v45, 0.0 }
 0xc7f   : > { %v5220_v47 = vpop.eup %5219  ;;  %2825 = vadd.xlane.f32.xlu0 %v2824_v46 }
 0xc80   : > { %v2821_v48 = vsel %vm1422_vm3, %v5220_v47, 0.0 }
 0xc81   : > { %2822 = vadd.xlane.f32.xlu1 %v2821_v48 }
 0xc92   : > { %2920 = vrot.lane.b32.xlu1 %v5790_v27, %s5357_s1 }
 0xc95   : > { %2831 = vrot.lane.b32.xlu0 %v5777_v22, %s5356_s26 }
 0xc99   : > { %2918 = vrot.lane.b32.xlu0 %v5788_v12, %s5357_s1 }
 0xd08   : > { %v2826_v7 = vpop.xlane.xlu0 %2825 }
 0xd09   : > { %5221 = vrcp.f32 %v2826_v7 }
 0xd0a   : > { %v2823_v51 = vpop.xlane.xlu1 %2822 }
 0xd0b   : > { %5223 = vrcp.f32 %v2823_v51 }
 0xd0c   : > { %v2832_v52 = vpop.permute.xlu0 %2831 }
 0xd0d   : > { %5008 = vmatprep.subr.mxu1 %v2832_v52 }
 0xd0e   : > { %5009 = vmatpush3.msra.mxu1 %v2832_v52  ;;  %v2921_v57 = vpop.permute.xlu1 %2920 }
 0xd0f   : > { %5013 = vmatprep.subr.msk.mxu1 %vm1334_vm2, %v2925_v49 }
 0xd10   : > { %v2919_v56 = vpop.permute.xlu0 %2918 }
 0xd16   : > { %v5222_v4 = vpop.eup %5221 }
 0xd17   : > { %v2830_v55 = vmul.f32 %v5222_v4, %v5218_v45 }
 0xd18   : > { %v5224_v53 = vpop.eup %5223 }
 0xd19   : > { %v2829_v54 = vmul.f32 %v5224_v53, %v5220_v47 }
 0xd1b   : > { %5010 = vmatprep.mubr.msk.f32.mxu1 %vm1422_vm3, %v2829_v54 }
 0xd1c   : > { %5011 = vmatmul.mubr.msk.f32.vlgmr.msra.gmra.mxu1 %vm1422_vm3, %v2830_v55 }
 0xd1d   : > { %5014 = vmatpush3.xpose.msk.msra.mxu1 %vm1334_vm2, %v2925_v49  ;;  %5017 = vmatprep.mubr.msk.f32.mxu1 %vm1334_vm2, %v2919_v56 }
 0xd1e   : > { %5015 = vmatprep.subr.msk.mxu1 %vm1334_vm2, %v2923_v50 }
 0xd21   : > { %5016 = vmatpush3.xpose.msk.msra.mxu1 %vm1334_vm2, %v2923_v50 }
 0xd22   : > { %5032 = vmatprep.subr.mxu1 %v2537_v23 }
 0xd24   : > { %5018 = vmatmul.mubr.msk.f32.vlgmr.msra.gmra.mxu1 %vm1334_vm2, %v2921_v57 }
 0xd25   : > { %5033 = vmatpush3.msra.mxu1 %v2537_v23 }
 0xddc   : > { %v5012_v58 = vpop.f32.mrf.mxu1 }
 0xdde   : > { %v2909_v59 = vpop.f32.mrf.mxu1 }
 0xddf   : > { %5034 = vmatprep.mubr.msk.f32.mxu1 %vm1334_vm2, %v2909_v59 }
 0xde0   : > { %5035 = vmatmul.mubr.msk.f32.vlgmr.msra.gmra.mxu1 %vm1334_vm2, %v5012_v58 }
 0xde4   : > { %v5019_v60 = vpop.f32.mrf.mxu1 }
 0xde5   : > { %v3010_v61 = vmul.f32 0.35355338, %v5019_v60 }
 0xde6   : > { %v3000_v62 = vpop.f32.mrf.mxu1 }
 0xde7   : > { %v3009_v63 = vmul.f32 0.35355338, %v3000_v62  ;;  %v3012_v0 = vadd.f32 %v3010_v61, %v5797_v29 }
 0xde9   : > { %v3016_v1 = vsel %vm1422_vm3, %v3012_v0, -inf  ;;  %v3011_v2 = vadd.f32 %v3009_v63, %v5800_v33 }
 0xdea   : > { %3017 = vmax.xlane.f32.xlu1 %v3016_v1 }
 0xdeb   : > { %v3013_v3 = vsel %vm1422_vm3, %v3011_v2, -inf }
 0xdec   : > { %3014 = vmax.xlane.f32.xlu0 %v3013_v3 }
 0xdfb   : > { %3037 = vrot.lane.b32.xlu1 %v5773_v19, %s5355_s19 }
 0xdff   : > { %3290 = vrot.lane.b32.xlu1 %v5773_v19, %s5361_s22 }
 0xe03   : > { %3288 = vrot.lane.b32.xlu1 %v5777_v22, %s5361_s22 }
 0xe07   : > { %3286 = vrot.lane.b32.xlu1 %v5790_v27, %s5361_s22 }
 0xe0b   : > { %3575 = vrot.lane.b32.xlu1 %v5777_v22, %s5363_s14 }
 0xe0f   : > { %3573 = vrot.lane.b32.xlu1 %v5790_v27, %s5363_s14 }
 0xe73   : > { %v3018_v5 = vpop.xlane.xlu1 %3017 }
 0xe74   : > { %v3020_v6 = vsub.f32 %v3012_v0, %v3018_v5 }
 0xe75   : > { %v3015_v8 = vpop.xlane.xlu0 %3014 }
 0xe76   : > { %v3023_v9 = vmul.f32 1.442695, %v3020_v6  ;;  %v3019_v11 = vsub.f32 %v3011_v2, %v3015_v8 }
 0xe77   : > { %v3038_v20 = vpop.permute.xlu1 %3037 }
 0xe78   : > { %5225 = vpow2.f32 %v3023_v9  ;;  %v3021_v13 = vmul.f32 1.442695, %v3019_v11  ;;  %5020 = vmatprep.subr.mxu0 %v3038_v20 }
 0xe79   : > { %5021 = vmatpush3.msra.mxu0 %v3038_v20 }
 0xe7a   : > { %5227 = vpow2.f32 %v3021_v13 }
 0xe7b   : > { %v3291_v35 = vpop.permute.xlu1 %3290 }
 0xe7f   : > { %v3289_v37 = vpop.permute.xlu1 %3288 }
 0xe83   : > { %v3287_v40 = vpop.permute.xlu1 %3286 }
 0xe85   : > { %v5226_v10 = vpop.eup %5225 }
 0xe86   : > { %v3028_v14 = vsel %vm1422_vm3, %v5226_v10, 0.0 }
 0xe87   : > { %v5228_v17 = vpop.eup %5227  ;;  %3029 = vadd.xlane.f32.xlu0 %v3028_v14  ;;  %v3576_v42 = vpop.permute.xlu1 %3575 }
 0xe88   : > { %v3025_v18 = vsel %vm1422_vm3, %v5228_v17, 0.0 }
 0xe8b   : > { %3026 = vadd.xlane.f32.xlu0 %v3025_v18  ;;  %v3574_v43 = vpop.permute.xlu1 %3573 }
 0xea1   : > { %3035 = vrot.lane.b32.xlu0 %v5777_v22, %s5355_s19 }
 0xea5   : > { %3284 = vrot.lane.b32.xlu0 %v5788_v12, %s5361_s22 }
 0xea9   : > { %3577 = vrot.lane.b32.xlu0 %v5773_v19, %s5363_s14 }
 0xead   : > { %3571 = vrot.lane.b32.xlu0 %v5788_v12, %s5363_s14 }
 0xf10   : > { %v3030_v21 = vpop.xlane.xlu0 %3029 }
 0xf11   : > { %5229 = vrcp.f32 %v3030_v21 }
 0xf14   : > { %v3027_v24 = vpop.xlane.xlu0 %3026 }
 0xf15   : > { %5231 = vrcp.f32 %v3027_v24 }
 0xf18   : > { %v3036_v25 = vpop.permute.xlu0 %3035 }
 0xf19   : > { %5022 = vmatprep.subr.mxu0 %v3036_v25 }
 0xf1a   : > { %5023 = vmatpush3.msra.mxu0 %v3036_v25 }
 0xf1b   : > { %5027 = vmatprep.subr.mxu0 %v2538_v26 }
 0xf1c   : > { %v3285_v12 = vpop.permute.xlu0 %3284 }
 0xf1e   : > { %v5230_v27 = vpop.eup %5229 }
 0xf1f   : > { %v3034_v31 = vmul.f32 %v5230_v27, %v5226_v10  ;;  %v2539_v10 = vld [vmem:[%s5566_s9 + $0x10] sm:$0xff] }
 0xf20   : > { %v3578_v39 = vpop.permute.xlu0 %3577 }
 0xf22   : > { %v5232_v28 = vpop.eup %5231 }
 0xf23   : > { %v3033_v30 = vmul.f32 %v5232_v28, %v5228_v17 }
 0xf24   : > { %v3572_v41 = vpop.permute.xlu0 %3571 }
 0xf25   : > { %5024 = vmatprep.mubr.msk.f32.mxu0 %vm1422_vm3, %v3033_v30  ;;  %v5036_v30 = vpop.f32.mrf.mxu1 }
 0xf26   : > { %5025 = vmatmul.mubr.msk.f32.vlgmr.msra.gmra.mxu0 %vm1422_vm3, %v3034_v31 }
 0xf27   : > { %5028 = vmatpush3.msra.mxu0 %v2538_v26  ;;  %v3275_v31 = vpop.f32.mrf.mxu1 }
 0xf28   : > { %5037 = vmatprep.subr.msk.mxu0 %vm1334_vm2, %v3291_v35 }
 0xfe6   : > { %v5026_v36 = vpop.f32.mrf.mxu0 }
 0xfe8   : > { %v3113_v38 = vpop.f32.mrf.mxu0 }
 0xfe9   : > { %5029 = vmatprep.mubr.msk.f32.mxu0 %vm1334_vm2, %v3113_v38 }
 0xfea   : > { %5030 = vmatmul.mubr.msk.f32.vlgmr.msra.gmra.mxu0 %vm1334_vm2, %v5026_v36 }
 0xfeb   : > { %5038 = vmatpush3.xpose.msk.msra.mxu0 %vm1334_vm2, %v3291_v35  ;;  %5041 = vmatprep.mubr.msk.f32.mxu0 %vm1334_vm2, %v3285_v12 }
 0xfec   : > { %5039 = vmatprep.subr.msk.mxu0 %vm1334_vm2, %v3289_v37 }
 0xfef   : > { %5040 = vmatpush3.xpose.msk.msra.mxu0 %vm1334_vm2, %v3289_v37 }
 0xff0   : > { %5056 = vmatprep.subr.msk.mxu0 %vm1334_vm2, %v3578_v39 }
 0xff2   : > { %5042 = vmatmul.mubr.msk.f32.vlgmr.msra.gmra.mxu0 %vm1334_vm2, %v3287_v40 }
 0xff3   : > { %5057 = vmatpush3.xpose.msk.msra.mxu0 %vm1334_vm2, %v3578_v39  ;;  %5060 = vmatprep.mubr.msk.f32.mxu0 %vm1334_vm2, %v3572_v41  ;;  %v2540_v41 = vld [vmem:[%s5566_s9 + $0x18] sm:$0xff] }
 0xff4   : > { %5058 = vmatprep.subr.msk.mxu0 %vm1334_vm2, %v3576_v42 }
 0xff7   : > { %5059 = vmatpush3.xpose.msk.msra.mxu0 %vm1334_vm2, %v3576_v42 }
 0xffa   : > { %5061 = vmatmul.mubr.msk.f32.vlgmr.msra.gmra.mxu0 %vm1334_vm2, %v3574_v43 }
0x10aa   : > { %v5874_v44 = vpop.f32.mrf.mxu0 }
0x10ab   : > { %v3281_v42 = vadd.f32 %v5036_v30, %v5874_v44  ;;  %v4009_v30 = vld [vmem:[%s5577_s28 + $0x18] sm:$0xff] }
0x10ac   : > { %v5876_v32 = vpop.f32.mrf.mxu0 }
0x10b2   : > { %v5043_v34 = vpop.f32.mrf.mxu0 }
0x10b3   : > { %v3376_v45 = vmul.f32 0.35355338, %v5043_v34  ;;  %v3276_v34 = vadd.f32 %v3275_v31, %v5876_v32  ;;  %v4008_v31 = vld [vmem:[%s5577_s28 + $0x10] sm:$0xff] }
0x10b4   : > { %v3366_v46 = vpop.f32.mrf.mxu0 }
0x10b5   : > { %v3375_v47 = vmul.f32 0.35355338, %v3366_v46  ;;  %v3378_v48 = vadd.f32 %v3376_v45, %v5797_v29 }
0x10b7   : > { %v3382_v49 = vsel %vm1422_vm3, %v3378_v48, -inf  ;;  %v3377_v50 = vadd.f32 %v3375_v47, %v5800_v33 }
0x10b8   : > { %3383 = vmax.xlane.f32.xlu1 %v3382_v49 }
0x10b9   : > { %v3379_v7 = vsel %vm1422_vm3, %v3377_v50, -inf }
0x10ba   : > { %3380 = vmax.xlane.f32.xlu0 %v3379_v7  ;;  %v5062_v51 = vpop.f32.mrf.mxu0 }
0x10bb   : > { %v3663_v3 = vmul.f32 0.35355338, %v5062_v51 }
0x10bc   : > { %v3653_v52 = vpop.f32.mrf.mxu0 }
0x10bd   : > { %v3662_v4 = vmul.f32 0.35355338, %v3653_v52  ;;  %v3665_v8 = vadd.f32 %v3663_v3, %v5797_v29  ;;  %v4013_v3 = vld [vmem:[%s5577_s28 + $0x38] sm:$0xff] }
0x10bf   : > { %v3664_v53 = vadd.f32 %v3662_v4, %v5800_v33  ;;  %v3669_v9 = vsel %vm1422_vm3, %v3665_v8, -inf }
0x10c1   : > { %v3666_v54 = vsel %vm1422_vm3, %v3664_v53, -inf }
0x10c9   : > { %3403 = vrot.lane.b32.xlu1 %v5773_v19, %s5360_s18 }
0x10ed   : > { %3667 = vmax.xlane.f32.xlu1 %v3666_v54 }
0x1141   : > { %v3384_v55 = vpop.xlane.xlu1 %3383 }
0x1142   : > { %v3386_v56 = vsub.f32 %v3378_v48, %v3384_v55 }
0x1143   : > { %v3381_v57 = vpop.xlane.xlu0 %3380 }
0x1144   : > { %v3389_v23 = vmul.f32 1.442695, %v3386_v56  ;;  %v3385_v58 = vsub.f32 %v3377_v50, %v3381_v57  ;;  %v4732_v50 = vld [vmem:[%s1180_s21] ss:$0 sm:$0xff] }
0x1145   : > { %v3404_v59 = vpop.permute.xlu1 %3403 }
0x1146   : > { %5233 = vpow2.f32 %v3389_v23  ;;  %v3387_v60 = vmul.f32 1.442695, %v3385_v58  ;;  %5044 = vmatprep.subr.mxu1 %v3404_v59 }
0x1147   : > { %5045 = vmatpush3.msra.mxu1 %v3404_v59 }
0x1148   : > { %5235 = vpow2.f32 %v3387_v60 }
0x1153   : > { %v5234_v61 = vpop.eup %5233 }
0x1154   : > { %v3394_v62 = vsel %vm1422_vm3, %v5234_v61, 0.0 }
0x1155   : > { %v5236_v63 = vpop.eup %5235  ;;  %3395 = vadd.xlane.f32.xlu0 %v3394_v62 }
0x1156   : > { %v3391_v33 = vsel %vm1422_vm3, %v5236_v63, 0.0 }
0x1159   : > { %3392 = vadd.xlane.f32.xlu0 %v3391_v33  ;;  %v3915_v33 = vld [vmem:[%s5571_s25 + $0x18] sm:$0xff] }
0x115a   : > { %5075 = vmatprep.subr.mxu0 %v3915_v33 }
0x115b   : > { %5076 = vmatpush3.msra.mxu0 %v3915_v33 }
0x116f   : > { %3401 = vrot.lane.b32.xlu0 %v5777_v22, %s5360_s18 }
0x1176   : > { %v3668_v0 = vpop.xlane.xlu1 %3667 }
0x1177   : > { %v3672_v1 = vsub.f32 %v3664_v53, %v3668_v0  ;;  %v3914_v0 = vld [vmem:[%s5571_s25 + $0x10] sm:$0xff] }
0x1178   : > { %5077 = vmatprep.subr.mxu0 %v3914_v0 }
0x1179   : > { %v3674_v2 = vmul.f32 1.442695, %v3672_v1  ;;  %v3913_v1 = vld [vmem:[%s5571_s25 + $0x8] sm:$0xff]  ;;  %5078 = vmatpush3.msra.mxu0 %v3914_v0 }
0x117a   : > { %5079 = vmatprep.subr.mxu0 %v3913_v1 }
0x117b   : > { %5237 = vpow2.f32 %v3674_v2  ;;  %v3912_v2 = vld [vmem:[%s5571_s25] sm:$0xff]  ;;  %5080 = vmatpush3.msra.mxu0 %v3913_v1  ;;  %s6077_s25 = scalar_lea.vmem %s5463_s4, %s5542_s0 }
0x117c   : > { %5081 = vmatprep.subr.mxu0 %v3912_v2 }
0x117d   : > { %5082 = vmatpush3.msra.mxu0 %v3912_v2 }
0x1188   : > { %v5238_v5 = vpop.eup %5237 }
0x1189   : > { %v3678_v6 = vsel %vm1422_vm3, %v5238_v5, 0.0 }
0x118a   : > { %3679 = vadd.xlane.f32.xlu1 %v3678_v6  ;;  %v4011_v6 = vld [vmem:[%s5577_s28 + $0x28] sm:$0xff] }
0x118e   : > { %3670 = vmax.xlane.f32.xlu0 %v3669_v9 }
0x119b   : > { %3690 = vrot.lane.b32.xlu1 %v5773_v19, %s5362_s5 }
0x11de   : > { %v3396_v11 = vpop.xlane.xlu0 %3395 }
0x11df   : > { %5239 = vrcp.f32 %v3396_v11 }
0x11e2   : > { %v3393_v20 = vpop.xlane.xlu0 %3392 }
0x11e3   : > { %5241 = vrcp.f32 %v3393_v20 }
0x11e6   : > { %v3402_v13 = vpop.permute.xlu0 %3401 }
0x11e7   : > { %5046 = vmatprep.subr.mxu1 %v3402_v13 }
0x11e8   : > { %5047 = vmatpush3.msra.mxu1 %v3402_v13 }
0x11e9   : > { %5051 = vmatprep.subr.mxu1 %v2539_v10 }
0x11ec   : > { %v5240_v14 = vpop.eup %5239 }
0x11ed   : > { %v3400_v29 = vmul.f32 %v5240_v14, %v5234_v61 }
0x11f0   : > { %v5242_v17 = vpop.eup %5241 }
0x11f1   : > { %v3399_v18 = vmul.f32 %v5242_v17, %v5236_v63 }
0x11f3   : > { %5048 = vmatprep.mubr.msk.f32.mxu1 %vm1422_vm3, %v3399_v18  ;;  %v4733_v18 = vld [vmem:[%s1205_s8] ss:$0 sm:$0xff]  ;;  %s6079_s8 = sld [smem:[#allocation25_spill]] }
0x11f4   : > { %5049 = vmatmul.mubr.msk.f32.vlgmr.msra.gmra.mxu1 %vm1422_vm3, %v3400_v29 }
0x11f5   : > { %5052 = vmatpush3.msra.mxu1 %v2539_v10 }
0x1213   : > { %v3680_v21 = vpop.xlane.xlu1 %3679 }
0x1217   : > { %v3691_v19 = vpop.permute.xlu1 %3690  ;;  %v3671_v24 = vpop.xlane.xlu0 %3670 }
0x1218   : > { %v3673_v25 = vsub.f32 %v3665_v8, %v3671_v24  ;;  %5063 = vmatprep.subr.mxu1 %v3691_v19  ;;  %v4010_v8 = vld [vmem:[%s5577_s28 + $0x20] sm:$0xff] }
0x121a   : > { %v3676_v26 = vmul.f32 1.442695, %v3673_v25  ;;  %v4734_v25 = vld [vmem:[%s1208_s15] ss:$0 sm:$0xff]  ;;  %s6081_s15 = scalar_lea.vmem %s6079_s8, %s5542_s0 }
0x121b   : > { %v4742_v33 = vld [vmem:[%s6081_s15] ss:$0 sm:$0xff] }
0x121c   : > { %5243 = vpow2.f32 %v3676_v26 }
0x121d   : > { %5245 = vrcp.f32 %v3680_v21 }
0x1229   : > { %v5244_v27 = vpop.eup %5243 }
0x122a   : > { %v3681_v28 = vsel %vm1422_vm3, %v5244_v27, 0.0  ;;  %v5246_v35 = vpop.eup %5245 }
0x122b   : > { %3682 = vadd.xlane.f32.xlu0 %v3681_v28  ;;  %v3686_v38 = vmul.f32 %v5246_v35, %v5238_v5  ;;  %v4012_v5 = vld [vmem:[%s5577_s28 + $0x30] sm:$0xff]  ;;  %v4007_v35 = vld [vmem:[%s5577_s28 + $0x8] sm:$0xff] }
0x1241   : > { %3688 = vrot.lane.b32.xlu0 %v5777_v22, %s5362_s5 }
0x12b4   : > { %v5050_v12 = vpop.f32.mrf.mxu1  ;;  %v3683_v36 = vpop.xlane.xlu0 %3682 }
0x12b5   : > { %5247 = vrcp.f32 %v3683_v36  ;;  %v4735_v36 = vld [vmem:[%s1188_s29] ss:$0 sm:$0xff]  ;;  %s6078_s29 = sld [smem:[#allocation24_spill]] }
0x12b6   : > { %v3479_v37 = vpop.f32.mrf.mxu1 }
0x12b7   : > { %5053 = vmatprep.mubr.msk.f32.mxu1 %vm1334_vm2, %v3479_v37 }
0x12b8   : > { %5054 = vmatmul.mubr.msk.f32.vlgmr.msra.gmra.mxu1 %vm1334_vm2, %v5050_v12  ;;  %v3689_v39 = vpop.permute.xlu0 %3688  ;;  %v4006_v12 = vld [vmem:[%s5577_s28] sm:$0xff]  ;;  %s6082_s28 = sld [smem:[#allocation34_spill]] }
0x12b9   : > { %5064 = vmatpush3.msra.mxu1 %v3691_v19  ;;  %5067 = vmatprep.mubr.msk.f32.mxu1 %vm1422_vm3, %v3686_v38 }
0x12ba   : > { %5065 = vmatprep.subr.mxu1 %v3689_v39 }
0x12bb   : > { %5066 = vmatpush3.msra.mxu1 %v3689_v39  ;;  %s6080_s14 = scalar_lea.vmem %s6078_s29, %s5542_s0 }
0x12bc   : > { %5070 = vmatprep.subr.mxu1 %v2540_v41 }
0x12be   : > { %p4743_p5 = scmp.ne.s32.totalorder %s6082_s28, 1 }
0x12bf   : > { %s6083_s10 = sld [smem:[#allocation28_spill]] (!%p4743_p5) }
0x12c0   : > { %s6084_s0 = sld [smem:[#allocation26_spill]] (!%p4743_p5) }
0x12c1   : > { %s6085_s19 = sld [smem:[#allocation27_spill]] (!%p4743_p5) }
0x12c2   : > { %v5248_v22 = vpop.eup %5247  ;;  %s6086_s26 = sld [smem:[#allocation29_spill]] (!%p4743_p5) }
0x12c3   : > { %v3687_v40 = vmul.f32 %v5248_v22, %v5244_v27  ;;  %s6087_s1 = sld [smem:[#allocation32_spill]] (!%p4743_p5) }
0x12c5   : > { %5068 = vmatmul.mubr.msk.f32.vlgmr.msra.gmra.mxu1 %vm1422_vm3, %v3687_v40 }
0x12c6   : > { %5071 = vmatpush3.msra.mxu1 %v2540_v41 }
0x12c7   : > { %5086 = vmatprep.subr.mxu1 %v4013_v3 }
0x1378   : > { %v5055_v43 = vpop.f32.mrf.mxu1 }
0x1379   : > { %v3570_v45 = vadd.f32 %v5055_v43, %v3281_v42  ;;  %v4738_v42 = vld [vmem:[%s6077_s25] ss:$0 sm:$0xff] }
0x137a   : > { %v3560_v46 = vpop.f32.mrf.mxu1 }
0x137b   : > { %v3569_v47 = vadd.f32 %v3560_v46, %v3276_v34 }
0x1385   : > { %v5069_v48 = vpop.f32.mrf.mxu1 }
0x1387   : > { %v3766_v49 = vpop.f32.mrf.mxu1 }
0x1388   : > { %5072 = vmatprep.mubr.msk.f32.mxu1 %vm1334_vm2, %v3766_v49 }
0x1389   : > { %5073 = vmatmul.mubr.msk.f32.vlgmr.msra.gmra.mxu1 %vm1334_vm2, %v5069_v48 }
0x138a   : > { %5087 = vmatpush3.msra.mxu1 %v4013_v3 }
0x138b   : > { %5088 = vmatprep.subr.mxu1 %v4012_v5 }
0x138c   : > { %5089 = vmatpush3.msra.mxu1 %v4012_v5 }
0x138d   : > { %5090 = vmatprep.subr.mxu1 %v4011_v6 }
0x138e   : > { %5091 = vmatpush3.msra.mxu1 %v4011_v6 }
0x138f   : > { %5092 = vmatprep.subr.mxu1 %v4010_v8 }
0x1390   : > { %5093 = vmatpush3.msra.mxu1 %v4010_v8 }
0x1391   : > { %5094 = vmatprep.subr.mxu1 %v4009_v30 }
0x1392   : > { %5095 = vmatpush3.msra.mxu1 %v4009_v30 }
0x1393   : > { %5096 = vmatprep.subr.mxu1 %v4008_v31 }
0x1394   : > { %5097 = vmatpush3.msra.mxu1 %v4008_v31 }
0x1395   : > { %5098 = vmatprep.subr.mxu1 %v4007_v35 }
0x1396   : > { %5099 = vmatpush3.msra.mxu1 %v4007_v35 }
0x1397   : > { %5100 = vmatprep.subr.mxu1 %v4006_v12 }
0x1398   : > { %5101 = vmatpush3.msra.mxu1 %v4006_v12 }
0x1449   : > { %v5074_v7 = vpop.f32.mrf.mxu1 }
0x144a   : > { %v3857_v51 = vadd.f32 %v5074_v7, %v3570_v45 }
0x144b   : > { %v3847_v52 = vpop.f32.mrf.mxu1 }
0x144c   : > { %v3865_v4 = vadd.f32 %v4732_v50, %v3857_v51  ;;  %v3856_v53 = vadd.f32 %v3847_v52, %v3569_v47 }
0x144e   : > { %v3864_v44 = vadd.f32 %v4732_v50, %v3856_v53  ;;  %v3867_v54 = vadd.f32 %v3865_v4, %v5764_v16 }
0x1450   : > { %v3873_v32 = vsel %vm1246_vm1, %v3867_v54, 0.0  ;;  %v3866_v55 = vadd.f32 %v3864_v44, %v5762_v15 }
0x1451   : > { %3874 = vadd.xlane.f32.xlu0 %v3873_v32 }
0x1452   : > { %v3870_v56 = vsel %vm1246_vm1, %v3866_v55, 0.0 }
0x1453   : > { %3871 = vadd.xlane.f32.xlu1 %v3870_v56 }
0x14da   : > { %v3875_v57 = vpop.xlane.xlu0 %3874 }
0x14db   : > { %v3877_v23 = vmul.f32 0.03125, %v3875_v57 }
0x14dc   : > { %v3872_v58 = vpop.xlane.xlu1 %3871 }
0x14dd   : > { %v3879_v59 = vsub.f32 %v3867_v54, %v3877_v23  ;;  %v3876_v60 = vmul.f32 0.03125, %v3872_v58 }
0x14df   : > { %v3878_v61 = vsub.f32 %v3866_v55, %v3876_v60  ;;  %v3881_v62 = vmul.f32 %v3879_v59, %v3879_v59 }
0x14e1   : > { %v3885_v16 = vsel %vm1246_vm1, %v3881_v62, 0.0  ;;  %v3880_v63 = vmul.f32 %v3878_v61, %v3878_v61 }
0x14e2   : > { %3886 = vadd.xlane.f32.xlu0 %v3885_v16  ;;  %v4741_v16 = vld [vmem:[%s6080_s14] ss:$0 sm:$0xff] }
0x14e3   : > { %v3882_v15 = vsel %vm1246_vm1, %v3880_v63, 0.0 }
0x14e4   : > { %3883 = vadd.xlane.f32.xlu1 %v3882_v15 }
0x156b   : > { %v3887_v9 = vpop.xlane.xlu0 %3886 }
0x156c   : > { %v3889_v11 = vmul.f32 0.03125, %v3887_v9 }
0x156d   : > { %v3884_v20 = vpop.xlane.xlu1 %3883 }
0x156e   : > { %v3891_v13 = vadd.f32 1e-05, %v3889_v11  ;;  %v3888_v10 = vmul.f32 0.03125, %v3884_v20 }
0x1570   : > { %5249 = vrsqrt.f32 %v3891_v13  ;;  %v3890_v14 = vadd.f32 1e-05, %v3888_v10 }
0x1572   : > { %5251 = vrsqrt.f32 %v3890_v14 }
0x157d   : > { %v5250_v17 = vpop.eup %5249 }
0x157e   : > { %v3895_v29 = vmul.f32 %v5250_v17, %v3879_v59 }
0x157f   : > { %v5252_v21 = vpop.eup %5251 }
0x1580   : > { %v3894_v19 = vmul.f32 %v5252_v21, %v3878_v61  ;;  %v3903_v24 = vmul.f32 %v4733_v18, %v3895_v29 }
0x1582   : > { %v3902_v26 = vmul.f32 %v4733_v18, %v3894_v19  ;;  %v3911_v28 = vadd.f32 %v4734_v25, %v3903_v24 }
0x1584   : > { %v3910_v27 = vadd.f32 %v4734_v25, %v3902_v26 }
0x1586   : > { %5083 = vmatprep.mubr.msk.f32.mxu0 %vm1246_vm1, %v3910_v27 }
0x1587   : > { %5084 = vmatmul.mubr.msk.f32.vlgmr.msra.gmra.mxu0 %vm1246_vm1, %v3911_v28 }
0x1647   : > { %v5085_v37 = vpop.f32.mrf.mxu0 }
0x1648   : > { %v4001_v38 = vadd.f32 %v5085_v37, %v4735_v36 }
0x1649   : > { %v3995_v39 = vpop.f32.mrf.mxu0 }
0x164a   : > { %v3996_v22 = vadd.f32 %v4735_v36, %v3995_v39  ;;  %v4005_v41 = vmax.f32 %v4001_v38, 0.0 }
0x164c   : > { %v4004_v40 = vmax.f32 %v3996_v22, 0.0 }
0x164e   : > { %5102 = vmatprep.mubr.msk.f32.mxu1 %vm4021_vm4, %v4004_v40 }
0x164f   : > { %5103 = vmatmul.mubr.msk.f32.vlgmr.msra.gmra.mxu1 %vm4021_vm4, %v4005_v41 }
0x170f   : > { %v5104_v43 = vpop.f32.mrf.mxu1 }
0x1710   : > { %v4100_v34 = vadd.f32 %v5104_v43, %v4738_v42 }
0x1711   : > { %v4094_v45 = vpop.f32.mrf.mxu1 }
0x1712   : > { %v4095_v46 = vadd.f32 %v4738_v42, %v4094_v45  ;;  %v4104_v47 = vadd.f32 %v4100_v34, %v3911_v28 }
0x1714   : > { %v4110_v48 = vsel %vm1246_vm1, %v4104_v47, 0.0  ;;  %v4103_v49 = vadd.f32 %v4095_v46, %v3910_v27 }
0x1715   : > { %4111 = vadd.xlane.f32.xlu0 %v4110_v48 }
0x1716   : > { %v4107_v50 = vsel %vm1246_vm1, %v4103_v49, 0.0 }
0x1717   : > { %4108 = vadd.xlane.f32.xlu1 %v4107_v50 }
0x179e   : > { %v4112_v7 = vpop.xlane.xlu0 %4111 }
0x179f   : > { %v4114_v51 = vmul.f32 0.03125, %v4112_v7 }
0x17a0   : > { %v4109_v52 = vpop.xlane.xlu1 %4108 }
0x17a1   : > { %v4116_v4 = vsub.f32 %v4104_v47, %v4114_v51  ;;  %v4113_v53 = vmul.f32 0.03125, %v4109_v52 }
0x17a3   : > { %v4115_v44 = vsub.f32 %v4103_v49, %v4113_v53  ;;  %v4118_v54 = vmul.f32 %v4116_v4, %v4116_v4 }
0x17a5   : > { %v4122_v32 = vsel %vm1246_vm1, %v4118_v54, 0.0  ;;  %v4117_v55 = vmul.f32 %v4115_v44, %v4115_v44 }
0x17a6   : > { %4123 = vadd.xlane.f32.xlu0 %v4122_v32 }
0x17a7   : > { %v4119_v56 = vsel %vm1246_vm1, %v4117_v55, 0.0 }
0x17a8   : > { %4120 = vadd.xlane.f32.xlu1 %v4119_v56 }
0x182f   : > { %v4124_v57 = vpop.xlane.xlu0 %4123 }
0x1830   : > { %v4126_v23 = vmul.f32 0.03125, %v4124_v57 }
0x1831   : > { %v4121_v58 = vpop.xlane.xlu1 %4120 }
0x1832   : > { %v4128_v59 = vadd.f32 1e-05, %v4126_v23  ;;  %v4125_v60 = vmul.f32 0.03125, %v4121_v58 }
0x1834   : > { %5253 = vrsqrt.f32 %v4128_v59  ;;  %v4127_v61 = vadd.f32 1e-05, %v4125_v60 }
0x1836   : > { %5255 = vrsqrt.f32 %v4127_v61 }
0x1841   : > { %v5254_v62 = vpop.eup %5253 }
0x1842   : > { %v4132_v63 = vmul.f32 %v5254_v62, %v4116_v4 }
0x1843   : > { %v5256_v15 = vpop.eup %5255 }
0x1844   : > { %v4140_v0 = vmul.f32 %v4741_v16, %v4132_v63  ;;  %v4131_v1 = vmul.f32 %v5256_v15, %v4115_v44 }
0x1846   : > { %v4148_v2 = vadd.f32 %v4742_v33, %v4140_v0  ;;  %v4139_v3 = vmul.f32 %v4741_v16, %v4131_v1  ;;  %4154 = sbr.rel (%p4743_p5) target bundleno = 7157 (0x1bf5), region = 140 }
0x1848   : > { %4150 = vst.msk [vmem:[#allocation2 + $0x8] sm:$0xff] %vm1246_vm1, %v4148_v2  ;;  %v4147_v5 = vadd.f32 %v4742_v33, %v4139_v3 }
0x184a   : > { %4149 = vst.msk [vmem:[#allocation2] sm:$0xff] %vm1246_vm1, %v4147_v5 }
0x184b   : > { %v4157_v6 = vsel %vm1246_vm1, %v4147_v5, 0.0  ;;  %v4160_v8 = vsel %vm1246_vm1, %v4148_v2, 0.0  ;;  %v4204_v19 = vld [vmem:[%s6083_s10 + $0x18] sm:$0xff]  ;;  %v4203_v24 = vld [vmem:[%s6083_s10 + $0x10] sm:$0xff]  ;;  %v4202_v25 = vld [vmem:[%s6083_s10 + $0x8] sm:$0xff]  ;;  %v4301_v51 = vlaneseq  ;;  %vm4337_vm9 = vcmask 7168  }
0x184c   : > { %4158 = vadd.xlane.f32.xlu0 %v4157_v6  ;;  %5105 = vmatprep.subr.mxu0 %v4204_v19  ;;  %v4201_v26 = vld [vmem:[%s6083_s10] sm:$0xff] }
0x184d   : > { %5106 = vmatpush3.msra.mxu0 %v4204_v19  ;;  %v4744_v37 = vld [vmem:[%s6084_s0] ss:$0 sm:$0xff]  ;;  %v4302_v52 = vand.u32 127, %v4301_v51 }
0x184e   : > { %5107 = vmatprep.subr.mxu0 %v4203_v24  ;;  %v4745_v39 = vld [vmem:[%s6085_s19] ss:$0 sm:$0xff] }
0x184f   : > { %5108 = vmatpush3.msra.mxu0 %v4203_v24  ;;  %v4746_v45 = vld [vmem:[%s6086_s26] ss:$0 sm:$0xff] }
0x1850   : > { %4161 = vadd.xlane.f32.xlu0 %v4160_v8  ;;  %5109 = vmatprep.subr.mxu0 %v4202_v25 }
0x1851   : > { %5110 = vmatpush3.msra.mxu0 %v4202_v25 }
0x1852   : > { %5111 = vmatprep.subr.mxu0 %v4201_v26 }
0x1853   : > { %5112 = vmatpush3.msra.mxu0 %v4201_v26 }
0x18d5   : > { %v4159_v9 = vpop.xlane.xlu0 %4158 }
0x18d6   : > { %v4163_v11 = vmul.f32 0.03125, %v4159_v9 }
0x18d8   : > { %v4165_v20 = vsub.f32 %v4147_v5, %v4163_v11 }
0x18d9   : > { %v4162_v13 = vpop.xlane.xlu0 %4161 }
0x18da   : > { %v4164_v10 = vmul.f32 0.03125, %v4162_v13  ;;  %v4167_v14 = vmul.f32 %v4165_v20, %v4165_v20 }
0x18dc   : > { %v4166_v17 = vsub.f32 %v4148_v2, %v4164_v10  ;;  %v4169_v18 = vsel %vm1246_vm1, %v4167_v14, 0.0 }
0x18dd   : > { %4170 = vadd.xlane.f32.xlu1 %v4169_v18 }
0x18de   : > { %v4168_v29 = vmul.f32 %v4166_v17, %v4166_v17 }
0x18e0   : > { %v4172_v21 = vsel %vm1246_vm1, %v4168_v29, 0.0 }
0x18e1   : > { %4173 = vadd.xlane.f32.xlu1 %v4172_v21 }
0x1966   : > { %v4171_v27 = vpop.xlane.xlu1 %4170 }
0x1967   : > { %v4175_v28 = vmul.f32 0.03125, %v4171_v27 }
0x1969   : > { %v4177_v30 = vadd.f32 1e-05, %v4175_v28 }
0x196a   : > { %v4174_v31 = vpop.xlane.xlu1 %4173 }
0x196b   : > { %5257 = vrsqrt.f32 %v4177_v30  ;;  %v4176_v35 = vmul.f32 0.03125, %v4174_v31 }
0x196d   : > { %v4178_v12 = vadd.f32 1e-05, %v4176_v35 }
0x196f   : > { %5259 = vrsqrt.f32 %v4178_v12 }
0x1978   : > { %v5258_v36 = vpop.eup %5257 }
0x1979   : > { %v4181_v38 = vmul.f32 %v5258_v36, %v4165_v20 }
0x197b   : > { %v4189_v22 = vmul.f32 %v4744_v37, %v4181_v38 }
0x197c   : > { %v5260_v40 = vpop.eup %5259 }
0x197d   : > { %v4182_v41 = vmul.f32 %v5260_v40, %v4166_v17  ;;  %v4197_v42 = vadd.f32 %v4745_v39, %v4189_v22 }
0x197f   : > { %v4190_v43 = vmul.f32 %v4744_v37, %v4182_v41  ;;  %4199 = vst.msk [vmem:[#allocation3] sm:$0xff] %vm1246_vm1, %v4197_v42  ;;  %5113 = vmatprep.mubr.msk.f32.mxu0 %vm1246_vm1, %v4197_v42 }
0x1981   : > { %v4198_v34 = vadd.f32 %v4745_v39, %v4190_v43 }
0x1983   : > { %4200 = vst.msk [vmem:[#allocation3 + $0x8] sm:$0xff] %vm1246_vm1, %v4198_v34  ;;  %5114 = vmatmul.mubr.msk.f32.vlgmr.msra.gmra.mxu0 %vm1246_vm1, %v4198_v34 }
0x1a43   : > { %v5115_v46 = vpop.f32.mrf.mxu0 }
0x1a44   : > { %v4290_v47 = vadd.f32 %v5115_v46, %v4746_v45 }
0x1a45   : > { %v4284_v48 = vpop.f32.mrf.mxu0 }
0x1a46   : > { %4294 = vst.msk [vmem:[#allocation5 + $0x8] sm:$0xff] %vm1422_vm3, %v4290_v47  ;;  %v4285_v49 = vadd.f32 %v4746_v45, %v4284_v48  ;;  %v4298_v50 = vsel %vm1422_vm3, %v4290_v47, -inf }
0x1a47   : > { %4299 = vmax.xlane.f32.xlu1 %v4298_v50 }
0x1a48   : > { %4293 = vst.msk [vmem:[#allocation5] sm:$0xff] %vm1422_vm3, %v4285_v49  ;;  %v4295_v7 = vsel %vm1422_vm3, %v4285_v49, -inf }
0x1a49   : > { %4296 = vmax.xlane.f32.xlu0 %v4295_v7 }
0x1ad0   : > { %v4300_v4 = vpop.xlane.xlu1 %4299 }
0x1ad1   : > { %vm4304_vm5 = vcmp.eq.f32.partialorder %v4290_v47, %v4300_v4 }
0x1ad2   : > { %v4306_v53 = vsel %vm4304_vm5, %v4302_v52, 16  ;;  %v4297_v44 = vpop.xlane.xlu0 %4296 }
0x1ad3   : > { %v4322_v54 = vsel %vm1422_vm3, %v4306_v53, 2147483647  ;;  %vm4303_vm6 = vcmp.eq.f32.partialorder %v4285_v49, %v4297_v44 }
0x1ad4   : > { %v4305_v32 = vsel %vm4303_vm6, %v4302_v52, 16  ;;  %v4324_v55 = vshra.s32 %v4322_v54, 16  ;;  %v4323_v59 = vand.u32 65535, %v4322_v54 }
0x1ad5   : > { %v4307_v56 = vsel %vm1422_vm3, %v4305_v32, 2147483647 }
0x1ad6   : > { %v4326_v57 = vcvt.s32.f32 %v4324_v55  ;;  %v4309_v23 = vshra.s32 %v4307_v56, 16  ;;  %v4308_v60 = vand.u32 65535, %v4307_v56  ;;  %v4325_v62 = vcvt.s32.f32 %v4323_v59 }
0x1ad8   : > { %4327 = vmin.xlane.f32.xlu1 %v4326_v57  ;;  %v4311_v58 = vcvt.s32.f32 %v4309_v23  ;;  %v4310_v15 = vcvt.s32.f32 %v4308_v60 }
0x1ada   : > { %4312 = vmin.xlane.f32.xlu0 %v4311_v58 }
0x1b61   : > { %v4328_v61 = vpop.xlane.xlu1 %4327 }
0x1b62   : > { %vm4329_vm7 = vcmp.eq.f32.partialorder %v4326_v57, %v4328_v61  ;;  %v4334_v0 = vcvt.f32.s32 %v4328_v61 }
0x1b63   : > { %v4313_v16 = vpop.xlane.xlu0 %4312  ;;  %v4330_v63 = vsel %vm4329_vm7, %v4325_v62, inf }
0x1b64   : > { %4331 = vmin.xlane.f32.xlu1 %v4330_v63  ;;  %vm4314_vm8 = vcmp.eq.f32.partialorder %v4311_v58, %v4313_v16  ;;  %v4319_v1 = vcvt.f32.s32 %v4313_v16  ;;  %v4335_v3 = vshll.u32 %v4334_v0, 16 }
0x1b65   : > { %v4315_v33 = vsel %vm4314_vm8, %v4310_v15, inf }
0x1b66   : > { %4316 = vmin.xlane.f32.xlu0 %v4315_v33  ;;  %v4320_v8 = vshll.u32 %v4319_v1, 16 }
0x1bed   : > { %v4332_v2 = vpop.xlane.xlu1 %4331 }
0x1bee   : > { %v4333_v5 = vcvt.f32.s32 %v4332_v2 }
0x1bef   : > { %v4317_v6 = vpop.xlane.xlu0 %4316 }
0x1bf0   : > { %v4336_v9 = vadd.s32 %v4335_v3, %v4333_v5  ;;  %v4318_v11 = vcvt.f32.s32 %v4317_v6 }
0x1bf2   : > { %4339 = vst.msk [vmem:[%s6087_s1 + $0x8] sm:$0xff] %vm4337_vm9, %v4336_v9  ;;  %v4321_v20 = vadd.s32 %v4320_v8, %v4318_v11 }
0x1bf4   : > { %4338 = vst.msk [vmem:[%s6087_s1] sm:$0xff] %vm4337_vm9, %v4321_v20 }
0x1bf5 PF: > { %s6088_s18 = sld [smem:[#allocation34_spill]]  ;;  %s5366_s22 = smov [#allocation3]  }
0x1bf6   : > { %s4346_s5 = sshll.u32 %s5366_s22, 4  ;;  %s4347_s5 = int_to_ptr.vmem [resolvable:$true] %s4346_s5 }
0x1bf7   : > { %s5261_s13 = scalar_lea.vmem %s4347_s5, 256  ;;  %p5268_p10 = scmp.lt.s32.totalorder %s4347_s5, %s4347_s5 }
0x1bf8   : > { %p5262_p7 = scmp.ne.s32.totalorder %s4347_s5, %s5261_s13  ;;  %p5269_p11 = scmp.lt.s32.totalorder %s5261_s13, %s5261_s13 }
0x1bfa   : > { %p5270_p12 = por %p5269_p11, %p5268_p10 }
0x1bfb   : > { %p5124_p6 = scmp.eq.s32.totalorder %s6088_s18, 1 }
0x1bfd   : > { %p5263_p8 = pnand %p5262_p7, %p5124_p6 }
0x1bff   : > { %p5264_p9 = pneg %p5263_p8 }
0x1c01   : > { %p5271_p13 = pnand %p5270_p12, %p5264_p9 }
0x1c03   : > { %5274 = shalt.err (!%p5271_p13)
}
0x1c04   : > { %s5367_s17 = smov 128   ;;  %s6089_s3 = sld [smem:[#allocation30_spill]] }
0x1c05   : > { %s5368_s16 = smov 8   ;;  %s5369_s9 = smov [#allocation5]  }
0x1c06   : > { %s4359_s21 = sshll.u32 %s5369_s9, 4  ;;  %s4360_s21 = int_to_ptr.vmem [resolvable:$true] %s4359_s21 }
0x1c07   : > { %s5285_s25 = scalar_lea.vmem %s4360_s21, 256  ;;  %p5292_p3 = scmp.lt.s32.totalorder %s4360_s21, %s4360_s21 }
0x1c08   : > { %p5286_p0 = scmp.ne.s32.totalorder %s4360_s21, %s5285_s25  ;;  %p5293_p4 = scmp.lt.s32.totalorder %s5285_s25, %s5285_s25 }
0x1c0a   : > { %5117 = dma.vmem_to_hbm [thread:$0]  (%p5124_p6), %s4347_s5, 256, %s6089_s3, [#allocation4], %s5367_s17, %s5367_s17, %s5368_s16  }
0x1c0b   : > { %p5287_p1 = pnand %p5286_p0, %p5124_p6  ;;  %p5294_p5 = por %p5293_p4, %p5292_p3 }
0x1c0d   : > { %p5288_p2 = pneg %p5287_p1 }
0x1c0f   : > { %p5295_p7 = pnand %p5294_p5, %p5288_p2 }
0x1c11   : > { %5298 = shalt.err (!%p5295_p7)
}
0x1c12   : > { %s6090_s29 = sld [smem:[#allocation31_spill]] }
0x1c18   : > { %5119 = dma.vmem_to_hbm [thread:$0]  (%p5124_p6), %s4360_s21, 256, %s6090_s29, [#allocation6], %s5367_s17, %s5367_s17, %s5368_s16  }
0x1c19   : > { %5314 = dma.done.wait (%p5124_p6), [#allocation4], 256  }
0x1c1a   : > { %5316 = vsyncadd (%p5124_p6), [#allocation4], 4294967040 }
0x1c1b   : > { %5318 = dma.done.wait (%p5124_p6), [#allocation6], 256  }
0x1c1c   : > { %5320 = vsyncadd (%p5124_p6), [#allocation6], 4294967040 }
0x1c1d PF: > { %s6091_s8 = sld [smem:[#allocation33_spill]] }
0x1c23   : > { %s74_s15 = sadd.s32 1, %s6091_s8  }
0x1c24   : > { %p71_p8 = scmp.ge.s32.totalorder %s74_s15, 4  }
0x1c26   :  { %73 = sbr.rel (!%p71_p8) target bundleno = 69 (0x45), region = 270 }
0x1c2b   :  { %4385 = vsyncpa [#allocation4], 1 }
0x1c2c   :  { %4387 = vsyncpa [#allocation4 + $0x1], 1 }
0x1c2d   :  { %4388 = vsyncpa [#allocation6], 1 }

</bundles_post_ra>
